<compile_context>
chip_gen: v5e
topology: v5e:2x2
jax: 0.10.0
libtpu: 0.0.40
codegen_flags: <defaults>
</compile_context>

<pallas_src>
import functools

import jax
import jax.numpy as jnp
from jax.experimental import pallas as pl
from jax.experimental.pallas import tpu as pltpu


# ----------------------------------------------------------------------------
# Small helpers
# ----------------------------------------------------------------------------
def _round_up(n, m):
    return ((n + m - 1) // m) * m


def _pad_rows(a, n_pad):
    n = a.shape[0]
    if n_pad == n:
        return a
    return jnp.pad(a, ((0, n_pad - n), (0, 0)))


_VMEM_LIMIT = 32 * 1024 * 1024  # safe on v5e/v6e (128 MiB) and v7x (64 MiB)


# ----------------------------------------------------------------------------
# Plain linear kernel (used for fc0 lift)
# ----------------------------------------------------------------------------
def _linear_kernel(x_ref, w_ref, b_ref, o_ref, *, relu):
    acc = jnp.dot(x_ref[...], w_ref[...], preferred_element_type=jnp.float32)
    acc = acc + b_ref[...]
    if relu:
        acc = jnp.maximum(acc, 0.0)
    o_ref[...] = acc.astype(o_ref.dtype)


def pallas_linear(x, w, b, relu=False, tm=256):
    """y = x @ w + b (+relu).  x: (N, Cin) f32, w: (Cin, Cout)."""
    n, cin = x.shape
    cout = w.shape[1]
    x_bf = x.astype(jnp.bfloat16)
    w_bf = w.astype(jnp.bfloat16)
    b_row = b.reshape(1, cout).astype(jnp.float32)

    if n <= tm:
        n_pad, tm_eff = n, n                      # single full block, no pad
    else:
        tm_eff = tm
        n_pad = _round_up(n, tm)
        x_bf = _pad_rows(x_bf, n_pad)
    nt = n_pad // tm_eff

    out = pl.pallas_call(
        functools.partial(_linear_kernel, relu=relu),
        out_shape=jax.ShapeDtypeStruct((n_pad, cout), jnp.float32),
        grid=(nt,),
        in_specs=[pl.BlockSpec((tm_eff, cin), lambda i: (i, 0)),
                  pl.BlockSpec((cin, cout), lambda i: (0, 0)),
                  pl.BlockSpec((1, cout), lambda i: (0, 0))],
        out_specs=pl.BlockSpec((tm_eff, cout), lambda i: (i, 0)),
        compiler_params=pltpu.CompilerParams(
            dimension_semantics=("parallel",),
            vmem_limit_bytes=_VMEM_LIMIT),
        cost_estimate=pl.CostEstimate(
            flops=2 * n_pad * cin * cout,
            transcendentals=0,
            bytes_accessed=2 * n_pad * cin + 2 * cin * cout + 4 * n_pad * cout),
    )(x_bf, w_bf, b_row)
    return out if n_pad == n else out[:n]


# ----------------------------------------------------------------------------
# Fully fused FNO block: 1x1-conv + bias + residual + BatchNorm + (ReLU)
# (activation stays resident in VMEM; used when it fits)
# ----------------------------------------------------------------------------
def _fused_block_kernel(x_ref, w_ref, b_ref, r_ref, g_ref, be_ref, o_ref, *,
                        relu, inv_n, eps):
    y = jnp.dot(x_ref[...], w_ref[...], preferred_element_type=jnp.float32)
    y = y + b_ref[...] + r_ref[...]
    s = jnp.sum(y, axis=0, keepdims=True)
    ss = jnp.sum(y * y, axis=0, keepdims=True)
    mean = s * inv_n
    var = ss * inv_n - mean * mean            # biased variance (torch BN train)
    inv = jax.lax.rsqrt(var + eps)
    out = (y - mean) * (inv * g_ref[...]) + be_ref[...]
    if relu:
        out = jnp.maximum(out, 0.0)
    o_ref[...] = out.astype(o_ref.dtype)


# ----------------------------------------------------------------------------
# Tiled fallback (large N): pass 1 = linear+residual+stats, pass 2 = BN apply
# ----------------------------------------------------------------------------
def _linear_res_stats_kernel(x_ref, w_ref, b_ref, r_ref, y_ref, stats_ref,
                             sum_sc, ss_sc, *, n_valid, tm):
    i = pl.program_id(0)

    @pl.when(i == 0)
    def _():
        sum_sc[...] = jnp.zeros_like(sum_sc)
        ss_sc[...] = jnp.zeros_like(ss_sc)

    y = jnp.dot(x_ref[...], w_ref[...], preferred_element_type=jnp.float32)
    y = y + b_ref[...] + r_ref[...]
    y_ref[...] = y

    # Mask rows that belong to padding so they do not pollute BN statistics.
    row = i * tm + jax.lax.broadcasted_iota(jnp.int32, (y.shape[0], 1), 0)
    mask = (row < n_valid).astype(jnp.float32)
    ym = y * mask
    sum_sc[...] += jnp.sum(ym, axis=0, keepdims=True)
    ss_sc[...] += jnp.sum(ym * ym, axis=0, keepdims=True)

    @pl.when(i == pl.num_programs(0) - 1)
    def _():
        stats_ref[...] = jnp.concatenate([sum_sc[...], ss_sc[...]], axis=0)


def _bn_apply_kernel(y_ref, m_ref, inv_ref, g_ref, be_ref, o_ref, *, relu):
    out = (y_ref[...] - m_ref[...]) * (inv_ref[...] * g_ref[...]) + be_ref[...]
    if relu:
        out = jnp.maximum(out, 0.0)
    o_ref[...] = out.astype(o_ref.dtype)


def pallas_fno_block(x, residual, w, b, gamma, beta, relu,
                     eps=1e-5, tm=256, fuse_limit_bytes=2 * 1024 * 1024):
    """BN(x @ w + b + residual) (+relu).  x,residual: (N, C) f32."""
    n, cin = x.shape
    cout = w.shape[1]
    x_bf = x.astype(jnp.bfloat16)
    w_bf = w.astype(jnp.bfloat16)
    b_row = b.reshape(1, cout).astype(jnp.float32)
    g_row = gamma.reshape(1, cout).astype(jnp.float32)
    be_row = beta.reshape(1, cout).astype(jnp.float32)
    r_f32 = residual.astype(jnp.float32)

    if n * cout * 4 <= fuse_limit_bytes:
        # Whole activation comfortably resident in VMEM: one fused kernel,
        # zero intermediate HBM round trips.
        cost = pl.CostEstimate(
            flops=2 * n * cin * cout + 10 * n * cout,
            transcendentals=cout,
            bytes_accessed=2 * n * cin + 2 * cin * cout + 8 * n * cout)
        return pl.pallas_call(
            functools.partial(_fused_block_kernel, relu=relu,
                              inv_n=1.0 / n, eps=eps),
            out_shape=jax.ShapeDtypeStruct((n, cout), jnp.float32),
            cost_estimate=cost,
        )(x_bf, w_bf, b_row, r_f32, g_row, be_row)

    # ---- tiled two-pass fallback for large N -------------------------------
    n_pad = _round_up(n, tm)
    x_bf = _pad_rows(x_bf, n_pad)
    r_f32 = _pad_rows(r_f32, n_pad)
    nt = n_pad // tm

    y, stats = pl.pallas_call(
        functools.partial(_linear_res_stats_kernel, n_valid=n, tm=tm),
        out_shape=(jax.ShapeDtypeStruct((n_pad, cout), jnp.float32),
                   jax.ShapeDtypeStruct((2, cout), jnp.float32)),
        grid=(nt,),
        in_specs=[pl.BlockSpec((tm, cin), lambda i: (i, 0)),
                  pl.BlockSpec((cin, cout), lambda i: (0, 0)),
                  pl.BlockSpec((1, cout), lambda i: (0, 0)),
                  pl.BlockSpec((tm, cout), lambda i: (i, 0))],
        out_specs=[pl.BlockSpec((tm, cout), lambda i: (i, 0)),
                   pl.BlockSpec((2, cout), lambda i: (0, 0))],
        scratch_shapes=[pltpu.VMEM((1, cout), jnp.float32),
                        pltpu.VMEM((1, cout), jnp.float32)],
        compiler_params=pltpu.CompilerParams(
            dimension_semantics=("arbitrary",),
            vmem_limit_bytes=_VMEM_LIMIT),
        cost_estimate=pl.CostEstimate(
            flops=2 * n_pad * cin * cout + 6 * n_pad * cout,
            transcendentals=0,
            bytes_accessed=2 * n_pad * cin + 2 * cin * cout + 4 * n_pad * cout),
    )(x_bf, w_bf, b_row, r_f32)

    mean = stats[0] / n
    var = stats[1] / n - mean * mean
    invstd = jax.lax.rsqrt(var + eps)

    param_spec = pl.BlockSpec((1, cout), lambda i: (0, 0))
    out = pl.pallas_call(
        functools.partial(_bn_apply_kernel, relu=relu),
        out_shape=jax.ShapeDtypeStruct((n_pad, cout), jnp.float32),
        grid=(nt,),
        in_specs=[pl.BlockSpec((tm, cout), lambda i: (i, 0)),
                  param_spec, param_spec, param_spec, param_spec],
        out_specs=pl.BlockSpec((tm, cout), lambda i: (i, 0)),
        compiler_params=pltpu.CompilerParams(
            dimension_semantics=("parallel",),
            vmem_limit_bytes=_VMEM_LIMIT),
        cost_estimate=pl.CostEstimate(
            flops=5 * n_pad * cout, transcendentals=0,
            bytes_accessed=8 * n_pad * cout),
    )(y, mean.reshape(1, cout), invstd.reshape(1, cout), g_row, be_row)
    return out[:n]


# ----------------------------------------------------------------------------
# Fused projection head: fc1 + ReLU + fc2 (intermediate stays in VMEM)
# ----------------------------------------------------------------------------
def _head_kernel(x_ref, w1_ref, b1_ref, w2_ref, b2_ref, o_ref):
    h = jnp.dot(x_ref[...], w1_ref[...], preferred_element_type=jnp.float32)
    h = jnp.maximum(h + b1_ref[...], 0.0)
    out = jnp.dot(h.astype(w2_ref.dtype), w2_ref[...],
                  preferred_element_type=jnp.float32)
    o_ref[...] = (out + b2_ref[...]).astype(o_ref.dtype)


def pallas_head(x, w1, b1, w2, b2, tm=256):
    n, cin = x.shape
    ch = w1.shape[1]
    cout = w2.shape[1]
    x_bf = x.astype(jnp.bfloat16)
    w1_bf = w1.astype(jnp.bfloat16)
    w2_bf = w2.astype(jnp.bfloat16)
    b1_row = b1.reshape(1, ch).astype(jnp.float32)
    b2_row = b2.reshape(1, cout).astype(jnp.float32)

    if n <= tm:
        n_pad, tm_eff = n, n
    else:
        tm_eff = tm
        n_pad = _round_up(n, tm)
        x_bf = _pad_rows(x_bf, n_pad)
    nt = n_pad // tm_eff

    out = pl.pallas_call(
        _head_kernel,
        out_shape=jax.ShapeDtypeStruct((n_pad, cout), jnp.float32),
        grid=(nt,),
        in_specs=[pl.BlockSpec((tm_eff, cin), lambda i: (i, 0)),
                  pl.BlockSpec((cin, ch), lambda i: (0, 0)),
                  pl.BlockSpec((1, ch), lambda i: (0, 0)),
                  pl.BlockSpec((ch, cout), lambda i: (0, 0)),
                  pl.BlockSpec((1, cout), lambda i: (0, 0))],
        out_specs=pl.BlockSpec((tm_eff, cout), lambda i: (i, 0)),
        compiler_params=pltpu.CompilerParams(
            dimension_semantics=("parallel",),
            vmem_limit_bytes=_VMEM_LIMIT),
        cost_estimate=pl.CostEstimate(
            flops=2 * n_pad * (cin * ch + ch * cout),
            transcendentals=0,
            bytes_accessed=(2 * n_pad * cin + 2 * (cin * ch + ch * cout)
                            + 4 * n_pad * cout)),
    )(x_bf, w1_bf, b1_row, w2_bf, b2_row)
    return out if n_pad == n else out[:n]


# ----------------------------------------------------------------------------
# Spectral convolution (FFT part stays in plain JAX — no Pallas FFT)
# ----------------------------------------------------------------------------
def spectral_conv2d(x_bxyc, w1, w2, m1, m2):
    # TODO(synk): rfft2/irfft2 and the per-mode complex einsum have no clean
    # Pallas equivalent; kept in plain JAX.
    B, X, Y, _ = x_bxyc.shape
    cout = w1.shape[1]
    x_ft = jnp.fft.rfft2(x_bxyc, axes=(1, 2))             # (B, X, Y//2+1, C)
    out_ft = jnp.zeros((B, X, Y // 2 + 1, cout), dtype=jnp.complex64)
    top = jnp.einsum('bxyi,ioxy->bxyo', x_ft[:, :m1, :m2, :], w1)
    bot = jnp.einsum('bxyi,ioxy->bxyo', x_ft[:, -m1:, :m2, :], w2)
    out_ft = out_ft.at[:, :m1, :m2, :].set(top)
    out_ft = out_ft.at[:, -m1:, :m2, :].set(bot)
    return jnp.fft.irfft2(out_ft, s=(X, Y), axes=(1, 2))  # (B, X, Y, Cout) f32


# ----------------------------------------------------------------------------
# Full forward pass
# ----------------------------------------------------------------------------
def fno2d_reac_diff_forward(params, x, modes1, modes2):
    """x: (B, X, Y, n_channels_in - 2), returns (B, X, Y, n_channels_out)."""
    B, X, Y, _ = x.shape
    gridx = jnp.broadcast_to(
        jnp.linspace(0.0, 1.0, X, dtype=jnp.float32).reshape(1, X, 1, 1),
        (B, X, Y, 1))
    gridy = jnp.broadcast_to(
        jnp.linspace(0.0, 1.0, Y, dtype=jnp.float32).reshape(1, 1, Y, 1),
        (B, X, Y, 1))
    x = jnp.concatenate([x.astype(jnp.float32), gridx, gridy], axis=-1)

    N = B * X * Y
    h = pallas_linear(x.reshape(N, -1), params['fc0_w'], params['fc0_b'])

    width = params['fc0_w'].shape[1]
    for l in range(4):
        h_bxyc = h.reshape(B, X, Y, width)
        spec = spectral_conv2d(h_bxyc, params[f'conv{l}_w1'],
                               params[f'conv{l}_w2'], modes1, modes2)
        h = pallas_fno_block(h, spec.reshape(N, width),
                             params[f'w{l}_w'], params[f'w{l}_b'],
                             params[f'bn{l}_g'], params[f'bn{l}_b'],
                             relu=(l < 3))

    out = pallas_head(h, params['fc1_w'], params['fc1_b'],
                      params['fc2_w'], params['fc2_b'])
    return out.reshape(B, X, Y, -1)


# ----------------------------------------------------------------------------
# Deterministic parameter construction (shapes match the torch module)
# ----------------------------------------------------------------------------
def make_params(key, modes1, modes2, width, n_channels_in, n_channels_out):
    keys = iter(jax.random.split(key, 32))
    u = lambda shape: jax.random.uniform(next(keys), shape, jnp.float32,
                                         minval=-0.1, maxval=0.1)
    params = {}
    # fc layers (stored as (in, out) so y = x @ W + b)
    params['fc0_w'] = u((n_channels_in, width))
    params['fc0_b'] = u((width,))
    params['fc1_w'] = u((width, 128))
    params['fc1_b'] = u((128,))
    params['fc2_w'] = u((128, n_channels_out))
    params['fc2_b'] = u((n_channels_out,))
    scale = 1.0 / (width * width)
    for l in range(4):
        # spectral weights: complex, shape (in, out, modes1, modes2)
        wr = jax.random.uniform(next(keys), (width, width, modes1, modes2))
        wi = jax.random.uniform(next(keys), (width, width, modes1, modes2))
        params[f'conv{l}_w1'] = (scale * (wr + 1j * wi)).astype(jnp.complex64)
        wr = jax.random.uniform(next(keys), (width, width, modes1, modes2))
        wi = jax.random.uniform(next(keys), (width, width, modes1, modes2))
        params[f'conv{l}_w2'] = (scale * (wr + 1j * wi)).astype(jnp.complex64)
        # 1x1 Conv1d, stored as (in, out) so y = x @ W + b
        params[f'w{l}_w'] = u((width, width))
        params[f'w{l}_b'] = u((width,))
        # BatchNorm affine params (torch init: gamma=1, beta=0)
        params[f'bn{l}_g'] = jnp.ones((width,), jnp.float32)
        params[f'bn{l}_b'] = jnp.zeros((width,), jnp.float32)
    return params


# ----------------------------------------------------------------------------
if __name__ == "__main__":
    modes1, modes2 = 8, 8
    width = 32
    n_channels_in = 3          # raw channel (u_t) + 2 grid coordinates
    n_channels_out = 1
    B, X, Y = 2, 16, 16

    key = jax.random.PRNGKey(0)
    kp, kx = jax.random.split(key)
    params = make_params(kp, modes1, modes2, width, n_channels_in,
                         n_channels_out)
    x = jax.random.normal(kx, (B, X, Y, n_channels_in - 2), jnp.float32)

    fwd = jax.jit(functools.partial(fno2d_reac_diff_forward,
                                    modes1=modes1, modes2=modes2))
    out = fwd(params, x)
    jax.block_until_ready(out)
    assert out.shape == (B, X, Y, n_channels_out), out.shape
    assert bool(jnp.all(jnp.isfinite(out)))
    print("KERNEL_OK")
</pallas_src>

<mosaic_0001>
module attributes {stable_mosaic.version = 11 : i64} {
  func.func @_linear_kernel(%arg0: i32, %arg1: memref<256x3xbf16, #tpu.memory_space<vmem>>, %arg2: memref<3x32xbf16, #tpu.memory_space<vmem>>, %arg3: memref<1x32xf32, #tpu.memory_space<vmem>>, %arg4: memref<256x32xf32, #tpu.memory_space<vmem>>) attributes {dimension_semantics = [#tpu.dimension_semantics<parallel>], iteration_bounds = array<i64: 2>, scalar_prefetch = 0 : i64, scratch_operands = 0 : i64, tpu.core_type = #tpu.core_type<tc>, window_params = [{transform_indices = @transform_0, window_bounds = array<i64: 256, 3>}, {pipeline_mode = #tpu.pipeline_mode<synchronous>, transform_indices = @transform_1, window_bounds = array<i64: 3, 32>}, {pipeline_mode = #tpu.pipeline_mode<synchronous>, transform_indices = @transform_2, window_bounds = array<i64: 1, 32>}, {transform_indices = @transform_3, window_bounds = array<i64: 256, 32>}]} {
    %c0 = arith.constant 0 : index
    %c0_0 = arith.constant 0 : index
    %0 = vector.load %arg1[%c0, %c0_0] : memref<256x3xbf16, #tpu.memory_space<vmem>>, vector<256x3xbf16>
    %c0_1 = arith.constant 0 : index
    %c0_2 = arith.constant 0 : index
    %1 = vector.load %arg2[%c0_1, %c0_2] : memref<3x32xbf16, #tpu.memory_space<vmem>>, vector<3x32xbf16>
    %cst = arith.constant dense<0.000000e+00> : vector<256x32xf32>
    %2 = tpu.matmul %0, %1, %cst {dimension_numbers = #tpu.dot_dimension_numbers<[1], [0], [0], [1], [0, 0, 1, 1], [], []>} : vector<256x3xbf16>, vector<3x32xbf16>, vector<256x32xf32> -> vector<256x32xf32>
    %c0_3 = arith.constant 0 : index
    %c0_4 = arith.constant 0 : index
    %3 = vector.load %arg3[%c0_3, %c0_4] : memref<1x32xf32, #tpu.memory_space<vmem>>, vector<1x32xf32>
    %4 = vector.broadcast %3 : vector<1x32xf32> to vector<256x32xf32>
    %5 = arith.addf %2, %4 : vector<256x32xf32>
    %c0_5 = arith.constant 0 : index
    %c0_6 = arith.constant 0 : index
    %6 = vector.load %arg4[%c0_5, %c0_6] : memref<256x32xf32, #tpu.memory_space<vmem>>, vector<256x32xf32>
    tpu.vector_store %arg4[%c0_5, %c0_6], %5 {strides = array<i32>} : memref<256x32xf32, #tpu.memory_space<vmem>>, vector<256x32xf32>,
    return
  }
  func.func @transform_0(%arg0: i32) -> (i32, i32) {
    %c0_i32 = arith.constant 0 : i32
    %c0_i32_0 = arith.constant 0 : i32
    return %arg0, %c0_i32 : i32, i32
  }
  func.func @transform_1(%arg0: i32) -> (i32, i32) {
    %c0_i32 = arith.constant 0 : i32
    %c0_i32_0 = arith.constant 0 : i32
    %c0_i32_1 = arith.constant 0 : i32
    return %c0_i32, %c0_i32_0 : i32, i32
  }
  func.func @transform_2(%arg0: i32) -> (i32, i32) {
    %c0_i32 = arith.constant 0 : i32
    %c0_i32_0 = arith.constant 0 : i32
    %c0_i32_1 = arith.constant 0 : i32
    return %c0_i32, %c0_i32_0 : i32, i32
  }
  func.func @transform_3(%arg0: i32) -> (i32, i32) {
    %c0_i32 = arith.constant 0 : i32
    %c0_i32_0 = arith.constant 0 : i32
    return %arg0, %c0_i32 : i32, i32
  }
}

module attributes {stable_mosaic.version = 11 : i64} {
  func.func @_fused_block_kernel(%arg0: memref<512x32xbf16, #tpu.memory_space<vmem>>, %arg1: memref<32x32xbf16, #tpu.memory_space<vmem>>, %arg2: memref<1x32xf32, #tpu.memory_space<vmem>>, %arg3: memref<512x32xf32, #tpu.memory_space<vmem>>, %arg4: memref<1x32xf32, #tpu.memory_space<vmem>>, %arg5: memref<1x32xf32, #tpu.memory_space<vmem>>, %arg6: memref<512x32xf32, #tpu.memory_space<vmem>>) attributes {dimension_semantics = [], scalar_prefetch = 0 : i64, scratch_operands = 0 : i64, tpu.core_type = #tpu.core_type<tc>} {
    %c0 = arith.constant 0 : index
    %c0_0 = arith.constant 0 : index
    %0 = vector.load %arg0[%c0, %c0_0] : memref<512x32xbf16, #tpu.memory_space<vmem>>, vector<512x32xbf16>
    %c0_1 = arith.constant 0 : index
    %c0_2 = arith.constant 0 : index
    %1 = vector.load %arg1[%c0_1, %c0_2] : memref<32x32xbf16, #tpu.memory_space<vmem>>, vector<32x32xbf16>
    %cst = arith.constant dense<0.000000e+00> : vector<512x32xf32>
    %2 = tpu.matmul %0, %1, %cst {dimension_numbers = #tpu.dot_dimension_numbers<[1], [0], [0], [1], [0, 0, 1, 1], [], []>} : vector<512x32xbf16>, vector<32x32xbf16>, vector<512x32xf32> -> vector<512x32xf32>
    %c0_3 = arith.constant 0 : index
    %c0_4 = arith.constant 0 : index
    %3 = vector.load %arg2[%c0_3, %c0_4] : memref<1x32xf32, #tpu.memory_space<vmem>>, vector<1x32xf32>
    %4 = vector.broadcast %3 : vector<1x32xf32> to vector<512x32xf32>
    %5 = arith.addf %2, %4 : vector<512x32xf32>
    %c0_5 = arith.constant 0 : index
    %c0_6 = arith.constant 0 : index
    %6 = vector.load %arg3[%c0_5, %c0_6] : memref<512x32xf32, #tpu.memory_space<vmem>>, vector<512x32xf32>
    %7 = arith.addf %5, %6 : vector<512x32xf32>
    %cst_7 = arith.constant dense<0.000000e+00> : vector<32xf32>
    %8 = vector.multi_reduction <add>, %7, %cst_7 [0] : vector<512x32xf32> to vector<32xf32>
    %9 = vector.shape_cast %8 : vector<32xf32> to vector<1x32xf32>
    %10 = arith.mulf %7, %7 : vector<512x32xf32>
    %cst_8 = arith.constant dense<0.000000e+00> : vector<32xf32>
    %11 = vector.multi_reduction <add>, %10, %cst_8 [0] : vector<512x32xf32> to vector<32xf32>
    %12 = vector.shape_cast %11 : vector<32xf32> to vector<1x32xf32>
    %cst_9 = arith.constant 0.001953125 : f32
    %13 = vector.broadcast %cst_9 : f32 to vector<1x32xf32>
    %14 = arith.mulf %9, %13 : vector<1x32xf32>
    %cst_10 = arith.constant 0.001953125 : f32
    %15 = vector.broadcast %cst_10 : f32 to vector<1x32xf32>
    %16 = arith.mulf %12, %15 : vector<1x32xf32>
    %17 = arith.mulf %14, %14 : vector<1x32xf32>
    %18 = arith.subf %16, %17 : vector<1x32xf32>
    %cst_11 = arith.constant 9.99999974E-6 : f32
    %19 = vector.broadcast %cst_11 : f32 to vector<1x32xf32>
    %20 = arith.addf %18, %19 : vector<1x32xf32>
    %21 = math.rsqrt %20 : vector<1x32xf32>
    %22 = vector.broadcast %14 : vector<1x32xf32> to vector<512x32xf32>
    %23 = arith.subf %7, %22 : vector<512x32xf32>
    %c0_12 = arith.constant 0 : index
    %c0_13 = arith.constant 0 : index
    %24 = vector.load %arg4[%c0_12, %c0_13] : memref<1x32xf32, #tpu.memory_space<vmem>>, vector<1x32xf32>
    %25 = arith.mulf %21, %24 : vector<1x32xf32>
    %26 = vector.broadcast %25 : vector<1x32xf32> to vector<512x32xf32>
    %27 = arith.mulf %23, %26 : vector<512x32xf32>
    %c0_14 = arith.constant 0 : index
    %c0_15 = arith.constant 0 : index
    %28 = vector.load %arg5[%c0_14, %c0_15] : memref<1x32xf32, #tpu.memory_space<vmem>>, vector<1x32xf32>
    %29 = vector.broadcast %28 : vector<1x32xf32> to vector<512x32xf32>
    %30 = arith.addf %27, %29 : vector<512x32xf32>
    %cst_16 = arith.constant 0.000000e+00 : f32
    %31 = vector.broadcast %cst_16 : f32 to vector<512x32xf32>
    %32 = arith.maximumf %30, %31 : vector<512x32xf32>
    %c0_17 = arith.constant 0 : index
    %c0_18 = arith.constant 0 : index
    %33 = vector.load %arg6[%c0_17, %c0_18] : memref<512x32xf32, #tpu.memory_space<vmem>>, vector<512x32xf32>
    tpu.vector_store %arg6[%c0_17, %c0_18], %32 {strides = array<i32>} : memref<512x32xf32, #tpu.memory_space<vmem>>, vector<512x32xf32>,
    return
  }
}

module attributes {stable_mosaic.version = 11 : i64} {
  func.func @_fused_block_kernel(%arg0: memref<512x32xbf16, #tpu.memory_space<vmem>>, %arg1: memref<32x32xbf16, #tpu.memory_space<vmem>>, %arg2: memref<1x32xf32, #tpu.memory_space<vmem>>, %arg3: memref<512x32xf32, #tpu.memory_space<vmem>>, %arg4: memref<1x32xf32, #tpu.memory_space<vmem>>, %arg5: memref<1x32xf32, #tpu.memory_space<vmem>>, %arg6: memref<512x32xf32, #tpu.memory_space<vmem>>) attributes {dimension_semantics = [], scalar_prefetch = 0 : i64, scratch_operands = 0 : i64, tpu.core_type = #tpu.core_type<tc>} {
    %c0 = arith.constant 0 : index
    %c0_0 = arith.constant 0 : index
    %0 = vector.load %arg0[%c0, %c0_0] : memref<512x32xbf16, #tpu.memory_space<vmem>>, vector<512x32xbf16>
    %c0_1 = arith.constant 0 : index
    %c0_2 = arith.constant 0 : index
    %1 = vector.load %arg1[%c0_1, %c0_2] : memref<32x32xbf16, #tpu.memory_space<vmem>>, vector<32x32xbf16>
    %cst = arith.constant dense<0.000000e+00> : vector<512x32xf32>
    %2 = tpu.matmul %0, %1, %cst {dimension_numbers = #tpu.dot_dimension_numbers<[1], [0], [0], [1], [0, 0, 1, 1], [], []>} : vector<512x32xbf16>, vector<32x32xbf16>, vector<512x32xf32> -> vector<512x32xf32>
    %c0_3 = arith.constant 0 : index
    %c0_4 = arith.constant 0 : index
    %3 = vector.load %arg2[%c0_3, %c0_4] : memref<1x32xf32, #tpu.memory_space<vmem>>, vector<1x32xf32>
    %4 = vector.broadcast %3 : vector<1x32xf32> to vector<512x32xf32>
    %5 = arith.addf %2, %4 : vector<512x32xf32>
    %c0_5 = arith.constant 0 : index
    %c0_6 = arith.constant 0 : index
    %6 = vector.load %arg3[%c0_5, %c0_6] : memref<512x32xf32, #tpu.memory_space<vmem>>, vector<512x32xf32>
    %7 = arith.addf %5, %6 : vector<512x32xf32>
    %cst_7 = arith.constant dense<0.000000e+00> : vector<32xf32>
    %8 = vector.multi_reduction <add>, %7, %cst_7 [0] : vector<512x32xf32> to vector<32xf32>
    %9 = vector.shape_cast %8 : vector<32xf32> to vector<1x32xf32>
    %10 = arith.mulf %7, %7 : vector<512x32xf32>
    %cst_8 = arith.constant dense<0.000000e+00> : vector<32xf32>
    %11 = vector.multi_reduction <add>, %10, %cst_8 [0] : vector<512x32xf32> to vector<32xf32>
    %12 = vector.shape_cast %11 : vector<32xf32> to vector<1x32xf32>
    %cst_9 = arith.constant 0.001953125 : f32
    %13 = vector.broadcast %cst_9 : f32 to vector<1x32xf32>
    %14 = arith.mulf %9, %13 : vector<1x32xf32>
    %cst_10 = arith.constant 0.001953125 : f32
    %15 = vector.broadcast %cst_10 : f32 to vector<1x32xf32>
    %16 = arith.mulf %12, %15 : vector<1x32xf32>
    %17 = arith.mulf %14, %14 : vector<1x32xf32>
    %18 = arith.subf %16, %17 : vector<1x32xf32>
    %cst_11 = arith.constant 9.99999974E-6 : f32
    %19 = vector.broadcast %cst_11 : f32 to vector<1x32xf32>
    %20 = arith.addf %18, %19 : vector<1x32xf32>
    %21 = math.rsqrt %20 : vector<1x32xf32>
    %22 = vector.broadcast %14 : vector<1x32xf32> to vector<512x32xf32>
    %23 = arith.subf %7, %22 : vector<512x32xf32>
    %c0_12 = arith.constant 0 : index
    %c0_13 = arith.constant 0 : index
    %24 = vector.load %arg4[%c0_12, %c0_13] : memref<1x32xf32, #tpu.memory_space<vmem>>, vector<1x32xf32>
    %25 = arith.mulf %21, %24 : vector<1x32xf32>
    %26 = vector.broadcast %25 : vector<1x32xf32> to vector<512x32xf32>
    %27 = arith.mulf %23, %26 : vector<512x32xf32>
    %c0_14 = arith.constant 0 : index
    %c0_15 = arith.constant 0 : index
    %28 = vector.load %arg5[%c0_14, %c0_15] : memref<1x32xf32, #tpu.memory_space<vmem>>, vector<1x32xf32>
    %29 = vector.broadcast %28 : vector<1x32xf32> to vector<512x32xf32>
    %30 = arith.addf %27, %29 : vector<512x32xf32>
    %c0_16 = arith.constant 0 : index
    %c0_17 = arith.constant 0 : index
    %31 = vector.load %arg6[%c0_16, %c0_17] : memref<512x32xf32, #tpu.memory_space<vmem>>, vector<512x32xf32>
    tpu.vector_store %arg6[%c0_16, %c0_17], %30 {strides = array<i32>} : memref<512x32xf32, #tpu.memory_space<vmem>>, vector<512x32xf32>,
    return
  }
}

module attributes {stable_mosaic.version = 11 : i64} {
  func.func @_head_kernel(%arg0: i32, %arg1: memref<256x32xbf16, #tpu.memory_space<vmem>>, %arg2: memref<32x128xbf16, #tpu.memory_space<vmem>>, %arg3: memref<1x128xf32, #tpu.memory_space<vmem>>, %arg4: memref<128x1xbf16, #tpu.memory_space<vmem>>, %arg5: memref<1x1xf32, #tpu.memory_space<vmem>>, %arg6: memref<256x1xf32, #tpu.memory_space<vmem>>) attributes {dimension_semantics = [#tpu.dimension_semantics<parallel>], iteration_bounds = array<i64: 2>, scalar_prefetch = 0 : i64, scratch_operands = 0 : i64, tpu.core_type = #tpu.core_type<tc>, window_params = [{transform_indices = @transform_0, window_bounds = array<i64: 256, 32>}, {pipeline_mode = #tpu.pipeline_mode<synchronous>, transform_indices = @transform_1, window_bounds = array<i64: 32, 128>}, {pipeline_mode = #tpu.pipeline_mode<synchronous>, transform_indices = @transform_2, window_bounds = array<i64: 1, 128>}, {pipeline_mode = #tpu.pipeline_mode<synchronous>, transform_indices = @transform_3, window_bounds = array<i64: 128, 1>}, {pipeline_mode = #tpu.pipeline_mode<synchronous>, transform_indices = @transform_4, window_bounds = array<i64: 1, 1>}, {transform_indices = @transform_5, window_bounds = array<i64: 256, 1>}]} {
    %c0 = arith.constant 0 : index
    %c0_0 = arith.constant 0 : index
    %0 = vector.load %arg1[%c0, %c0_0] : memref<256x32xbf16, #tpu.memory_space<vmem>>, vector<256x32xbf16>
    %c0_1 = arith.constant 0 : index
    %c0_2 = arith.constant 0 : index
    %1 = vector.load %arg2[%c0_1, %c0_2] : memref<32x128xbf16, #tpu.memory_space<vmem>>, vector<32x128xbf16>
    %cst = arith.constant dense<0.000000e+00> : vector<256x128xf32>
    %2 = tpu.matmul %0, %1, %cst {dimension_numbers = #tpu.dot_dimension_numbers<[1], [0], [0], [1], [0, 0, 1, 1], [], []>} : vector<256x32xbf16>, vector<32x128xbf16>, vector<256x128xf32> -> vector<256x128xf32>
    %c0_3 = arith.constant 0 : index
    %c0_4 = arith.constant 0 : index
    %3 = vector.load %arg3[%c0_3, %c0_4] : memref<1x128xf32, #tpu.memory_space<vmem>>, vector<1x128xf32>
    %4 = vector.broadcast %3 : vector<1x128xf32> to vector<256x128xf32>
    %5 = arith.addf %2, %4 : vector<256x128xf32>
    %cst_5 = arith.constant 0.000000e+00 : f32
    %6 = vector.broadcast %cst_5 : f32 to vector<256x128xf32>
    %7 = arith.maximumf %5, %6 : vector<256x128xf32>
    %8 = arith.truncf %7 : vector<256x128xf32> to vector<256x128xbf16>
    %c0_6 = arith.constant 0 : index
    %c0_7 = arith.constant 0 : index
    %9 = vector.load %arg4[%c0_6, %c0_7] : memref<128x1xbf16, #tpu.memory_space<vmem>>, vector<128x1xbf16>
    %cst_8 = arith.constant dense<0.000000e+00> : vector<256x1xf32>
    %10 = tpu.matmul %8, %9, %cst_8 {dimension_numbers = #tpu.dot_dimension_numbers<[1], [0], [0], [1], [0, 0, 1, 1], [], []>} : vector<256x128xbf16>, vector<128x1xbf16>, vector<256x1xf32> -> vector<256x1xf32>
    %c0_9 = arith.constant 0 : index
    %c0_10 = arith.constant 0 : index
    %11 = vector.load %arg5[%c0_9, %c0_10] : memref<1x1xf32, #tpu.memory_space<vmem>>, vector<1x1xf32>
    %12 = vector.broadcast %11 : vector<1x1xf32> to vector<256x1xf32>
    %13 = arith.addf %10, %12 : vector<256x1xf32>
    %c0_11 = arith.constant 0 : index
    %c0_12 = arith.constant 0 : index
    %14 = vector.load %arg6[%c0_11, %c0_12] : memref<256x1xf32, #tpu.memory_space<vmem>>, vector<256x1xf32>
    tpu.vector_store %arg6[%c0_11, %c0_12], %13 {strides = array<i32>} : memref<256x1xf32, #tpu.memory_space<vmem>>, vector<256x1xf32>,
    return
  }
  func.func @transform_0(%arg0: i32) -> (i32, i32) {
    %c0_i32 = arith.constant 0 : i32
    %c0_i32_0 = arith.constant 0 : i32
    return %arg0, %c0_i32 : i32, i32
  }
  func.func @transform_1(%arg0: i32) -> (i32, i32) {
    %c0_i32 = arith.constant 0 : i32
    %c0_i32_0 = arith.constant 0 : i32
    %c0_i32_1 = arith.constant 0 : i32
    return %c0_i32, %c0_i32_0 : i32, i32
  }
  func.func @transform_2(%arg0: i32) -> (i32, i32) {
    %c0_i32 = arith.constant 0 : i32
    %c0_i32_0 = arith.constant 0 : i32
    %c0_i32_1 = arith.constant 0 : i32
    return %c0_i32, %c0_i32_0 : i32, i32
  }
  func.func @transform_3(%arg0: i32) -> (i32, i32) {
    %c0_i32 = arith.constant 0 : i32
    %c0_i32_0 = arith.constant 0 : i32
    %c0_i32_1 = arith.constant 0 : i32
    return %c0_i32, %c0_i32_0 : i32, i32
  }
  func.func @transform_4(%arg0: i32) -> (i32, i32) {
    %c0_i32 = arith.constant 0 : i32
    %c0_i32_0 = arith.constant 0 : i32
    %c0_i32_1 = arith.constant 0 : i32
    return %c0_i32, %c0_i32_0 : i32, i32
  }
  func.func @transform_5(%arg0: i32) -> (i32, i32) {
    %c0_i32 = arith.constant 0 : i32
    %c0_i32_0 = arith.constant 0 : i32
    return %arg0, %c0_i32 : i32, i32
  }
}

</mosaic_0001>

<bundles_post_ra>
// kernel: fno2d_reac_diff_forward.6
= control target key start
LH: loop header
LB: loop body
LE: loop exit
PB: predicated region body
PF: predicated region fallthrough
CT: control target
= control target key end

     0   :  { %8 = vsyncpa [#allocation3], 0  ;;  %s750_s12 = smov 0   ;;  %s911_s0 = inlined_call_operand.vmem [shape: bf16[512,3], index: 0, kind: input, shape index: {}]   ;;  %s912_s1 = inlined_call_operand.vmem [shape: bf16[3,32], index: 1, kind: input, shape index: {}]   ;;  %s913_s2 = inlined_call_operand.hbm [shape: f32[1,32], index: 2, kind: input, shape index: {}]   ;;  %s914_s3 = inlined_call_operand.vmem [shape: f32[512,32], index: 3, kind: output, shape index: {}]  }
   0x1 LB: > { %s553_s13 = sadd.s32 4294967295, %s726_s12   ;;  %p555_p0 = scmp.ge.s32.totalorder %s726_s12, 1  ;;  %s726_s12 = sphi %s750_s12, %s14_s12  }
   0x2   : > { %p113_p1 = scmp.lt.s32.totalorder %s726_s12, 3  ;;  %s128_s16 = sshll.u32 %s913_s2, 4  ;;  %s129_s16 = int_to_ptr.hbm [resolvable:$true] %s128_s16 }
   0x3   : > { %p673_p3 = scmp.eq.s32.totalorder %s553_s13, 0  ;;  %s728_s17 = smov [#allocation2]  }
   0x4   : > { %p114_p2 = pnand %p555_p0, %p113_p1  ;;  %s130_s18 = sshll.u32 %s728_s17, 4  ;;  %s131_s18 = int_to_ptr.vmem [resolvable:$true] %s130_s18 }
   0x6   : > { %p669_p4 = pneg %p114_p2  ;;  %152 = sbr.rel (%p114_p2) target bundleno = 213 (0xd5), region = 32 }
   0x8   : > { %p670_p5 = pnand %p673_p3, %p669_p4 }
   0xa   : > { %672 = dma.hbm_to_vmem [thread:$0]  (!%p670_p5), %s129_s16, 16, %s131_s18, [#allocation3]  }
   0xb   : > { %721 = dma.done.wait (%p673_p3), [#allocation3], 16  }
   0xc   : > { %723 = vsyncadd (%p673_p3), [#allocation3], 4294967280  ;;  %vm356_vm0 = vcmask 1040384   ;;  %s560_s19 = sshll.u32 %s553_s13, 5  ;;  %vm357_vm1 = vcmask 1041408   ;;  %v729_v0 = vmov 65535  }
   0xd   : > { %p178_p6 = scmp.lt.s32.totalorder %s560_s19, 63  ;;  %v358_v1 = vsel %vm356_vm0, 4294967295, %v729_v0  ;;  %v222_v3 = vld [vmem:[%s912_s1] sm:$0x3]  ;;  %vm307_vm2 = vcmask 23552   ;;  %vm452_vm3 = vcmask 261120  }
   0xe   : > { %v359_v2 = vsel %vm357_vm1, %v358_v1, 0  ;;  %v805_v21 = vld [vmem:[#allocation2] ss:$0 sm:$0xff] }
   0xf   : > { %s916_s19 = smov (!%p178_p6, %s560_s19), 63  ;;  %v361_v4 = vand.u32 %v359_v2, %v222_v3 }
  0x10   : > { %s561_s20 = sshll.u32 %s916_s19, 2  ;;  %s563_s26 = sshll.u32 %s916_s19, 3 }
  0x11   : > { %s767_s23 = scalar_lea.vmem %s911_s0, %s561_s20  ;;  %370 = vmatpush.bf16.msra.mxu0 %v361_v4  ;;  %662 = vmatpush.bf16.msra.mxu1 %v361_v4  ;;  %s810_s29 = scalar_lea.vmem %s914_s3, %s563_s26 }
  0x12   : > { %v646_v5 = vld [vmem:[%s767_s23] sm:$0xff]  ;;  %663 = vmatpush.bf16.msra.mxu2 %v361_v4  ;;  %664 = vmatpush.bf16.msra.mxu3 %v361_v4  ;;  %v647_v9 = vld [vmem:[%s767_s23 + $0x8] sm:$0xff]  ;;  %v648_v13 = vld [vmem:[%s767_s23 + $0x10] sm:$0xff] }
  0x13   : > { %v650_v6 = vld [vmem:[%s767_s23 + $0x20] sm:$0xff]  ;;  %v651_v10 = vld [vmem:[%s767_s23 + $0x28] sm:$0xff]  ;;  %v652_v14 = vld [vmem:[%s767_s23 + $0x30] sm:$0xff] }
  0x14   : > { %v654_v7 = vld [vmem:[%s767_s23 + $0x40] sm:$0xff]  ;;  %628 = vmatmul.msk.bf16.vlgmr.msra.gmra.mxu0 %vm307_vm2, %v646_v5  ;;  %632 = vmatmul.msk.bf16.vlgmr.msra.gmra.mxu1 %vm307_vm2, %v650_v6  ;;  %v655_v11 = vld [vmem:[%s767_s23 + $0x48] sm:$0xff]  ;;  %v656_v15 = vld [vmem:[%s767_s23 + $0x50] sm:$0xff] }
  0x15   : > { %v658_v8 = vld [vmem:[%s767_s23 + $0x60] sm:$0xff]  ;;  %636 = vmatmul.msk.bf16.vlgmr.msra.gmra.mxu2 %vm307_vm2, %v654_v7  ;;  %v659_v12 = vld [vmem:[%s767_s23 + $0x68] sm:$0xff]  ;;  %v660_v16 = vld [vmem:[%s767_s23 + $0x70] sm:$0xff] }
  0x16   : > { %640 = vmatmul.msk.bf16.vlgmr.msra.gmra.mxu3 %vm307_vm2, %v658_v8  ;;  %v649_v17 = vld [vmem:[%s767_s23 + $0x18] sm:$0xff] }
  0x17   : > { %v653_v18 = vld [vmem:[%s767_s23 + $0x38] sm:$0xff] }
  0x18   : > { %v657_v19 = vld [vmem:[%s767_s23 + $0x58] sm:$0xff] }
  0x19   : > { %v661_v20 = vld [vmem:[%s767_s23 + $0x78] sm:$0xff] }
  0x24   : > { %629 = vmatmul.msk.bf16.gmra.mxu0 %vm307_vm2, %v647_v9  ;;  %633 = vmatmul.msk.bf16.gmra.mxu1 %vm307_vm2, %v651_v10 }
  0x25   : > { %637 = vmatmul.msk.bf16.gmra.mxu2 %vm307_vm2, %v655_v11 }
  0x26   : > { %641 = vmatmul.msk.bf16.gmra.mxu3 %vm307_vm2, %v659_v12 }
  0x34   : > { %630 = vmatmul.msk.bf16.gmra.mxu0 %vm307_vm2, %v648_v13  ;;  %634 = vmatmul.msk.bf16.gmra.mxu1 %vm307_vm2, %v652_v14 }
  0x35   : > { %638 = vmatmul.msk.bf16.gmra.mxu2 %vm307_vm2, %v656_v15 }
  0x36   : > { %642 = vmatmul.msk.bf16.gmra.mxu3 %vm307_vm2, %v660_v16 }
  0x44   : > { %631 = vmatmul.msk.bf16.gmra.mxu0 %vm307_vm2, %v649_v17  ;;  %635 = vmatmul.msk.bf16.gmra.mxu1 %vm307_vm2, %v653_v18 }
  0x45   : > { %639 = vmatmul.msk.bf16.gmra.mxu2 %vm307_vm2, %v657_v19 }
  0x46   : > { %643 = vmatmul.msk.bf16.gmra.mxu3 %vm307_vm2, %v661_v20 }
  0x91   : > { %v372_v22 = vpop.f32.mrf.mxu0  ;;  %v392_v23 = vpop.f32.mrf.mxu1 }
  0x92   : > { %v373_v24 = vadd.f32 %v805_v21, %v372_v22  ;;  %v393_v25 = vadd.f32 %v805_v21, %v392_v23 }
  0x94   : > { %453 = vst.msk [vmem:[%s810_s29] sm:$0xff] %vm452_vm3, %v373_v24 }
  0x95   : > { %461 = vst.msk [vmem:[%s810_s29 + $0x40] sm:$0xff] %vm452_vm3, %v393_v25 }
  0x98   : > { %v412_v26 = vpop.f32.mrf.mxu2 }
  0x99   : > { %v432_v27 = vpop.f32.mrf.mxu3  ;;  %v413_v28 = vadd.f32 %v805_v21, %v412_v26  ;;  %v374_v30 = vpop.f32.mrf.mxu0 }
  0x9a   : > { %v433_v29 = vadd.f32 %v805_v21, %v432_v27  ;;  %v394_v31 = vpop.f32.mrf.mxu1  ;;  %v375_v32 = vadd.f32 %v805_v21, %v374_v30 }
  0x9b   : > { %v395_v33 = vadd.f32 %v805_v21, %v394_v31  ;;  %469 = vst.msk [vmem:[%s810_s29 + $0x80] sm:$0xff] %vm452_vm3, %v413_v28 }
  0x9c   : > { %477 = vst.msk [vmem:[%s810_s29 + $0xc0] sm:$0xff] %vm452_vm3, %v433_v29 }
  0x9d   : > { %454 = vst.msk [vmem:[%s810_s29 + $0x8] sm:$0xff] %vm452_vm3, %v375_v32 }
  0x9e   : > { %462 = vst.msk [vmem:[%s810_s29 + $0x48] sm:$0xff] %vm452_vm3, %v395_v33 }
  0xa0   : > { %v414_v34 = vpop.f32.mrf.mxu2 }
  0xa1   : > { %v434_v35 = vpop.f32.mrf.mxu3  ;;  %v415_v36 = vadd.f32 %v805_v21, %v414_v34  ;;  %v377_v38 = vpop.f32.mrf.mxu0 }
  0xa2   : > { %v435_v37 = vadd.f32 %v805_v21, %v434_v35  ;;  %v397_v39 = vpop.f32.mrf.mxu1  ;;  %v378_v40 = vadd.f32 %v805_v21, %v377_v38 }
  0xa3   : > { %v398_v41 = vadd.f32 %v805_v21, %v397_v39  ;;  %470 = vst.msk [vmem:[%s810_s29 + $0x88] sm:$0xff] %vm452_vm3, %v415_v36 }
  0xa4   : > { %478 = vst.msk [vmem:[%s810_s29 + $0xc8] sm:$0xff] %vm452_vm3, %v435_v37 }
  0xa5   : > { %455 = vst.msk [vmem:[%s810_s29 + $0x10] sm:$0xff] %vm452_vm3, %v378_v40 }
  0xa6   : > { %463 = vst.msk [vmem:[%s810_s29 + $0x50] sm:$0xff] %vm452_vm3, %v398_v41 }
  0xa8   : > { %v417_v42 = vpop.f32.mrf.mxu2 }
  0xa9   : > { %v437_v43 = vpop.f32.mrf.mxu3  ;;  %v418_v44 = vadd.f32 %v805_v21, %v417_v42  ;;  %v379_v46 = vpop.f32.mrf.mxu0 }
  0xaa   : > { %v438_v45 = vadd.f32 %v805_v21, %v437_v43  ;;  %v399_v47 = vpop.f32.mrf.mxu1  ;;  %v380_v48 = vadd.f32 %v805_v21, %v379_v46 }
  0xab   : > { %v400_v49 = vadd.f32 %v805_v21, %v399_v47  ;;  %471 = vst.msk [vmem:[%s810_s29 + $0x90] sm:$0xff] %vm452_vm3, %v418_v44 }
  0xac   : > { %479 = vst.msk [vmem:[%s810_s29 + $0xd0] sm:$0xff] %vm452_vm3, %v438_v45 }
  0xad   : > { %456 = vst.msk [vmem:[%s810_s29 + $0x18] sm:$0xff] %vm452_vm3, %v380_v48 }
  0xae   : > { %464 = vst.msk [vmem:[%s810_s29 + $0x58] sm:$0xff] %vm452_vm3, %v400_v49 }
  0xb0   : > { %v419_v50 = vpop.f32.mrf.mxu2 }
  0xb1   : > { %v439_v51 = vpop.f32.mrf.mxu3  ;;  %v420_v52 = vadd.f32 %v805_v21, %v419_v50  ;;  %v382_v54 = vpop.f32.mrf.mxu0 }
  0xb2   : > { %v440_v53 = vadd.f32 %v805_v21, %v439_v51  ;;  %v402_v55 = vpop.f32.mrf.mxu1  ;;  %v383_v56 = vadd.f32 %v805_v21, %v382_v54 }
  0xb3   : > { %v403_v57 = vadd.f32 %v805_v21, %v402_v55  ;;  %472 = vst.msk [vmem:[%s810_s29 + $0x98] sm:$0xff] %vm452_vm3, %v420_v52 }
  0xb4   : > { %480 = vst.msk [vmem:[%s810_s29 + $0xd8] sm:$0xff] %vm452_vm3, %v440_v53 }
  0xb5   : > { %457 = vst.msk [vmem:[%s810_s29 + $0x20] sm:$0xff] %vm452_vm3, %v383_v56 }
  0xb6   : > { %465 = vst.msk [vmem:[%s810_s29 + $0x60] sm:$0xff] %vm452_vm3, %v403_v57 }
  0xb8   : > { %v422_v58 = vpop.f32.mrf.mxu2 }
  0xb9   : > { %v442_v59 = vpop.f32.mrf.mxu3  ;;  %v423_v60 = vadd.f32 %v805_v21, %v422_v58  ;;  %v384_v62 = vpop.f32.mrf.mxu0 }
  0xba   : > { %v443_v61 = vadd.f32 %v805_v21, %v442_v59  ;;  %v404_v63 = vpop.f32.mrf.mxu1  ;;  %v385_v0 = vadd.f32 %v805_v21, %v384_v62 }
  0xbb   : > { %v405_v1 = vadd.f32 %v805_v21, %v404_v63  ;;  %473 = vst.msk [vmem:[%s810_s29 + $0xa0] sm:$0xff] %vm452_vm3, %v423_v60 }
  0xbc   : > { %481 = vst.msk [vmem:[%s810_s29 + $0xe0] sm:$0xff] %vm452_vm3, %v443_v61 }
  0xbd   : > { %458 = vst.msk [vmem:[%s810_s29 + $0x28] sm:$0xff] %vm452_vm3, %v385_v0 }
  0xbe   : > { %466 = vst.msk [vmem:[%s810_s29 + $0x68] sm:$0xff] %vm452_vm3, %v405_v1 }
  0xc0   : > { %v424_v2 = vpop.f32.mrf.mxu2 }
  0xc1   : > { %v444_v3 = vpop.f32.mrf.mxu3  ;;  %v425_v4 = vadd.f32 %v805_v21, %v424_v2  ;;  %v387_v6 = vpop.f32.mrf.mxu0 }
  0xc2   : > { %v445_v5 = vadd.f32 %v805_v21, %v444_v3  ;;  %v407_v7 = vpop.f32.mrf.mxu1  ;;  %v388_v8 = vadd.f32 %v805_v21, %v387_v6 }
  0xc3   : > { %v408_v9 = vadd.f32 %v805_v21, %v407_v7  ;;  %474 = vst.msk [vmem:[%s810_s29 + $0xa8] sm:$0xff] %vm452_vm3, %v425_v4 }
  0xc4   : > { %482 = vst.msk [vmem:[%s810_s29 + $0xe8] sm:$0xff] %vm452_vm3, %v445_v5 }
  0xc5   : > { %459 = vst.msk [vmem:[%s810_s29 + $0x30] sm:$0xff] %vm452_vm3, %v388_v8 }
  0xc6   : > { %467 = vst.msk [vmem:[%s810_s29 + $0x70] sm:$0xff] %vm452_vm3, %v408_v9 }
  0xc8   : > { %v427_v10 = vpop.f32.mrf.mxu2 }
  0xc9   : > { %v447_v11 = vpop.f32.mrf.mxu3  ;;  %v428_v12 = vadd.f32 %v805_v21, %v427_v10  ;;  %v389_v14 = vpop.f32.mrf.mxu0 }
  0xca   : > { %v448_v13 = vadd.f32 %v805_v21, %v447_v11  ;;  %v409_v15 = vpop.f32.mrf.mxu1  ;;  %v390_v16 = vadd.f32 %v805_v21, %v389_v14 }
  0xcb   : > { %v410_v17 = vadd.f32 %v805_v21, %v409_v15  ;;  %475 = vst.msk [vmem:[%s810_s29 + $0xb0] sm:$0xff] %vm452_vm3, %v428_v12 }
  0xcc   : > { %483 = vst.msk [vmem:[%s810_s29 + $0xf0] sm:$0xff] %vm452_vm3, %v448_v13 }
  0xcd   : > { %460 = vst.msk [vmem:[%s810_s29 + $0x38] sm:$0xff] %vm452_vm3, %v390_v16 }
  0xce   : > { %468 = vst.msk [vmem:[%s810_s29 + $0x78] sm:$0xff] %vm452_vm3, %v410_v17 }
  0xd0   : > { %v429_v18 = vpop.f32.mrf.mxu2 }
  0xd1   : > { %v449_v19 = vpop.f32.mrf.mxu3  ;;  %v430_v20 = vadd.f32 %v805_v21, %v429_v18 }
  0xd2   : > { %v450_v22 = vadd.f32 %v805_v21, %v449_v19 }
  0xd3   : > { %476 = vst.msk [vmem:[%s810_s29 + $0xb8] sm:$0xff] %vm452_vm3, %v430_v20 }
  0xd4   : > { %484 = vst.msk [vmem:[%s810_s29 + $0xf8] sm:$0xff] %vm452_vm3, %v450_v22 }
  0xd5 PF: > { %s14_s12 = sadd.s32 1, %s726_s12  }
  0xd6   : > { %p11_p7 = scmp.ge.s32.totalorder %s14_s12, 4  }
  0xd8   :  { %13 = sbr.rel (!%p11_p7) target bundleno = 1 (0x1), region = 67 }
  0xdd   :  { %507 = vsyncpa [#allocation3], 1 }
  0xde   :  { %509 = vsyncpa [#allocation3 + $0x1], 1 }

// kernel: custom-call.1
= control target key start
LH: loop header
LB: loop body
LE: loop exit
PB: predicated region body
PF: predicated region fallthrough
CT: control target
= control target key end

     0   :  { %s56_s0 = inlined_call_operand.hbm [shape: c64[32,32,8,8], index: 0, kind: input, shape index: {}]   ;;  %s57_s1 = inlined_call_operand.vmem [shape: f32[32,32,8,8], index: 1, kind: output, shape index: {}]  }
   0x1   :  { %s2_s8 = scalar_lea.hbm %s56_s0, 2048 }
   0x2   :  { %3 = vsyncpa [#allocation0], 0  ;;  %s5_s9 = sshll.u32 %s2_s8, 4  ;;  %s7_s12 = sshll.u32 %s57_s1, 4  ;;  %s6_s9 = int_to_ptr.hbm [resolvable:$true] %s5_s9  ;;  %s8_s12 = int_to_ptr.vmem [resolvable:$true] %s7_s12 }
   0x3   :  { %10 = dma.hbm_to_vmem [thread:$0]  %s6_s9, 32768, %s8_s12, [#allocation0] }
   0x4   :  { %38 = dma.done.wait [#allocation0], 32768  }
   0x5   :  { %39 = vsyncadd [#allocation0], 4294934528 }
   0x6   :  { %13 = vsyncpa [#allocation0], 1 }

// kernel: custom-call
= control target key start
LH: loop header
LB: loop body
LE: loop exit
PB: predicated region body
PF: predicated region fallthrough
CT: control target
= control target key end

     0   :  { %2 = vsyncpa [#allocation0], 0  ;;  %s55_s0 = inlined_call_operand.hbm [shape: c64[32,32,8,8], index: 0, kind: input, shape index: {}]   ;;  %s56_s1 = inlined_call_operand.vmem [shape: f32[32,32,8,8], index: 1, kind: output, shape index: {}]  }
   0x1   :  { %s4_s8 = sshll.u32 %s55_s0, 4  ;;  %s6_s11 = sshll.u32 %s56_s1, 4  ;;  %s5_s8 = int_to_ptr.hbm [resolvable:$true] %s4_s8  ;;  %s7_s11 = int_to_ptr.vmem [resolvable:$true] %s6_s11 }
   0x2   :  { %9 = dma.hbm_to_vmem [thread:$0]  %s5_s8, 32768, %s7_s11, [#allocation0] }
   0x3   :  { %37 = dma.done.wait [#allocation0], 32768  }
   0x4   :  { %38 = vsyncadd [#allocation0], 4294934528 }
   0x5   :  { %12 = vsyncpa [#allocation0], 1 }

// kernel: reverse.8
= control target key start
LH: loop header
LB: loop body
LE: loop exit
PB: predicated region body
PF: predicated region fallthrough
CT: control target
= control target key end

     0   :  { %s344_s0 = inlined_call_operand.vmem [shape: f32[2,32,16,7], index: 0, kind: input, shape index: {}]   ;;  %s345_s1 = inlined_call_operand.vmem [shape: f32[2,32,16,7], index: 1, kind: output, shape index: {}]  }
   0x1   :  { %v112_v0 = vld [vmem:[%s344_s0 + $0x60] sm:$0xff]  ;;  %v113_v1 = vld [vmem:[%s344_s0 + $0xd0] sm:$0xff]  ;;  %v138_v14 = vld [vmem:[%s344_s0 + $0x68] sm:$0xff] }
   0x2   :  { %v115_v2 = vld [vmem:[%s344_s0 + $0x50] sm:$0xff]  ;;  %4 = vst [vmem:[%s345_s1] sm:$0xff] %v112_v0  ;;  %v117_v3 = vld [vmem:[%s344_s0 + $0xc0] sm:$0xff]  ;;  %v140_v15 = vld [vmem:[%s344_s0 + $0xd8] sm:$0xff] }
   0x3   :  { %114 = vst [vmem:[%s345_s1 + $0x70] sm:$0xff] %v113_v1  ;;  %v119_v4 = vld [vmem:[%s344_s0 + $0x40] sm:$0xff]  ;;  %v121_v5 = vld [vmem:[%s344_s0 + $0xb0] sm:$0xff]  ;;  %v142_v16 = vld [vmem:[%s344_s0 + $0x58] sm:$0xff] }
   0x4   :  { %116 = vst [vmem:[%s345_s1 + $0x10] sm:$0xff] %v115_v2  ;;  %v123_v6 = vld [vmem:[%s344_s0 + $0x30] sm:$0xff]  ;;  %v125_v7 = vld [vmem:[%s344_s0 + $0xa0] sm:$0xff]  ;;  %v144_v17 = vld [vmem:[%s344_s0 + $0xc8] sm:$0xff] }
   0x5   :  { %118 = vst [vmem:[%s345_s1 + $0x80] sm:$0xff] %v117_v3  ;;  %v127_v8 = vld [vmem:[%s344_s0 + $0x20] sm:$0xff]  ;;  %v129_v9 = vld [vmem:[%s344_s0 + $0x90] sm:$0xff]  ;;  %v146_v18 = vld [vmem:[%s344_s0 + $0x48] sm:$0xff] }
   0x6   :  { %120 = vst [vmem:[%s345_s1 + $0x20] sm:$0xff] %v119_v4  ;;  %v131_v10 = vld [vmem:[%s344_s0 + $0x10] sm:$0xff]  ;;  %v133_v11 = vld [vmem:[%s344_s0 + $0x80] sm:$0xff]  ;;  %v148_v19 = vld [vmem:[%s344_s0 + $0xb8] sm:$0xff] }
   0x7   :  { %122 = vst [vmem:[%s345_s1 + $0x90] sm:$0xff] %v121_v5  ;;  %v49_v12 = vld [vmem:[%s344_s0] sm:$0xff]  ;;  %v136_v13 = vld [vmem:[%s344_s0 + $0x70] sm:$0xff]  ;;  %v150_v20 = vld [vmem:[%s344_s0 + $0x38] sm:$0xff] }
   0x8   :  { %124 = vst [vmem:[%s345_s1 + $0x30] sm:$0xff] %v123_v6  ;;  %v152_v21 = vld [vmem:[%s344_s0 + $0xa8] sm:$0xff]  ;;  %v156_v23 = vld [vmem:[%s344_s0 + $0x98] sm:$0xff] }
   0x9   :  { %126 = vst [vmem:[%s345_s1 + $0xa0] sm:$0xff] %v125_v7  ;;  %v154_v22 = vld [vmem:[%s344_s0 + $0x28] sm:$0xff]  ;;  %v158_v24 = vld [vmem:[%s344_s0 + $0x18] sm:$0xff] }
   0xa   :  { %128 = vst [vmem:[%s345_s1 + $0x40] sm:$0xff] %v127_v8  ;;  %v160_v25 = vld [vmem:[%s344_s0 + $0x88] sm:$0xff]  ;;  %v164_v27 = vld [vmem:[%s344_s0 + $0x78] sm:$0xff] }
   0xb   :  { %130 = vst [vmem:[%s345_s1 + $0xb0] sm:$0xff] %v129_v9  ;;  %v162_v26 = vld [vmem:[%s344_s0 + $0x8] sm:$0xff] }
   0xc   :  { %132 = vst [vmem:[%s345_s1 + $0x50] sm:$0xff] %v131_v10 }
   0xd   :  { %134 = vst [vmem:[%s345_s1 + $0xc0] sm:$0xff] %v133_v11 }
   0xe   :  { %135 = vst [vmem:[%s345_s1 + $0x60] sm:$0xff] %v49_v12 }
   0xf   :  { %137 = vst [vmem:[%s345_s1 + $0xd0] sm:$0xff] %v136_v13 }
  0x10   :  { %139 = vst [vmem:[%s345_s1 + $0x8] sm:$0xff] %v138_v14 }
  0x11   :  { %141 = vst [vmem:[%s345_s1 + $0x78] sm:$0xff] %v140_v15 }
  0x12   :  { %143 = vst [vmem:[%s345_s1 + $0x18] sm:$0xff] %v142_v16 }
  0x13   :  { %145 = vst [vmem:[%s345_s1 + $0x88] sm:$0xff] %v144_v17 }
  0x14   :  { %147 = vst [vmem:[%s345_s1 + $0x28] sm:$0xff] %v146_v18 }
  0x15   :  { %149 = vst [vmem:[%s345_s1 + $0x98] sm:$0xff] %v148_v19 }
  0x16   :  { %151 = vst [vmem:[%s345_s1 + $0x38] sm:$0xff] %v150_v20 }
  0x17   :  { %153 = vst [vmem:[%s345_s1 + $0xa8] sm:$0xff] %v152_v21 }
  0x18   :  { %155 = vst [vmem:[%s345_s1 + $0x48] sm:$0xff] %v154_v22 }
  0x19   :  { %157 = vst [vmem:[%s345_s1 + $0xb8] sm:$0xff] %v156_v23 }
  0x1a   :  { %159 = vst [vmem:[%s345_s1 + $0x58] sm:$0xff] %v158_v24 }
  0x1b   :  { %161 = vst [vmem:[%s345_s1 + $0xc8] sm:$0xff] %v160_v25 }
  0x1c   :  { %163 = vst [vmem:[%s345_s1 + $0x68] sm:$0xff] %v162_v26 }
  0x1d   :  { %165 = vst [vmem:[%s345_s1 + $0xd8] sm:$0xff] %v164_v27 }

// kernel: fno2d_reac_diff_forward.7
= control target key start
LH: loop header
LB: loop body
LE: loop exit
PB: predicated region body
PF: predicated region fallthrough
CT: control target
= control target key end

     0   :  { %vm268_vm0 = vcmask 261120   ;;  %s3083_s1 = inlined_call_operand.vmem [shape: bf16[32,32], index: 1, kind: input, shape index: {}]   ;;  %s3084_s2 = inlined_call_operand.vmem [shape: f32[1,32], index: 2, kind: input, shape index: {}]   ;;  %s3085_s0 = inlined_call_operand.vmem [shape: bf16[512,32], index: 0, kind: input, shape index: {}]   ;;  %s3086_s3 = inlined_call_operand.vmem [shape: f32[512,32], index: 3, kind: input, shape index: {}]   ;;  %s3087_s5 = inlined_call_operand.vmem [shape: f32[1,32], index: 5, kind: input, shape index: {}]   ;;  %s3088_s4 = inlined_call_operand.vmem [shape: f32[1,32], index: 4, kind: input, shape index: {}]   ;;  %s3089_s6 = inlined_call_operand.vmem [shape: f32[512,32], index: 6, kind: output, shape index: {}]  }
   0x1   :  { %v1539_v0 = vld [vmem:[%s3083_s1 + $0x8] sm:$0xff]  ;;  %v1538_v1 = vld [vmem:[%s3083_s1] sm:$0xff]  ;;  %v1508_v7 = vld [vmem:[%s3085_s0 + $0x10] sm:$0xff] }
   0x2   :  { %371 = vmatpush.bf16.msra.mxu0 %v1539_v0  ;;  %1540 = vmatpush.bf16.msra.mxu1 %v1539_v0  ;;  %v1506_v2 = vld [vmem:[%s3085_s0] sm:$0xff]  ;;  %v1507_v4 = vld [vmem:[%s3085_s0 + $0x8] sm:$0xff]  ;;  %v1516_v8 = vld [vmem:[%s3085_s0 + $0x50] sm:$0xff] }
   0x3   :  { %1541 = vmatpush.bf16.msra.mxu2 %v1539_v0  ;;  %1542 = vmatpush.bf16.msra.mxu3 %v1539_v0  ;;  %v1514_v3 = vld [vmem:[%s3085_s0 + $0x40] sm:$0xff]  ;;  %v1515_v5 = vld [vmem:[%s3085_s0 + $0x48] sm:$0xff]  ;;  %v1509_v10 = vld [vmem:[%s3085_s0 + $0x18] sm:$0xff] }
   0x4   :  { %v1522_v6 = vld [vmem:[%s3085_s0 + $0x80] sm:$0xff]  ;;  %v1523_v9 = vld [vmem:[%s3085_s0 + $0x88] sm:$0xff]  ;;  %v1517_v11 = vld [vmem:[%s3085_s0 + $0x58] sm:$0xff] }
   0x5   :  { %v1524_v12 = vld [vmem:[%s3085_s0 + $0x90] sm:$0xff]  ;;  %v1530_v13 = vld [vmem:[%s3085_s0 + $0xc0] sm:$0xff]  ;;  %v1525_v16 = vld [vmem:[%s3085_s0 + $0x98] sm:$0xff] }
   0x6   :  { %372 = vmatpush.bf16.msra.mxu0 %v1538_v1  ;;  %1543 = vmatpush.bf16.msra.mxu1 %v1538_v1  ;;  %v1510_v14 = vld [vmem:[%s3085_s0 + $0x20] sm:$0xff]  ;;  %v1531_v17 = vld [vmem:[%s3085_s0 + $0xc8] sm:$0xff]  ;;  %v1532_v21 = vld [vmem:[%s3085_s0 + $0xd0] sm:$0xff] }
   0x7   :  { %1544 = vmatpush.bf16.msra.mxu2 %v1538_v1  ;;  %1545 = vmatpush.bf16.msra.mxu3 %v1538_v1  ;;  %v1518_v15 = vld [vmem:[%s3085_s0 + $0x60] sm:$0xff]  ;;  %v1511_v18 = vld [vmem:[%s3085_s0 + $0x28] sm:$0xff]  ;;  %v1512_v22 = vld [vmem:[%s3085_s0 + $0x30] sm:$0xff] }
   0x8   :  { %v1519_v19 = vld [vmem:[%s3085_s0 + $0x68] sm:$0xff]  ;;  %v1526_v20 = vld [vmem:[%s3085_s0 + $0xa0] sm:$0xff]  ;;  %v1520_v23 = vld [vmem:[%s3085_s0 + $0x70] sm:$0xff] }
   0x9   :  { %1474 = vmatmul.msk.bf16.vlgmr.msra.gmra.mxu0 %vm268_vm0, %v1506_v2  ;;  %1482 = vmatmul.msk.bf16.vlgmr.msra.gmra.mxu1 %vm268_vm0, %v1514_v3  ;;  %v1527_v24 = vld [vmem:[%s3085_s0 + $0xa8] sm:$0xff]  ;;  %v1533_v25 = vld [vmem:[%s3085_s0 + $0xd8] sm:$0xff]  ;;  %v1528_v28 = vld [vmem:[%s3085_s0 + $0xb0] sm:$0xff] }
   0xa   :  { %1490 = vmatmul.msk.bf16.vlgmr.msra.gmra.mxu2 %vm268_vm0, %v1522_v6  ;;  %1498 = vmatmul.msk.bf16.vlgmr.msra.gmra.mxu3 %vm268_vm0, %v1530_v13  ;;  %v1513_v26 = vld [vmem:[%s3085_s0 + $0x38] sm:$0xff]  ;;  %v1534_v29 = vld [vmem:[%s3085_s0 + $0xe0] sm:$0xff]  ;;  %v1535_v33 = vld [vmem:[%s3085_s0 + $0xe8] sm:$0xff] }
   0xb   :  { %v1521_v27 = vld [vmem:[%s3085_s0 + $0x78] sm:$0xff]  ;;  %v1536_v38 = vld [vmem:[%s3085_s0 + $0xf0] sm:$0xff]  ;;  %v1761_v63 = vld [vmem:[%s3084_s2] ss:$0 sm:$0xff] }
   0xc   :  { %v1529_v32 = vld [vmem:[%s3085_s0 + $0xb8] sm:$0xff]  ;;  %v535_v2 = vld [vmem:[%s3086_s3 + $0x8] sm:$0xff] }
   0xd   :  { %v1537_v44 = vld [vmem:[%s3085_s0 + $0xf8] sm:$0xff] }
   0xe   :  { %v537_v13 = vld [vmem:[%s3086_s3 + $0x18] sm:$0xff] }
  0x19   :  { %1475 = vmatmul.msk.bf16.gmra.mxu0 %vm268_vm0, %v1507_v4  ;;  %1483 = vmatmul.msk.bf16.gmra.mxu1 %vm268_vm0, %v1515_v5  ;;  %v534_v5 = vld [vmem:[%s3086_s3] sm:$0xff] }
  0x1a   :  { %1491 = vmatmul.msk.bf16.gmra.mxu2 %vm268_vm0, %v1523_v9  ;;  %1499 = vmatmul.msk.bf16.gmra.mxu3 %vm268_vm0, %v1531_v17  ;;  %v538_v17 = vld [vmem:[%s3086_s3 + $0x20] sm:$0xff] }
  0x29   :  { %1476 = vmatmul.msk.bf16.gmra.mxu0 %vm268_vm0, %v1508_v7  ;;  %1484 = vmatmul.msk.bf16.gmra.mxu1 %vm268_vm0, %v1516_v8  ;;  %v536_v8 = vld [vmem:[%s3086_s3 + $0x10] sm:$0xff] }
  0x2a   :  { %1492 = vmatmul.msk.bf16.gmra.mxu2 %vm268_vm0, %v1524_v12  ;;  %1500 = vmatmul.msk.bf16.gmra.mxu3 %vm268_vm0, %v1532_v21  ;;  %v539_v21 = vld [vmem:[%s3086_s3 + $0x28] sm:$0xff] }
  0x39   :  { %1477 = vmatmul.msk.bf16.gmra.mxu0 %vm268_vm0, %v1509_v10  ;;  %1485 = vmatmul.msk.bf16.gmra.mxu1 %vm268_vm0, %v1517_v11 }
  0x3a   :  { %1493 = vmatmul.msk.bf16.gmra.mxu2 %vm268_vm0, %v1525_v16  ;;  %1501 = vmatmul.msk.bf16.gmra.mxu3 %vm268_vm0, %v1533_v25 }
  0x49   :  { %1478 = vmatmul.msk.bf16.gmra.mxu0 %vm268_vm0, %v1510_v14  ;;  %1486 = vmatmul.msk.bf16.gmra.mxu1 %vm268_vm0, %v1518_v15 }
  0x4a   :  { %1494 = vmatmul.msk.bf16.gmra.mxu2 %vm268_vm0, %v1526_v20  ;;  %1502 = vmatmul.msk.bf16.gmra.mxu3 %vm268_vm0, %v1534_v29 }
  0x59   :  { %1479 = vmatmul.msk.bf16.gmra.mxu0 %vm268_vm0, %v1511_v18  ;;  %1487 = vmatmul.msk.bf16.gmra.mxu1 %vm268_vm0, %v1519_v19 }
  0x5a   :  { %1495 = vmatmul.msk.bf16.gmra.mxu2 %vm268_vm0, %v1527_v24  ;;  %1503 = vmatmul.msk.bf16.gmra.mxu3 %vm268_vm0, %v1535_v33 }
  0x69   :  { %1480 = vmatmul.msk.bf16.gmra.mxu0 %vm268_vm0, %v1512_v22  ;;  %1488 = vmatmul.msk.bf16.gmra.mxu1 %vm268_vm0, %v1520_v23 }
  0x6a   :  { %1496 = vmatmul.msk.bf16.gmra.mxu2 %vm268_vm0, %v1528_v28  ;;  %1504 = vmatmul.msk.bf16.gmra.mxu3 %vm268_vm0, %v1536_v38 }
  0x79   :  { %1481 = vmatmul.msk.bf16.gmra.mxu0 %vm268_vm0, %v1513_v26  ;;  %1489 = vmatmul.msk.bf16.gmra.mxu1 %vm268_vm0, %v1521_v27  ;;  %v540_v27 = vld [vmem:[%s3086_s3 + $0x30] sm:$0xff] }
  0x7a   :  { %1497 = vmatmul.msk.bf16.gmra.mxu2 %vm268_vm0, %v1529_v32  ;;  %1505 = vmatmul.msk.bf16.gmra.mxu3 %vm268_vm0, %v1537_v44 }
  0x86   :  { %v374_v30 = vpop.f32.mrf.mxu0  ;;  %v1704_v31 = vpop.f32.mrf.mxu1 }
  0x87   :  { %v375_v3 = vadd.f32 %v1761_v63, %v374_v30 }
  0x89   :  { %v1784_v12 = vadd.f32 %v534_v5, %v375_v3 }
  0x8b   :  { %v795_v20 = vmul.f32 %v1784_v12, %v1784_v12  ;;  %v662_v28 = vsel %vm268_vm0, %v1784_v12, 0.0 }
  0x8d   :  { %v1724_v41 = vpop.f32.mrf.mxu2  ;;  %v1742_v53 = vpop.f32.mrf.mxu3 }
  0x8e   :  { %v376_v34 = vpop.f32.mrf.mxu0  ;;  %v1714_v35 = vpop.f32.mrf.mxu1 }
  0x8f   :  { %v377_v0 = vadd.f32 %v1761_v63, %v376_v34 }
  0x91   :  { %v1776_v7 = vadd.f32 %v535_v2, %v377_v0 }
  0x93   :  { %v796_v16 = vmul.f32 %v1776_v7, %v1776_v7  ;;  %v663_v24 = vsel %vm268_vm0, %v1776_v7, 0.0 }
  0x95   :  { %v1731_v45 = vpop.f32.mrf.mxu2  ;;  %v1748_v57 = vpop.f32.mrf.mxu3  ;;  %v860_v29 = vsel %vm268_vm0, %v796_v16, 0.0 }
  0x96   :  { %v379_v36 = vpop.f32.mrf.mxu0  ;;  %v1716_v37 = vpop.f32.mrf.mxu1 }
  0x97   :  { %v380_v6 = vadd.f32 %v1761_v63, %v379_v36 }
  0x99   :  { %v1789_v14 = vadd.f32 %v536_v8, %v380_v6  ;;  %v542_v8 = vld [vmem:[%s3086_s3 + $0x40] sm:$0xff] }
  0x9b   :  { %v797_v25 = vmul.f32 %v1789_v14, %v1789_v14  ;;  %v665_v33 = vsel %vm268_vm0, %v1789_v14, 0.0 }
  0x9d   :  { %v1736_v48 = vpop.f32.mrf.mxu2  ;;  %v1754_v61 = vpop.f32.mrf.mxu3  ;;  %v862_v0 = vsel %vm268_vm0, %v797_v25, 0.0 }
  0x9e   :  { %v381_v39 = vpop.f32.mrf.mxu0  ;;  %v1722_v40 = vpop.f32.mrf.mxu1 }
  0x9f   :  { %v382_v11 = vadd.f32 %v1761_v63, %v381_v39  ;;  %v859_v39 = vsel %vm268_vm0, %v795_v20, 0.0 }
  0xa0   :  { %v861_v5 = vadd.f32 %v860_v29, %v859_v39 }
  0xa1   :  { %v1797_v18 = vadd.f32 %v537_v13, %v382_v11 }
  0xa3   :  { %v798_v34 = vmul.f32 %v1797_v18, %v1797_v18  ;;  %v667_v2 = vsel %vm268_vm0, %v1797_v18, 0.0 }
  0xa5   :  { %v1740_v52 = vpop.f32.mrf.mxu2  ;;  %v1781_v10 = vpop.f32.mrf.mxu3  ;;  %v864_v13 = vsel %vm268_vm0, %v798_v34, 0.0 }
  0xa6   :  { %v384_v42 = vpop.f32.mrf.mxu0  ;;  %v1726_v43 = vpop.f32.mrf.mxu1 }
  0xa7   :  { %v385_v15 = vadd.f32 %v1761_v63, %v384_v42  ;;  %v664_v42 = vadd.f32 %v663_v24, %v662_v28 }
  0xa9   :  { %v1812_v26 = vadd.f32 %v538_v17, %v385_v15  ;;  %v666_v6 = vadd.f32 %v665_v33, %v664_v42  ;;  %v544_v33 = vld [vmem:[%s3086_s3 + $0x50] sm:$0xff] }
  0xab   :  { %v799_v3 = vmul.f32 %v1812_v26, %v1812_v26  ;;  %v669_v15 = vsel %vm268_vm0, %v1812_v26, 0.0  ;;  %v668_v20 = vadd.f32 %v667_v2, %v666_v6 }
  0xad   :  { %v1746_v56 = vpop.f32.mrf.mxu2  ;;  %v670_v28 = vadd.f32 %v669_v15, %v668_v20 }
  0xae   :  { %v386_v46 = vpop.f32.mrf.mxu0  ;;  %v1734_v47 = vpop.f32.mrf.mxu1 }
  0xaf   :  { %v387_v19 = vadd.f32 %v1761_v63, %v386_v46  ;;  %v541_v46 = vld [vmem:[%s3086_s3 + $0x38] sm:$0xff] }
  0xb1   :  { %v1826_v36 = vadd.f32 %v539_v21, %v387_v19  ;;  %v863_v19 = vadd.f32 %v862_v0, %v861_v5 }
  0xb3   :  { %v800_v16 = vmul.f32 %v1826_v36, %v1826_v36 }
  0xb5   :  { %v1752_v60 = vpop.f32.mrf.mxu2  ;;  %v868_v39 = vsel %vm268_vm0, %v800_v16, 0.0 }
  0xb6   :  { %v389_v49 = vpop.f32.mrf.mxu0  ;;  %v1738_v50 = vpop.f32.mrf.mxu1 }
  0xb7   :  { %v390_v22 = vadd.f32 %v1761_v63, %v389_v49  ;;  %v1835_v49 = vpop.f32.mrf.mxu3 }
  0xb9   :  { %v1830_v44 = vadd.f32 %v540_v27, %v390_v22  ;;  %v671_v22 = vsel %vm268_vm0, %v1826_v36, 0.0  ;;  %v865_v27 = vadd.f32 %v864_v13, %v863_v19 }
  0xba   :  { %v672_v2 = vadd.f32 %v671_v22, %v670_v28 }
  0xbb   :  { %v801_v21 = vmul.f32 %v1830_v44, %v1830_v44  ;;  %v673_v42 = vsel %vm268_vm0, %v1830_v44, 0.0 }
  0xbc   :  { %v674_v15 = vadd.f32 %v673_v42, %v672_v2  ;;  %v548_v2 = vld [vmem:[%s3086_s3 + $0x70] sm:$0xff] }
  0xbd   :  { %v1770_v4 = vpop.f32.mrf.mxu2 }
  0xbe   :  { %v391_v51 = vpop.f32.mrf.mxu0  ;;  %v1744_v55 = vpop.f32.mrf.mxu1 }
  0xbf   :  { %v392_v38 = vadd.f32 %v1761_v63, %v391_v51  ;;  %v1897_v19 = vpop.f32.mrf.mxu3 }
  0xc1   :  { %v1852_v17 = vadd.f32 %v541_v46, %v392_v38 }
  0xc3   :  { %v802_v46 = vmul.f32 %v1852_v17, %v1852_v17  ;;  %v675_v6 = vsel %vm268_vm0, %v1852_v17, 0.0 }
  0xc5   :  { %v1820_v32 = vpop.f32.mrf.mxu2  ;;  %v872_v20 = vsel %vm268_vm0, %v802_v46, 0.0 }
  0xc6   :  { %v394_v54 = vpop.f32.mrf.mxu0  ;;  %v1750_v59 = vpop.f32.mrf.mxu1 }
  0xc7   :  { %v395_v51 = vadd.f32 %v1761_v63, %v394_v54  ;;  %v543_v54 = vld [vmem:[%s3086_s3 + $0x48] sm:$0xff] }
  0xc9   :  { %v1862_v24 = vadd.f32 %v542_v8, %v395_v51  ;;  %v545_v51 = vld [vmem:[%s3086_s3 + $0x58] sm:$0xff] }
  0xcb   :  { %v803_v8 = vmul.f32 %v1862_v24, %v1862_v24 }
  0xcd   :  { %v1883_v5 = vpop.f32.mrf.mxu2  ;;  %v874_v28 = vsel %vm268_vm0, %v803_v8, 0.0 }
  0xce   :  { %v396_v58 = vpop.f32.mrf.mxu0  ;;  %v1764_v1 = vpop.f32.mrf.mxu1 }
  0xcf   :  { %v397_v11 = vadd.f32 %v1761_v63, %v396_v58  ;;  %v866_v58 = vsel %vm268_vm0, %v799_v3, 0.0  ;;  %v870_v3 = vsel %vm268_vm0, %v801_v21, 0.0  ;;  %v677_v21 = vsel %vm268_vm0, %v1862_v24, 0.0 }
  0xd0   :  { %v867_v0 = vadd.f32 %v866_v58, %v865_v27  ;;  %v547_v27 = vld [vmem:[%s3086_s3 + $0x68] sm:$0xff] }
  0xd1   :  { %v1866_v29 = vadd.f32 %v543_v54, %v397_v11  ;;  %v546_v54 = vld [vmem:[%s3086_s3 + $0x60] sm:$0xff] }
  0xd2   :  { %v869_v13 = vadd.f32 %v868_v39, %v867_v0 }
  0xd3   :  { %v804_v16 = vmul.f32 %v1866_v29, %v1866_v29 }
  0xd4   :  { %v871_v22 = vadd.f32 %v870_v3, %v869_v13 }
  0xd6   :  { %v1756_v62 = vpop.f32.mrf.mxu0  ;;  %v1806_v23 = vpop.f32.mrf.mxu1  ;;  %v873_v46 = vadd.f32 %v872_v20, %v871_v22 }
  0xd7   :  { %v400_v25 = vadd.f32 %v1761_v63, %v1756_v62 }
  0xd9   :  { %v1889_v11 = vadd.f32 %v544_v33, %v400_v25  ;;  %v676_v25 = vadd.f32 %v675_v6, %v674_v15  ;;  %v679_v33 = vsel %vm268_vm0, %v1866_v29, 0.0 }
  0xdb   :  { %v805_v39 = vmul.f32 %v1889_v11, %v1889_v11  ;;  %v681_v3 = vsel %vm268_vm0, %v1889_v11, 0.0 }
  0xde   :  { %v401_v9 = vpop.f32.mrf.mxu0  ;;  %v1871_v38 = vpop.f32.mrf.mxu1 }
  0xdf   :  { %v402_v62 = vadd.f32 %v1761_v63, %v401_v9 }
  0xe1   :  { %v1902_v58 = vadd.f32 %v545_v51, %v402_v62  ;;  %v678_v62 = vadd.f32 %v677_v21, %v676_v25 }
  0xe3   :  { %v806_v51 = vmul.f32 %v1902_v58, %v1902_v58  ;;  %v680_v13 = vadd.f32 %v679_v33, %v678_v62  ;;  %v417_v62 = vadd.f32 %v1761_v63, %v1714_v35 }
  0xe5   :  { %v682_v25 = vadd.f32 %v681_v3, %v680_v13  ;;  %v880_v33 = vsel %vm268_vm0, %v806_v51, 0.0 }
  0xe6   :  { %v404_v30 = vpop.f32.mrf.mxu0  ;;  %v1926_v15 = vpop.f32.mrf.mxu1 }
  0xe7   :  { %v405_v9 = vadd.f32 %v1761_v63, %v404_v30 }
  0xe9   :  { %v1913_v42 = vadd.f32 %v546_v54, %v405_v9  ;;  %v875_v9 = vadd.f32 %v874_v28, %v873_v46  ;;  %v683_v54 = vsel %vm268_vm0, %v1902_v58, 0.0  ;;  %v550_v28 = vld [vmem:[%s3086_s3 + $0x80] sm:$0xff] }
  0xeb   :  { %3113 = vst [vmem:[#allocation2_spill] sm:$0xff] %v1913_v42  ;;  %v807_v20 = vmul.f32 %v1913_v42, %v1913_v42 }
  0xed   :  { %v882_v3 = vsel %vm268_vm0, %v807_v20, 0.0 }
  0xee   :  { %v406_v34 = vpop.f32.mrf.mxu0 }
  0xef   :  { %v407_v30 = vadd.f32 %v1761_v63, %v406_v34  ;;  %v876_v34 = vsel %vm268_vm0, %v804_v16, 0.0  ;;  %v878_v16 = vsel %vm268_vm0, %v805_v39, 0.0  ;;  %v685_v39 = vsel %vm268_vm0, %v1913_v42, 0.0 }
  0xf0   :  { %v877_v22 = vadd.f32 %v876_v34, %v875_v9  ;;  %v684_v34 = vadd.f32 %v683_v54, %v682_v25  ;;  %v549_v54 = vld [vmem:[%s3086_s3 + $0x78] sm:$0xff] }
  0xf1   :  { %v1923_v6 = vadd.f32 %v547_v27, %v407_v30  ;;  %v415_v30 = vadd.f32 %v1761_v63, %v1704_v31  ;;  %v1937_v27 = vpop.f32.mrf.mxu2 }
  0xf2   :  { %v879_v31 = vadd.f32 %v878_v16, %v877_v22  ;;  %v686_v35 = vadd.f32 %v685_v39, %v684_v34  ;;  %v420_v22 = vadd.f32 %v1761_v63, %v1716_v37  ;;  %v422_v39 = vadd.f32 %v1761_v63, %v1722_v40 }
  0xf3   :  { %3114 = vst [vmem:[#allocation3_spill] sm:$0xff] %v1923_v6  ;;  %v808_v46 = vmul.f32 %v1923_v6, %v1923_v6  ;;  %v687_v51 = vsel %vm268_vm0, %v1923_v6, 0.0  ;;  %v1959_v9 = vadd.f32 %v550_v28, %v415_v30  ;;  %v552_v30 = vld [vmem:[%s3086_s3 + $0x90] sm:$0xff]  ;;  %v425_v40 = vadd.f32 %v1761_v63, %v1726_v43 }
  0xf4   :  { %v881_v13 = vadd.f32 %v880_v33, %v879_v31  ;;  %v688_v33 = vadd.f32 %v687_v51, %v686_v35 }
  0xf5   :  { %v884_v20 = vsel %vm268_vm0, %v808_v46, 0.0  ;;  %v811_v46 = vmul.f32 %v1959_v9, %v1959_v9  ;;  %v693_v43 = vsel %vm268_vm0, %v1959_v9, 0.0 }
  0xf6   :  { %v409_v0 = vpop.f32.mrf.mxu0  ;;  %v883_v28 = vadd.f32 %v882_v3, %v881_v13  ;;  %v1987_v3 = vadd.f32 %v552_v30, %v420_v22  ;;  %v554_v13 = vld [vmem:[%s3086_s3 + $0xa0] sm:$0xff] }
  0xf7   :  { %v410_v8 = vadd.f32 %v1761_v63, %v409_v0  ;;  %v1949_v0 = vpop.f32.mrf.mxu3 }
  0xf8   :  { %v885_v34 = vadd.f32 %v884_v20, %v883_v28  ;;  %v890_v28 = vsel %vm268_vm0, %v811_v46, 0.0 }
  0xf9   :  { %v1933_v21 = vadd.f32 %v548_v2, %v410_v8  ;;  %v551_v2 = vld [vmem:[%s3086_s3 + $0x88] sm:$0xff]  ;;  %v2000_v22 = vpop.f32.mrf.mxu2 }
  0xfa   :  { %v1970_v42 = vadd.f32 %v551_v2, %v417_v62  ;;  %v553_v62 = vld [vmem:[%s3086_s3 + $0x98] sm:$0xff] }
  0xfb   :  { %v809_v8 = vmul.f32 %v1933_v21, %v1933_v21  ;;  %v689_v25 = vsel %vm268_vm0, %v1933_v21, 0.0  ;;  %v2004_v20 = vadd.f32 %v553_v62, %v422_v39  ;;  %v813_v39 = vmul.f32 %v1987_v3, %v1987_v3 }
  0xfc   :  { %3115 = vst [vmem:[#allocation4_spill] sm:$0xff] %v1970_v42  ;;  %v690_v2 = vadd.f32 %v689_v25, %v688_v33  ;;  %v427_v25 = vadd.f32 %v1761_v63, %v1734_v47  ;;  %v555_v33 = vld [vmem:[%s3086_s3 + $0xa8] sm:$0xff]  ;;  %v2019_v62 = vadd.f32 %v554_v13, %v425_v40  ;;  %v430_v47 = vadd.f32 %v1761_v63, %v1738_v50  ;;  %v557_v50 = vld [vmem:[%s3086_s3 + $0xb8] sm:$0xff] }
  0xfd   :  { %v886_v37 = vsel %vm268_vm0, %v809_v8, 0.0  ;;  %v812_v8 = vmul.f32 %v1970_v42, %v1970_v42  ;;  %3116 = vst [vmem:[#allocation5_spill] sm:$0xff] %v2004_v20  ;;  %v432_v40 = vadd.f32 %v1761_v63, %v1744_v55  ;;  %v558_v55 = vld [vmem:[%s3086_s3 + $0xc0] sm:$0xff] }
  0xfe   :  { %v411_v16 = vpop.f32.mrf.mxu0  ;;  %v887_v35 = vadd.f32 %v886_v37, %v885_v34  ;;  %3117 = vst [vmem:[#allocation6_spill] sm:$0xff] %v2019_v62 }
  0xff   :  { %v412_v6 = vadd.f32 %v1761_v63, %v411_v16  ;;  %v1985_v16 = vpop.f32.mrf.mxu1  ;;  %v892_v46 = vsel %vm268_vm0, %v812_v8, 0.0  ;;  %v435_v8 = vadd.f32 %v1761_v63, %v1750_v59 }
 0x101   :  { %v1978_v31 = vadd.f32 %v549_v54, %v412_v6 }
 0x103   :  { %v691_v6 = vsel %vm268_vm0, %v1978_v31, 0.0  ;;  %v810_v51 = vmul.f32 %v1978_v31, %v1978_v31 }
 0x104   :  { %v692_v54 = vadd.f32 %v691_v6, %v690_v2  ;;  %v2013_v2 = vpop.f32.mrf.mxu3  ;;  %v695_v6 = vsel %vm268_vm0, %v1970_v42, 0.0  ;;  %v2031_v42 = vadd.f32 %v555_v33, %v427_v25  ;;  %v815_v25 = vmul.f32 %v2019_v62, %v2019_v62 }
 0x105   :  { %v888_v30 = vsel %vm268_vm0, %v810_v51, 0.0  ;;  %v556_v51 = vld [vmem:[%s3086_s3 + $0xb0] sm:$0xff] }
 0x106   :  { %v694_v37 = vadd.f32 %v693_v43, %v692_v54  ;;  %v889_v34 = vadd.f32 %v888_v30, %v887_v35  ;;  %v697_v43 = vsel %vm268_vm0, %v1987_v3, 0.0  ;;  %v814_v30 = vmul.f32 %v2004_v20, %v2004_v20  ;;  %3118 = vst [vmem:[#allocation7_spill] sm:$0xff] %v2031_v42 }
 0x107   :  { %v2045_v33 = vadd.f32 %v556_v51, %v430_v47  ;;  %v2057_v47 = vadd.f32 %v557_v50, %v432_v40  ;;  %v559_v51 = vld [vmem:[%s3086_s3 + $0xc8] sm:$0xff]  ;;  %v440_v40 = vadd.f32 %v1761_v63, %v1806_v23  ;;  %v442_v23 = vadd.f32 %v1761_v63, %v1871_v38 }
 0x108   :  { %v696_v35 = vadd.f32 %v695_v6, %v694_v37  ;;  %v891_v54 = vadd.f32 %v890_v28, %v889_v34  ;;  %v894_v37 = vsel %vm268_vm0, %v813_v39, 0.0  ;;  %v699_v34 = vsel %vm268_vm0, %v2004_v20, 0.0 }
 0x109   :  { %3119 = vst [vmem:[#allocation8_spill] sm:$0xff] %v2045_v33  ;;  %v437_v6 = vadd.f32 %v1761_v63, %v1764_v1  ;;  %v896_v39 = vsel %vm268_vm0, %v814_v30, 0.0  ;;  %v2062_v20 = vadd.f32 %v558_v55, %v435_v8  ;;  %v898_v30 = vsel %vm268_vm0, %v815_v25, 0.0  ;;  %v560_v8 = vld [vmem:[%s3086_s3 + $0xd0] sm:$0xff] }
 0x10a   :  { %v698_v13 = vadd.f32 %v697_v43, %v696_v35  ;;  %v893_v28 = vadd.f32 %v892_v46, %v891_v54  ;;  %v449_v46 = vpop.f32.mrf.mxu1  ;;  %v701_v54 = vsel %vm268_vm0, %v2019_v62, 0.0  ;;  %v816_v43 = vmul.f32 %v2031_v42, %v2031_v42  ;;  %3120 = vst [vmem:[#allocation9_spill] sm:$0xff] %v2057_v47 }
 0x10b   :  { %v2073_v50 = vadd.f32 %v559_v51, %v437_v6  ;;  %v819_v6 = vmul.f32 %v2062_v20, %v2062_v20  ;;  %v561_v51 = vld [vmem:[%s3086_s3 + $0xd8] sm:$0xff] }
 0x10c   :  { %v700_v59 = vadd.f32 %v699_v34, %v698_v13  ;;  %v895_v35 = vadd.f32 %v894_v37, %v893_v28  ;;  %v2064_v28 = vpop.f32.mrf.mxu2  ;;  %v703_v37 = vsel %vm268_vm0, %v2031_v42, 0.0  ;;  %v817_v34 = vmul.f32 %v2045_v33, %v2045_v33  ;;  %v562_v42 = vld [vmem:[%s3086_s3 + $0xe0] sm:$0xff] }
 0x10d   :  { %v900_v25 = vsel %vm268_vm0, %v816_v43, 0.0  ;;  %v820_v38 = vmul.f32 %v2073_v50, %v2073_v50 }
 0x10e   :  { %v702_v1 = vadd.f32 %v701_v54, %v700_v59  ;;  %v897_v13 = vadd.f32 %v896_v39, %v895_v35  ;;  %v2078_v35 = vpop.f32.mrf.mxu3  ;;  %v705_v39 = vsel %vm268_vm0, %v2045_v33, 0.0  ;;  %v818_v54 = vmul.f32 %v2057_v47, %v2057_v47 }
 0x10f   :  { %v902_v43 = vsel %vm268_vm0, %v817_v34, 0.0  ;;  %v445_v33 = vadd.f32 %v1761_v63, %v1926_v15  ;;  %v709_v34 = vsel %vm268_vm0, %v2062_v20, 0.0  ;;  %v906_v15 = vsel %vm268_vm0, %v819_v6, 0.0 }
 0x110   :  { %v704_v55 = vadd.f32 %v703_v37, %v702_v1  ;;  %v899_v59 = vadd.f32 %v898_v30, %v897_v13  ;;  %v707_v30 = vsel %vm268_vm0, %v2057_v47, 0.0  ;;  %v2095_v37 = vadd.f32 %v560_v8, %v440_v40  ;;  %v563_v47 = vld [vmem:[%s3086_s3 + $0xe8] sm:$0xff] }
 0x111   :  { %v447_v40 = vadd.f32 %v1761_v63, %v1985_v16  ;;  %v908_v16 = vsel %vm268_vm0, %v820_v38, 0.0 }
 0x112   :  { %v901_v1 = vadd.f32 %v900_v25, %v899_v59  ;;  %v706_v13 = vadd.f32 %v705_v39, %v704_v55  ;;  %3121 = vst [vmem:[#allocation10_spill] sm:$0xff] %v2095_v37  ;;  %v904_v55 = vsel %vm268_vm0, %v818_v54, 0.0  ;;  %v2107_v25 = vadd.f32 %v561_v51, %v442_v23 }
 0x113   :  { %v711_v54 = vsel %vm268_vm0, %v2073_v50, 0.0  ;;  %v2119_v23 = vadd.f32 %v562_v42, %v445_v33  ;;  %v450_v51 = vadd.f32 %v1761_v63, %v449_v46  ;;  %v2132_v42 = vadd.f32 %v563_v47, %v447_v40 }
 0x114   :  { %v708_v62 = vadd.f32 %v707_v30, %v706_v13  ;;  %v903_v59 = vadd.f32 %v902_v43, %v901_v1  ;;  %3122 = vst [vmem:[#allocation11_spill] sm:$0xff] %v2107_v25  ;;  %v451_v13 = vpop.f32.mrf.mxu1  ;;  %v821_v1 = vmul.f32 %v2095_v37, %v2095_v37  ;;  %v564_v43 = vld [vmem:[%s3086_s3 + $0xf0] sm:$0xff]  ;;  %v2126_v30 = vpop.f32.mrf.mxu2  ;;  %v455_v46 = vadd.f32 %v1761_v63, %v1724_v41 }
 0x115   :  { %v452_v33 = vadd.f32 %v1761_v63, %v451_v13  ;;  %v715_v40 = vsel %vm268_vm0, %v2107_v25, 0.0  ;;  %v823_v41 = vmul.f32 %v2119_v23, %v2119_v23  ;;  %v2150_v13 = vadd.f32 %v564_v43, %v450_v51 }
 0x116   :  { %v710_v8 = vadd.f32 %v709_v34, %v708_v62  ;;  %v905_v39 = vadd.f32 %v904_v55, %v903_v59  ;;  %v713_v59 = vsel %vm268_vm0, %v2095_v37, 0.0  ;;  %v822_v55 = vmul.f32 %v2107_v25, %v2107_v25 }
 0x117   :  { %v910_v47 = vsel %vm268_vm0, %v821_v1, 0.0  ;;  %v717_v1 = vsel %vm268_vm0, %v2119_v23, 0.0  ;;  %v824_v25 = vmul.f32 %v2132_v42, %v2132_v42 }
 0x118   :  { %v712_v6 = vadd.f32 %v711_v54, %v710_v8  ;;  %v907_v62 = vadd.f32 %v906_v15, %v905_v39  ;;  %v565_v15 = vld [vmem:[%s3086_s3 + $0xf8] sm:$0xff]  ;;  %v2140_v8 = vpop.f32.mrf.mxu3  ;;  %v566_v39 = vld [vmem:[%s3086_s3 + $0x100] sm:$0xff]  ;;  %v457_v54 = vadd.f32 %v1761_v63, %v1731_v45 }
 0x119   :  { %v2162_v37 = vadd.f32 %v565_v15, %v452_v33  ;;  %v2164_v51 = vadd.f32 %v566_v39, %v455_v46  ;;  %v568_v33 = vld [vmem:[%s3086_s3 + $0x110] sm:$0xff]  ;;  %v462_v39 = vadd.f32 %v1761_v63, %v1740_v52 }
 0x11a   :  { %v714_v38 = vadd.f32 %v713_v59, %v712_v6  ;;  %v909_v34 = vadd.f32 %v908_v16, %v907_v62  ;;  %v567_v62 = vld [vmem:[%s3086_s3 + $0x108] sm:$0xff]  ;;  %v912_v59 = vsel %vm268_vm0, %v822_v55, 0.0  ;;  %v719_v55 = vsel %vm268_vm0, %v2132_v42, 0.0 }
 0x11b   :  { %3123 = vst [vmem:[#allocation12_spill] sm:$0xff] %v2162_v37 }
 0x11c   :  { %v716_v16 = vadd.f32 %v715_v40, %v714_v38  ;;  %v911_v6 = vadd.f32 %v910_v47, %v909_v34  ;;  %3124 = vst [vmem:[#allocation13_spill] sm:$0xff] %v2164_v51  ;;  %v460_v38 = vadd.f32 %v1761_v63, %v1736_v48  ;;  %v914_v34 = vsel %vm268_vm0, %v823_v41, 0.0 }
 0x11d   :  { %v825_v47 = vmul.f32 %v2150_v13, %v2150_v13  ;;  %v2173_v40 = vadd.f32 %v567_v62, %v457_v54  ;;  %v916_v48 = vsel %vm268_vm0, %v824_v25, 0.0  ;;  %v721_v41 = vsel %vm268_vm0, %v2150_v13, 0.0 }
 0x11e   :  { %v718_v43 = vadd.f32 %v717_v1, %v716_v16  ;;  %v913_v45 = vadd.f32 %v912_v59, %v911_v6  ;;  %v826_v16 = vmul.f32 %v2162_v37, %v2162_v37  ;;  %v827_v54 = vmul.f32 %v2164_v51, %v2164_v51  ;;  %v569_v6 = vld [vmem:[%s3086_s3 + $0x118] sm:$0xff]  ;;  %v2190_v1 = vpop.f32.mrf.mxu2 }
 0x11f   :  { %v2192_v52 = vadd.f32 %v568_v33, %v460_v38  ;;  %v465_v25 = vadd.f32 %v1761_v63, %v1746_v56  ;;  %v725_v38 = vsel %vm268_vm0, %v2164_v51, 0.0  ;;  %v2208_v56 = vadd.f32 %v569_v6, %v462_v39 }
 0x120   :  { %v915_v46 = vadd.f32 %v914_v34, %v913_v45  ;;  %v720_v15 = vadd.f32 %v719_v55, %v718_v43  ;;  %v918_v43 = vsel %vm268_vm0, %v825_v47, 0.0  ;;  %v723_v45 = vsel %vm268_vm0, %v2162_v37, 0.0  ;;  %v570_v55 = vld [vmem:[%s3086_s3 + $0x120] sm:$0xff] }
 0x121   :  { %v828_v34 = vmul.f32 %v2173_v40, %v2173_v40  ;;  %v467_v47 = vadd.f32 %v1761_v63, %v1752_v60  ;;  %v920_v33 = vsel %vm268_vm0, %v826_v16, 0.0  ;;  %v727_v39 = vsel %vm268_vm0, %v2173_v40, 0.0  ;;  %v572_v16 = vld [vmem:[%s3086_s3 + $0x130] sm:$0xff] }
 0x122   :  { %v917_v62 = vadd.f32 %v916_v48, %v915_v46  ;;  %v722_v59 = vadd.f32 %v721_v41, %v720_v15  ;;  %v2204_v48 = vpop.f32.mrf.mxu3  ;;  %v571_v41 = vld [vmem:[%s3086_s3 + $0x128] sm:$0xff]  ;;  %v829_v6 = vmul.f32 %v2192_v52, %v2192_v52  ;;  %v2223_v60 = vadd.f32 %v570_v55, %v465_v25 }
 0x123   :  { %v924_v51 = vsel %vm268_vm0, %v828_v34, 0.0  ;;  %v472_v25 = vadd.f32 %v1761_v63, %v1820_v32  ;;  %v574_v32 = vld [vmem:[%s3086_s3 + $0x140] sm:$0xff] }
 0x124   :  { %v919_v46 = vadd.f32 %v918_v43, %v917_v62  ;;  %v724_v15 = vadd.f32 %v723_v45, %v722_v59  ;;  %v470_v62 = vadd.f32 %v1761_v63, %v1770_v4  ;;  %v922_v45 = vsel %vm268_vm0, %v827_v54, 0.0  ;;  %3125 = vst [vmem:[#allocation14_spill] sm:$0xff] %v2223_v60 }
 0x125   :  { %v830_v54 = vmul.f32 %v2208_v56, %v2208_v56 }
 0x126   :  { %v726_v59 = vadd.f32 %v725_v38, %v724_v15  ;;  %v921_v43 = vadd.f32 %v920_v33, %v919_v46  ;;  %v729_v46 = vsel %vm268_vm0, %v2192_v52, 0.0  ;;  %v2233_v15 = vadd.f32 %v571_v41, %v467_v47  ;;  %v573_v38 = vld [vmem:[%s3086_s3 + $0x138] sm:$0xff] }
 0x127   :  { %v2237_v55 = vadd.f32 %v572_v16, %v470_v62  ;;  %v831_v47 = vmul.f32 %v2223_v60, %v2223_v60  ;;  %v475_v41 = vadd.f32 %v1761_v63, %v1883_v5  ;;  %v477_v62 = vadd.f32 %v1761_v63, %v1937_v27  ;;  %v575_v5 = vld [vmem:[%s3086_s3 + $0x148] sm:$0xff] }
 0x128   :  { %v728_v37 = vadd.f32 %v727_v39, %v726_v59  ;;  %v923_v4 = vadd.f32 %v922_v45, %v921_v43  ;;  %v926_v59 = vsel %vm268_vm0, %v829_v6, 0.0  ;;  %v731_v43 = vsel %vm268_vm0, %v2208_v56, 0.0  ;;  %v489_v45 = vpop.f32.mrf.mxu2 }
 0x129   :  { %v928_v39 = vsel %vm268_vm0, %v830_v54, 0.0  ;;  %v733_v6 = vsel %vm268_vm0, %v2223_v60, 0.0  ;;  %v832_v16 = vmul.f32 %v2233_v15, %v2233_v15  ;;  %v833_v27 = vmul.f32 %v2237_v55, %v2237_v55  ;;  %v576_v60 = vld [vmem:[%s3086_s3 + $0x150] sm:$0xff] }
 0x12a   :  { %v730_v34 = vadd.f32 %v729_v46, %v728_v37  ;;  %v925_v33 = vadd.f32 %v924_v51, %v923_v4  ;;  %v2259_v4 = vadd.f32 %v573_v38, %v472_v25  ;;  %v930_v54 = vsel %vm268_vm0, %v831_v47, 0.0 }
 0x12b   :  { %v480_v25 = vadd.f32 %v1761_v63, %v2000_v22  ;;  %v2275_v38 = vadd.f32 %v575_v5, %v477_v62  ;;  %v737_v47 = vsel %vm268_vm0, %v2237_v55, 0.0  ;;  %v934_v22 = vsel %vm268_vm0, %v833_v27, 0.0  ;;  %v577_v62 = vld [vmem:[%s3086_s3 + $0x158] sm:$0xff] }
 0x12c   :  { %v732_v37 = vadd.f32 %v731_v43, %v730_v34  ;;  %v927_v51 = vadd.f32 %v926_v59, %v925_v33  ;;  %v2266_v33 = vpop.f32.mrf.mxu3  ;;  %v735_v59 = vsel %vm268_vm0, %v2233_v15, 0.0  ;;  %v2271_v43 = vadd.f32 %v574_v32, %v475_v41 }
 0x12d   :  { %3127 = vst [vmem:[#allocation16_spill] sm:$0xff] %v2275_v38  ;;  %v834_v41 = vmul.f32 %v2259_v4, %v2259_v4  ;;  %v482_v32 = vadd.f32 %v1761_v63, %v2064_v28  ;;  %v836_v28 = vmul.f32 %v2275_v38, %v2275_v38 }
 0x12e   :  { %v734_v46 = vadd.f32 %v733_v6, %v732_v37  ;;  %v929_v34 = vadd.f32 %v928_v39, %v927_v51  ;;  %3126 = vst [vmem:[#allocation15_spill] sm:$0xff] %v2271_v43  ;;  %v932_v39 = vsel %vm268_vm0, %v832_v16, 0.0  ;;  %v739_v16 = vsel %vm268_vm0, %v2259_v4, 0.0 }
 0x130   :  { %v931_v37 = vadd.f32 %v930_v54, %v929_v34  ;;  %v736_v51 = vadd.f32 %v735_v59, %v734_v46  ;;  %v835_v46 = vmul.f32 %v2271_v43, %v2271_v43  ;;  %v2295_v34 = vadd.f32 %v576_v60, %v480_v25 }
 0x131   :  { %v485_v54 = vadd.f32 %v1761_v63, %v2126_v30  ;;  %v487_v60 = vadd.f32 %v1761_v63, %v2190_v1  ;;  %v743_v30 = vsel %vm268_vm0, %v2275_v38, 0.0  ;;  %v940_v1 = vsel %vm268_vm0, %v836_v28, 0.0 }
 0x132   :  { %v738_v6 = vadd.f32 %v737_v47, %v736_v51  ;;  %v933_v5 = vadd.f32 %v932_v39, %v931_v37  ;;  %v578_v37 = vld [vmem:[%s3086_s3 + $0x160] sm:$0xff]  ;;  %v936_v51 = vsel %vm268_vm0, %v834_v41, 0.0  ;;  %v741_v39 = vsel %vm268_vm0, %v2271_v43, 0.0 }
 0x133   :  { %v2307_v47 = vadd.f32 %v577_v62, %v482_v32  ;;  %v938_v41 = vsel %vm268_vm0, %v835_v46, 0.0  ;;  %v2319_v32 = vadd.f32 %v578_v37, %v485_v54  ;;  %v490_v62 = vadd.f32 %v1761_v63, %v489_v45 }
 0x134   :  { %v740_v27 = vadd.f32 %v739_v16, %v738_v6  ;;  %v935_v59 = vadd.f32 %v934_v22, %v933_v5  ;;  %v579_v22 = vld [vmem:[%s3086_s3 + $0x168] sm:$0xff]  ;;  %v491_v5 = vpop.f32.mrf.mxu2  ;;  %v837_v16 = vmul.f32 %v2295_v34, %v2295_v34  ;;  %v745_v46 = vsel %vm268_vm0, %v2295_v34, 0.0 }
 0x135   :  { %3128 = vst [vmem:[#allocation17_spill] sm:$0xff] %v2307_v47  ;;  %v2332_v54 = vadd.f32 %v579_v22, %v487_v60  ;;  %v492_v45 = vadd.f32 %v1761_v63, %v491_v5  ;;  %v495_v28 = vadd.f32 %v1761_v63, %v1742_v53  ;;  %v747_v60 = vsel %vm268_vm0, %v2307_v47, 0.0 }
 0x136   :  { %v742_v25 = vadd.f32 %v741_v39, %v740_v27  ;;  %v937_v6 = vadd.f32 %v936_v51, %v935_v59  ;;  %v580_v27 = vld [vmem:[%s3086_s3 + $0x170] sm:$0xff]  ;;  %v2326_v59 = vpop.f32.mrf.mxu3  ;;  %v838_v51 = vmul.f32 %v2307_v47, %v2307_v47  ;;  %v839_v22 = vmul.f32 %v2319_v32, %v2319_v32 }
 0x137   :  { %v2348_v5 = vadd.f32 %v580_v27, %v490_v62  ;;  %v497_v53 = vadd.f32 %v1761_v63, %v1748_v57 }
 0x138   :  { %v744_v43 = vadd.f32 %v743_v30, %v742_v25  ;;  %v939_v38 = vadd.f32 %v938_v41, %v937_v6  ;;  %v581_v30 = vld [vmem:[%s3086_s3 + $0x178] sm:$0xff]  ;;  %v582_v25 = vld [vmem:[%s3086_s3 + $0x180] sm:$0xff]  ;;  %v942_v6 = vsel %vm268_vm0, %v837_v16, 0.0  ;;  %v583_v41 = vld [vmem:[%s3086_s3 + $0x188] sm:$0xff]  ;;  %v749_v16 = vsel %vm268_vm0, %v2319_v32, 0.0 }
 0x139   :  { %3129 = vst [vmem:[#allocation18_spill] sm:$0xff] %v2348_v5  ;;  %v2360_v47 = vadd.f32 %v581_v30, %v492_v45  ;;  %v2362_v62 = vadd.f32 %v582_v25, %v495_v28  ;;  %v584_v45 = vld [vmem:[%s3086_s3 + $0x190] sm:$0xff]  ;;  %v502_v25 = vadd.f32 %v1761_v63, %v1781_v10 }
 0x13a   :  { %v746_v37 = vadd.f32 %v745_v46, %v744_v43  ;;  %v941_v39 = vadd.f32 %v940_v1, %v939_v38  ;;  %v944_v1 = vsel %vm268_vm0, %v838_v51, 0.0  ;;  %v840_v46 = vmul.f32 %v2332_v54, %v2332_v54 }
 0x13b   :  { %3130 = vst [vmem:[#allocation19_spill] sm:$0xff] %v2360_v47  ;;  %v751_v51 = vsel %vm268_vm0, %v2332_v54, 0.0 }
 0x13c   :  { %v748_v43 = vadd.f32 %v747_v60, %v746_v37  ;;  %v943_v38 = vadd.f32 %v942_v6, %v941_v39  ;;  %v500_v37 = vadd.f32 %v1761_v63, %v1754_v61  ;;  %v946_v39 = vsel %vm268_vm0, %v839_v22, 0.0 }
 0x13d   :  { %v841_v6 = vmul.f32 %v2348_v5, %v2348_v5  ;;  %v2371_v60 = vadd.f32 %v583_v41, %v497_v53  ;;  %v948_v61 = vsel %vm268_vm0, %v840_v46, 0.0  ;;  %v753_v22 = vsel %vm268_vm0, %v2348_v5, 0.0 }
 0x13e   :  { %v945_v27 = vadd.f32 %v944_v1, %v943_v38  ;;  %v750_v57 = vadd.f32 %v749_v16, %v748_v43  ;;  %v842_v43 = vmul.f32 %v2360_v47, %v2360_v47  ;;  %v843_v53 = vmul.f32 %v2362_v62, %v2362_v62  ;;  %v585_v38 = vld [vmem:[%s3086_s3 + $0x198] sm:$0xff]  ;;  %v2388_v16 = vpop.f32.mrf.mxu3 }
 0x13f   :  { %v2390_v10 = vadd.f32 %v584_v45, %v500_v37  ;;  %v505_v46 = vadd.f32 %v1761_v63, %v1835_v49  ;;  %v757_v37 = vsel %vm268_vm0, %v2362_v62, 0.0  ;;  %v2404_v45 = vadd.f32 %v585_v38, %v502_v25 }
 0x140   :  { %v947_v28 = vadd.f32 %v946_v39, %v945_v27  ;;  %v752_v30 = vadd.f32 %v751_v51, %v750_v57  ;;  %v950_v27 = vsel %vm268_vm0, %v841_v6, 0.0  ;;  %v755_v57 = vsel %vm268_vm0, %v2360_v47, 0.0  ;;  %v586_v51 = vld [vmem:[%s3086_s3 + $0x1a0] sm:$0xff] }
 0x141   :  { %v844_v39 = vmul.f32 %v2371_v60, %v2371_v60  ;;  %v507_v49 = vadd.f32 %v1761_v63, %v1897_v19  ;;  %v952_v6 = vsel %vm268_vm0, %v842_v43, 0.0  ;;  %v845_v25 = vmul.f32 %v2390_v10, %v2390_v10 }
 0x142   :  { %v949_v41 = vadd.f32 %v948_v61, %v947_v28  ;;  %v754_v1 = vadd.f32 %v753_v22, %v752_v30  ;;  %v954_v61 = vsel %vm268_vm0, %v843_v53, 0.0  ;;  %v587_v22 = vld [vmem:[%s3086_s3 + $0x1a8] sm:$0xff]  ;;  %v2417_v38 = vadd.f32 %v586_v51, %v505_v46  ;;  %v588_v53 = vld [vmem:[%s3086_s3 + $0x1b0] sm:$0xff] }
 0x143   :  { %v510_v19 = vadd.f32 %v1761_v63, %v1949_v0  ;;  %v956_v43 = vsel %vm268_vm0, %v844_v39, 0.0  ;;  %v512_v46 = vadd.f32 %v1761_v63, %v2013_v2  ;;  %v589_v0 = vld [vmem:[%s3086_s3 + $0x1b8] sm:$0xff]  ;;  %v515_v39 = vadd.f32 %v1761_v63, %v2078_v35  ;;  %v590_v2 = vld [vmem:[%s3086_s3 + $0x1c0] sm:$0xff] }
 0x144   :  { %v951_v28 = vadd.f32 %v950_v27, %v949_v41  ;;  %v756_v30 = vadd.f32 %v755_v57, %v754_v1  ;;  %v759_v41 = vsel %vm268_vm0, %v2371_v60, 0.0  ;;  %v761_v57 = vsel %vm268_vm0, %v2390_v10, 0.0 }
 0x145   :  { %v958_v51 = vsel %vm268_vm0, %v845_v25, 0.0 }
 0x146   :  { %v758_v47 = vadd.f32 %v757_v37, %v756_v30  ;;  %v953_v5 = vadd.f32 %v952_v6, %v951_v28  ;;  %v846_v28 = vmul.f32 %v2404_v45, %v2404_v45  ;;  %v2429_v30 = vadd.f32 %v587_v22, %v507_v49 }
 0x147   :  { %v763_v37 = vsel %vm268_vm0, %v2404_v45, 0.0  ;;  %v847_v49 = vmul.f32 %v2417_v38, %v2417_v38  ;;  %v2443_v6 = vadd.f32 %v588_v53, %v510_v19  ;;  %v2455_v19 = vadd.f32 %v589_v0, %v512_v46  ;;  %v591_v53 = vld [vmem:[%s3086_s3 + $0x1c8] sm:$0xff] }
 0x148   :  { %v760_v1 = vadd.f32 %v759_v41, %v758_v47  ;;  %v955_v27 = vadd.f32 %v954_v61, %v953_v5  ;;  %v517_v61 = vadd.f32 %v1761_v63, %v2140_v8  ;;  %v529_v41 = vpop.f32.mrf.mxu3  ;;  %v960_v25 = vsel %vm268_vm0, %v846_v28, 0.0 }
 0x149   :  { %v767_v28 = vsel %vm268_vm0, %v2429_v30, 0.0  ;;  %v520_v46 = vadd.f32 %v1761_v63, %v2204_v48 }
 0x14a   :  { %v762_v47 = vadd.f32 %v761_v57, %v760_v1  ;;  %v957_v5 = vadd.f32 %v956_v43, %v955_v27  ;;  %v765_v43 = vsel %vm268_vm0, %v2417_v38, 0.0  ;;  %v848_v1 = vmul.f32 %v2429_v30, %v2429_v30 }
 0x14b   :  { %v2460_v27 = vadd.f32 %v590_v2, %v515_v39  ;;  %v2469_v0 = vadd.f32 %v591_v53, %v517_v61  ;;  %v592_v39 = vld [vmem:[%s3086_s3 + $0x1d0] sm:$0xff]  ;;  %v593_v61 = vld [vmem:[%s3086_s3 + $0x1d8] sm:$0xff]  ;;  %v771_v53 = vsel %vm268_vm0, %v2455_v19, 0.0 }
 0x14c   :  { %v764_v35 = vadd.f32 %v763_v37, %v762_v47  ;;  %v959_v22 = vadd.f32 %v958_v51, %v957_v5  ;;  %v962_v47 = vsel %vm268_vm0, %v847_v49, 0.0  ;;  %v849_v5 = vmul.f32 %v2443_v6, %v2443_v6 }
 0x14d   :  { %v964_v2 = vsel %vm268_vm0, %v848_v1, 0.0  ;;  %v769_v49 = vsel %vm268_vm0, %v2443_v6, 0.0  ;;  %v851_v48 = vmul.f32 %v2460_v27, %v2460_v27 }
 0x14e   :  { %v766_v8 = vadd.f32 %v765_v43, %v764_v35  ;;  %v961_v57 = vadd.f32 %v960_v25, %v959_v22  ;;  %v850_v35 = vmul.f32 %v2455_v19, %v2455_v19  ;;  %v522_v22 = vadd.f32 %v1761_v63, %v2266_v33 }
 0x14f   :  { %v966_v1 = vsel %vm268_vm0, %v849_v5, 0.0  ;;  %v852_v33 = vmul.f32 %v2469_v0, %v2469_v0  ;;  %v773_v5 = vsel %vm268_vm0, %v2460_v27, 0.0 }
 0x150   :  { %v963_v51 = vadd.f32 %v962_v47, %v961_v57  ;;  %v768_v37 = vadd.f32 %v767_v28, %v766_v8  ;;  %v2489_v8 = vadd.f32 %v592_v39, %v520_v46  ;;  %v525_v57 = vadd.f32 %v1761_v63, %v2326_v59 }
 0x151   :  { %v527_v46 = vadd.f32 %v1761_v63, %v2388_v16  ;;  %v970_v59 = vsel %vm268_vm0, %v851_v48, 0.0  ;;  %v972_v16 = vsel %vm268_vm0, %v852_v33, 0.0 }
 0x152   :  { %v770_v25 = vadd.f32 %v769_v49, %v768_v37  ;;  %v965_v43 = vadd.f32 %v964_v2, %v963_v51  ;;  %3131 = vst [vmem:[#allocation20_spill] sm:$0xff] %v2489_v8  ;;  %v594_v37 = vld [vmem:[%s3086_s3 + $0x1e0] sm:$0xff]  ;;  %v968_v51 = vsel %vm268_vm0, %v850_v35, 0.0  ;;  %v2501_v2 = vadd.f32 %v593_v61, %v522_v22 }
 0x153   :  { %v775_v35 = vsel %vm268_vm0, %v2469_v0, 0.0  ;;  %v2513_v22 = vadd.f32 %v594_v37, %v525_v57  ;;  %v530_v61 = vadd.f32 %v1761_v63, %v529_v41  ;;  %v1550_v63 = vld [vmem:[%s3084_s2] ss:$0 sm:$0xff]  ;;  %v597_v37 = vld [vmem:[%s3086_s3 + $0x1f8] sm:$0xff] }
 0x154   :  { %v772_v47 = vadd.f32 %v771_v53, %v770_v25  ;;  %v967_v28 = vadd.f32 %v966_v1, %v965_v43  ;;  %3132 = vst [vmem:[#allocation21_spill] sm:$0xff] %v2501_v2  ;;  %v595_v25 = vld [vmem:[%s3086_s3 + $0x1e8] sm:$0xff]  ;;  %v531_v43 = vpop.f32.mrf.mxu3  ;;  %v853_v1 = vmul.f32 %v2489_v8, %v2489_v8 }
 0x155   :  { %3133 = vst [vmem:[#allocation22_spill] sm:$0xff] %v2513_v22  ;;  %v532_v41 = vadd.f32 %v1550_v63, %v531_v43 }
 0x156   :  { %v774_v39 = vadd.f32 %v773_v5, %v772_v47  ;;  %v969_v49 = vadd.f32 %v968_v51, %v967_v28  ;;  %v596_v47 = vld [vmem:[%s3086_s3 + $0x1f0] sm:$0xff]  ;;  %v777_v28 = vsel %vm268_vm0, %v2489_v8, 0.0  ;;  %v854_v51 = vmul.f32 %v2501_v2, %v2501_v2 }
 0x157   :  { %v2524_v5 = vadd.f32 %v595_v25, %v527_v46  ;;  %v855_v46 = vmul.f32 %v2513_v22, %v2513_v22 }
 0x158   :  { %v776_v48 = vadd.f32 %v775_v35, %v774_v39  ;;  %v971_v53 = vadd.f32 %v970_v59, %v969_v49  ;;  %v974_v59 = vsel %vm268_vm0, %v853_v1, 0.0  ;;  %v779_v39 = vsel %vm268_vm0, %v2501_v2, 0.0 }
 0x159   :  { %3134 = vst [vmem:[#allocation23_spill] sm:$0xff] %v2524_v5  ;;  %v2537_v49 = vadd.f32 %v596_v47, %v530_v61  ;;  %v976_v43 = vsel %vm268_vm0, %v854_v51, 0.0  ;;  %v978_v63 = vsel %vm268_vm0, %v855_v46, 0.0  ;;  %v783_v2 = vsel %vm268_vm0, %v2524_v5, 0.0 }
 0x15a   :  { %v778_v57 = vadd.f32 %v777_v28, %v776_v48  ;;  %v973_v33 = vadd.f32 %v972_v16, %v971_v53  ;;  %v781_v16 = vsel %vm268_vm0, %v2513_v22, 0.0  ;;  %v856_v48 = vmul.f32 %v2524_v5, %v2524_v5 }
 0x15b   :  { %3135 = vst [vmem:[#allocation24_spill] sm:$0xff] %v2537_v49  ;;  %v661_v53 = vadd.f32 %v597_v37, %v532_v41  ;;  %v857_v61 = vmul.f32 %v2537_v49, %v2537_v49 }
 0x15c   :  { %v780_v25 = vadd.f32 %v779_v39, %v778_v57  ;;  %v975_v35 = vadd.f32 %v974_v59, %v973_v33  ;;  %v980_v51 = vsel %vm268_vm0, %v856_v48, 0.0  ;;  %v785_v33 = vsel %vm268_vm0, %v2537_v49, 0.0 }
 0x15d   :  { %v858_v59 = vmul.f32 %v661_v53, %v661_v53  ;;  %v982_v37 = vsel %vm268_vm0, %v857_v61, 0.0  ;;  %v787_v46 = vsel %vm268_vm0, %v661_v53, 0.0 }
 0x15e   :  { %v977_v1 = vadd.f32 %v976_v43, %v975_v35  ;;  %v782_v28 = vadd.f32 %v781_v16, %v780_v25 }
 0x15f   :  { %v984_v43 = vsel %vm268_vm0, %v858_v59, 0.0 }
 0x160   :  { %v979_v47 = vadd.f32 %v978_v63, %v977_v1  ;;  %v784_v57 = vadd.f32 %v783_v2, %v782_v28 }
 0x162   :  { %v981_v39 = vadd.f32 %v980_v51, %v979_v47  ;;  %v786_v41 = vadd.f32 %v785_v33, %v784_v57 }
 0x164   :  { %v983_v25 = vadd.f32 %v982_v37, %v981_v39  ;;  %v788_v35 = vadd.f32 %v787_v46, %v786_v41 }
 0x166   :  { %v789_v16 = vrot.slane %v788_v35, 4  ;;  %v985_v5 = vadd.f32 %v984_v43, %v983_v25 }
 0x168   :  { %v790_v1 = vadd.f32 %v789_v16, %v788_v35  ;;  %v986_v2 = vrot.slane %v985_v5, 4 }
 0x16a   :  { %v791_v28 = vrot.slane %v790_v1, 2  ;;  %v987_v48 = vadd.f32 %v986_v2, %v985_v5 }
 0x16c   :  { %v792_v63 = vadd.f32 %v791_v28, %v790_v1  ;;  %v988_v22 = vrot.slane %v987_v48, 2 }
 0x16e   :  { %v793_v49 = vrot.slane %v792_v63, 1  ;;  %v989_v8 = vadd.f32 %v988_v22, %v987_v48 }
 0x170   :  { %v794_v47 = vadd.f32 %v793_v49, %v792_v63  ;;  %v990_v57 = vrot.slane %v989_v8, 1 }
 0x172   :  { %v991_v51 = vadd.f32 %v990_v57, %v989_v8  ;;  %v2555_v61 = vmul.f32 0.001953125, %v794_v47  ;;  %v1071_v8 = vld [vmem:[%s3088_s4] sm:$0x1] }
 0x174   :  { %v993_v33 = vmul.f32 0.001953125, %v991_v51  ;;  %v994_v39 = vmul.f32 %v2555_v61, %v2555_v61  ;;  %v1070_v1 = vsub.f32 %v661_v53, %v2555_v61  ;;  %v1007_v28 = vsub.f32 %v1784_v12, %v2555_v61  ;;  %v2582_v12 = vld [vmem:[%s3087_s5] ss:$0 sm:$0xff] }
 0x175   :  { %v1008_v48 = vsub.f32 %v1776_v7, %v2555_v61  ;;  %v1009_v63 = vsub.f32 %v1789_v14, %v2555_v61  ;;  %v1010_v47 = vsub.f32 %v1797_v18, %v2555_v61  ;;  %v1011_v57 = vsub.f32 %v1812_v26, %v2555_v61 }
 0x176   :  { %v995_v59 = vsub.f32 %v993_v33, %v994_v39  ;;  %v1012_v7 = vsub.f32 %v1826_v36, %v2555_v61  ;;  %v1013_v18 = vsub.f32 %v1830_v44, %v2555_v61  ;;  %v1014_v39 = vsub.f32 %v1852_v17, %v2555_v61 }
 0x177   :  { %v1016_v44 = vsub.f32 %v1866_v29, %v2555_v61 }
 0x178   :  { %v996_v41 = vadd.f32 1e-05, %v995_v59  ;;  %v1015_v59 = vsub.f32 %v1862_v24, %v2555_v61 }
 0x17a   :  { %1548 = vrsqrt.f32 %v996_v41  ;;  %vm1003_vm2 = vweird.f32 %v996_v41 }
 0x180   :  { %v1549_v37 = vpop.eup %1548 }
 0x181   :  { %v998_v46 = vmul.f32 %v1549_v37, %v996_v41  ;;  %vm1004_vm1 = vweird.f32 %v1549_v37 }
 0x182   :  { %vm1005_vm3 = vmor %vm1003_vm2, %vm1004_vm1 }
 0x183   :  { %v999_v25 = vmul.f32 %v1549_v37, %v998_v46 }
 0x185   :  { %v1000_v5 = vmul.f32 0.5, %v999_v25 }
 0x187   :  { %v1001_v35 = vsub.f32 1.5, %v1000_v5  ;;  %v1017_v5 = vsub.f32 %v1889_v11, %v2555_v61 }
 0x189   :  { %v1002_v43 = vmul.f32 %v1549_v37, %v1001_v35  ;;  %v1018_v35 = vsub.f32 %v1902_v58, %v2555_v61 }
 0x18b   :  { %v1006_v22 = vsel %vm1005_vm3, %v1549_v37, %v1002_v43  ;;  %v3136_v43 = vld [vmem:[#allocation2_spill] sm:$0xff] }
 0x18c   :  { %v1072_v49 = vmul.f32 %v1071_v8, %v1006_v22  ;;  %v1019_v22 = vsub.f32 %v3136_v43, %v2555_v61 }
 0x18e   :  { %v2562_v16 = vperm.slane %v1072_v49, 0 }
 0x190   :  { %v1137_v2 = vmul.f32 %v2562_v16, %v1070_v1  ;;  %v1074_v51 = vmul.f32 %v2562_v16, %v1007_v28  ;;  %v1075_v53 = vmul.f32 %v2562_v16, %v1008_v48  ;;  %v1076_v33 = vmul.f32 %v2562_v16, %v1009_v63 }
 0x191   :  { %v1077_v14 = vmul.f32 %v2562_v16, %v1010_v47  ;;  %v1078_v26 = vmul.f32 %v2562_v16, %v1011_v57  ;;  %v1079_v41 = vmul.f32 %v2562_v16, %v1012_v7  ;;  %v1080_v37 = vmul.f32 %v2562_v16, %v1013_v18  ;;  %v3137_v57 = vld [vmem:[#allocation3_spill] sm:$0xff] }
 0x192   :  { %v1142_v46 = vadd.f32 %v2582_v12, %v1074_v51  ;;  %v1143_v36 = vadd.f32 %v2582_v12, %v1075_v53  ;;  %v1144_v25 = vadd.f32 %v2582_v12, %v1076_v33  ;;  %v1081_v17 = vmul.f32 %v2562_v16, %v1014_v39 }
 0x193   :  { %v1145_v24 = vadd.f32 %v2582_v12, %v1077_v14  ;;  %v1082_v8 = vmul.f32 %v2562_v16, %v1015_v59  ;;  %v1146_v49 = vadd.f32 %v2582_v12, %v1078_v26  ;;  %v1083_v1 = vmul.f32 %v2562_v16, %v1016_v44 }
 0x194   :  { %v1084_v29 = vmul.f32 %v2562_v16, %v1017_v5  ;;  %v1147_v11 = vadd.f32 %v2582_v12, %v1079_v41  ;;  %v2615_v28 = vadd.f32 %v2582_v12, %v1137_v2  ;;  %v1148_v48 = vadd.f32 %v2582_v12, %v1080_v37 }
 0x195   :  { %v1206_v63 = vmax.f32 %v1142_v46, 0.0  ;;  %v1207_v58 = vmax.f32 %v1143_v36, 0.0  ;;  %v1208_v47 = vmax.f32 %v1144_v25, 0.0  ;;  %v1020_v51 = vsub.f32 %v3137_v57, %v2555_v61  ;;  %v3141_v57 = vld [vmem:[#allocation7_spill] sm:$0xff] }
 0x196   :  { %v1085_v53 = vmul.f32 %v2562_v16, %v1018_v35  ;;  %v1149_v33 = vadd.f32 %v2582_v12, %v1081_v17  ;;  %v1209_v7 = vmax.f32 %v1145_v24, 0.0  ;;  %v1021_v14 = vsub.f32 %v1933_v21, %v2555_v61 }
 0x197   :  { %v1086_v18 = vmul.f32 %v2562_v16, %v1019_v22  ;;  %v1150_v2 = vadd.f32 %v2582_v12, %v1082_v8  ;;  %v1210_v26 = vmax.f32 %v1146_v49, 0.0  ;;  %1270 = vst.msk [vmem:[%s3089_s6] sm:$0xff] %vm268_vm0, %v1206_v63  ;;  %v1022_v39 = vsub.f32 %v1978_v31, %v2555_v61  ;;  %v3138_v31 = vld [vmem:[#allocation4_spill] sm:$0xff]  ;;  %v3139_v8 = vld [vmem:[#allocation5_spill] sm:$0xff] }
 0x198   :  { %v1087_v59 = vmul.f32 %v2562_v16, %v1020_v51  ;;  %v1151_v41 = vadd.f32 %v2582_v12, %v1083_v1  ;;  %v1211_v37 = vmax.f32 %v1147_v11, 0.0  ;;  %1271 = vst.msk [vmem:[%s3089_s6 + $0x8] sm:$0xff] %vm268_vm0, %v1207_v58  ;;  %v1023_v21 = vsub.f32 %v1959_v9, %v2555_v61 }
 0x199   :  { %v1088_v46 = vmul.f32 %v2562_v16, %v1021_v14  ;;  %v1152_v36 = vadd.f32 %v2582_v12, %v1084_v29  ;;  %v1212_v25 = vmax.f32 %v1148_v48, 0.0  ;;  %1272 = vst.msk [vmem:[%s3089_s6 + $0x10] sm:$0xff] %vm268_vm0, %v1208_v47  ;;  %v1024_v44 = vsub.f32 %v3138_v31, %v2555_v61  ;;  %v3142_v14 = vld [vmem:[#allocation8_spill] sm:$0xff] }
 0x19a   :  { %v1089_v5 = vmul.f32 %v2562_v16, %v1022_v39  ;;  %v1153_v17 = vadd.f32 %v2582_v12, %v1085_v53  ;;  %v1213_v24 = vmax.f32 %v1149_v33, 0.0  ;;  %1273 = vst.msk [vmem:[%s3089_s6 + $0x18] sm:$0xff] %vm268_vm0, %v1209_v7  ;;  %v1025_v9 = vsub.f32 %v1987_v3, %v2555_v61  ;;  %v3140_v3 = vld [vmem:[#allocation6_spill] sm:$0xff] }
 0x19b   :  { %v1090_v35 = vmul.f32 %v2562_v16, %v1023_v21  ;;  %v1154_v43 = vadd.f32 %v2582_v12, %v1086_v18  ;;  %v1214_v22 = vmax.f32 %v1150_v2, 0.0  ;;  %1274 = vst.msk [vmem:[%s3089_s6 + $0x20] sm:$0xff] %vm268_vm0, %v1210_v26  ;;  %v1026_v49 = vsub.f32 %v3139_v8, %v2555_v61 }
 0x19c   :  { %v1091_v1 = vmul.f32 %v2562_v16, %v1024_v44  ;;  %v1155_v29 = vadd.f32 %v2582_v12, %v1087_v59  ;;  %v1215_v11 = vmax.f32 %v1151_v41, 0.0  ;;  %1275 = vst.msk [vmem:[%s3089_s6 + $0x28] sm:$0xff] %vm268_vm0, %v1211_v37  ;;  %v1027_v48 = vsub.f32 %v3140_v3, %v2555_v61  ;;  %v3143_v59 = vld [vmem:[#allocation9_spill] sm:$0xff] }
 0x19d   :  { %v1092_v63 = vmul.f32 %v2562_v16, %v1025_v9  ;;  %v1156_v58 = vadd.f32 %v2582_v12, %v1088_v46  ;;  %v1216_v47 = vmax.f32 %v1152_v36, 0.0  ;;  %1276 = vst.msk [vmem:[%s3089_s6 + $0x30] sm:$0xff] %vm268_vm0, %v1212_v25  ;;  %v1028_v51 = vsub.f32 %v3141_v57, %v2555_v61 }
 0x19e   :  { %v1093_v53 = vmul.f32 %v2562_v16, %v1026_v49  ;;  %v1157_v33 = vadd.f32 %v2582_v12, %v1089_v5  ;;  %v1217_v7 = vmax.f32 %v1153_v17, 0.0  ;;  %1277 = vst.msk [vmem:[%s3089_s6 + $0x38] sm:$0xff] %vm268_vm0, %v1213_v24  ;;  %v1029_v18 = vsub.f32 %v3142_v14, %v2555_v61 }
 0x19f   :  { %v1094_v2 = vmul.f32 %v2562_v16, %v1027_v48  ;;  %v1158_v26 = vadd.f32 %v2582_v12, %v1090_v35  ;;  %v1218_v39 = vmax.f32 %v1154_v43, 0.0  ;;  %1278 = vst.msk [vmem:[%s3089_s6 + $0x40] sm:$0xff] %vm268_vm0, %v1214_v22  ;;  %v1030_v41 = vsub.f32 %v3143_v59, %v2555_v61 }
 0x1a0   :  { %v1095_v37 = vmul.f32 %v2562_v16, %v1028_v51  ;;  %v1159_v21 = vadd.f32 %v2582_v12, %v1091_v1  ;;  %v1219_v46 = vmax.f32 %v1155_v29, 0.0  ;;  %1279 = vst.msk [vmem:[%s3089_s6 + $0x48] sm:$0xff] %vm268_vm0, %v1215_v11  ;;  %v1031_v36 = vsub.f32 %v2062_v20, %v2555_v61  ;;  %v3144_v20 = vld [vmem:[#allocation10_spill] sm:$0xff] }
 0x1a1   :  { %v1096_v25 = vmul.f32 %v2562_v16, %v1029_v18  ;;  %v1160_v31 = vadd.f32 %v2582_v12, %v1092_v63  ;;  %v1220_v44 = vmax.f32 %v1156_v58, 0.0  ;;  %1280 = vst.msk [vmem:[%s3089_s6 + $0x50] sm:$0xff] %vm268_vm0, %v1216_v47  ;;  %v1032_v5 = vsub.f32 %v2073_v50, %v2555_v61  ;;  %v3145_v50 = vld [vmem:[#allocation11_spill] sm:$0xff] }
 0x1a2   :  { %v1097_v17 = vmul.f32 %v2562_v16, %v1030_v41  ;;  %v1161_v24 = vadd.f32 %v2582_v12, %v1093_v53  ;;  %v1221_v9 = vmax.f32 %v1157_v33, 0.0  ;;  %1281 = vst.msk [vmem:[%s3089_s6 + $0x58] sm:$0xff] %vm268_vm0, %v1217_v7  ;;  %v1033_v35 = vsub.f32 %v3144_v20, %v2555_v61 }
 0x1a3   :  { %v1098_v43 = vmul.f32 %v2562_v16, %v1031_v36  ;;  %v1162_v22 = vadd.f32 %v2582_v12, %v1094_v2  ;;  %v1222_v8 = vmax.f32 %v1158_v26, 0.0  ;;  %1282 = vst.msk [vmem:[%s3089_s6 + $0x60] sm:$0xff] %vm268_vm0, %v1218_v39  ;;  %v1034_v49 = vsub.f32 %v3145_v50, %v2555_v61 }
 0x1a4   :  { %v1099_v1 = vmul.f32 %v2562_v16, %v1032_v5  ;;  %v1163_v29 = vadd.f32 %v2582_v12, %v1095_v37  ;;  %v1223_v11 = vmax.f32 %v1159_v21, 0.0  ;;  %1283 = vst.msk [vmem:[%s3089_s6 + $0x68] sm:$0xff] %vm268_vm0, %v1219_v46  ;;  %v1035_v3 = vsub.f32 %v2119_v23, %v2555_v61 }
 0x1a5   :  { %v1100_v48 = vmul.f32 %v2562_v16, %v1033_v35  ;;  %v1164_v63 = vadd.f32 %v2582_v12, %v1096_v25  ;;  %v1224_v58 = vmax.f32 %v1160_v31, 0.0  ;;  %1284 = vst.msk [vmem:[%s3089_s6 + $0x70] sm:$0xff] %vm268_vm0, %v1220_v44  ;;  %v1036_v47 = vsub.f32 %v2132_v42, %v2555_v61  ;;  %v3146_v42 = vld [vmem:[#allocation12_spill] sm:$0xff] }
 0x1a6   :  { %v1101_v57 = vmul.f32 %v2562_v16, %v1034_v49  ;;  %v1165_v51 = vadd.f32 %v2582_v12, %v1097_v17  ;;  %v1225_v53 = vmax.f32 %v1161_v24, 0.0  ;;  %1285 = vst.msk [vmem:[%s3089_s6 + $0x78] sm:$0xff] %vm268_vm0, %v1221_v9  ;;  %v1037_v23 = vsub.f32 %v2150_v13, %v2555_v61  ;;  %v3147_v13 = vld [vmem:[#allocation13_spill] sm:$0xff] }
 0x1a7   :  { %v1102_v33 = vmul.f32 %v2562_v16, %v1035_v3  ;;  %v1166_v7 = vadd.f32 %v2582_v12, %v1098_v43  ;;  %v1226_v14 = vmax.f32 %v1162_v22, 0.0  ;;  %1286 = vst.msk [vmem:[%s3089_s6 + $0x80] sm:$0xff] %vm268_vm0, %v1222_v8  ;;  %v1038_v18 = vsub.f32 %v3146_v42, %v2555_v61 }
 0x1a8   :  { %v1103_v2 = vmul.f32 %v2562_v16, %v1036_v47  ;;  %v1167_v26 = vadd.f32 %v2582_v12, %v1099_v1  ;;  %v1227_v39 = vmax.f32 %v1163_v29, 0.0  ;;  %1287 = vst.msk [vmem:[%s3089_s6 + $0x88] sm:$0xff] %vm268_vm0, %v1223_v11  ;;  %v1039_v59 = vsub.f32 %v3147_v13, %v2555_v61 }
 0x1a9   :  { %v1104_v41 = vmul.f32 %v2562_v16, %v1037_v23  ;;  %v1168_v37 = vadd.f32 %v2582_v12, %v1100_v48  ;;  %v1228_v21 = vmax.f32 %v1164_v63, 0.0  ;;  %1288 = vst.msk [vmem:[%s3089_s6 + $0x90] sm:$0xff] %vm268_vm0, %v1224_v58  ;;  %v1040_v46 = vsub.f32 %v2173_v40, %v2555_v61 }
 0x1aa   :  { %v1105_v36 = vmul.f32 %v2562_v16, %v1038_v18  ;;  %v1169_v25 = vadd.f32 %v2582_v12, %v1101_v57  ;;  %v1229_v31 = vmax.f32 %v1165_v51, 0.0  ;;  %1289 = vst.msk [vmem:[%s3089_s6 + $0x98] sm:$0xff] %vm268_vm0, %v1225_v53  ;;  %v1041_v44 = vsub.f32 %v2192_v52, %v2555_v61  ;;  %v3148_v52 = vld [vmem:[#allocation14_spill] sm:$0xff] }
 0x1ab   :  { %v1106_v5 = vmul.f32 %v2562_v16, %v1039_v59  ;;  %v1170_v17 = vadd.f32 %v2582_v12, %v1102_v33  ;;  %v1230_v24 = vmax.f32 %v1166_v7, 0.0  ;;  %1290 = vst.msk [vmem:[%s3089_s6 + $0xa0] sm:$0xff] %vm268_vm0, %v1226_v14  ;;  %v1042_v40 = vsub.f32 %v2208_v56, %v2555_v61  ;;  %v3151_v59 = vld [vmem:[#allocation17_spill] sm:$0xff] }
 0x1ac   :  { %v1107_v9 = vmul.f32 %v2562_v16, %v1040_v46  ;;  %v1171_v20 = vadd.f32 %v2582_v12, %v1103_v2  ;;  %v1231_v35 = vmax.f32 %v1167_v26, 0.0  ;;  %1291 = vst.msk [vmem:[%s3089_s6 + $0xa8] sm:$0xff] %vm268_vm0, %v1227_v39  ;;  %v1043_v43 = vsub.f32 %v3148_v52, %v2555_v61 }
 0x1ad   :  { %v1108_v22 = vmul.f32 %v2562_v16, %v1041_v44  ;;  %v1172_v8 = vadd.f32 %v2582_v12, %v1104_v41  ;;  %v1232_v50 = vmax.f32 %v1168_v37, 0.0  ;;  %1292 = vst.msk [vmem:[%s3089_s6 + $0xb0] sm:$0xff] %vm268_vm0, %v1228_v21  ;;  %v1044_v56 = vsub.f32 %v2233_v15, %v2555_v61 }
 0x1ae   :  { %v1109_v49 = vmul.f32 %v2562_v16, %v1042_v40  ;;  %v1173_v1 = vadd.f32 %v2582_v12, %v1105_v36  ;;  %v1233_v29 = vmax.f32 %v1169_v25, 0.0  ;;  %1293 = vst.msk [vmem:[%s3089_s6 + $0xb8] sm:$0xff] %vm268_vm0, %v1229_v31  ;;  %v1045_v11 = vsub.f32 %v2237_v55, %v2555_v61  ;;  %v3149_v55 = vld [vmem:[#allocation15_spill] sm:$0xff] }
 0x1af   :  { %v1110_v3 = vmul.f32 %v2562_v16, %v1043_v43  ;;  %v1174_v48 = vadd.f32 %v2582_v12, %v1106_v5  ;;  %v1234_v63 = vmax.f32 %v1170_v17, 0.0  ;;  %1294 = vst.msk [vmem:[%s3089_s6 + $0xc0] sm:$0xff] %vm268_vm0, %v1230_v24  ;;  %v1046_v15 = vsub.f32 %v2259_v4, %v2555_v61  ;;  %v3150_v4 = vld [vmem:[#allocation16_spill] sm:$0xff] }
 0x1b0   :  { %v1111_v58 = vmul.f32 %v2562_v16, %v1044_v56  ;;  %v1175_v47 = vadd.f32 %v2582_v12, %v1107_v9  ;;  %v1235_v57 = vmax.f32 %v1171_v20, 0.0  ;;  %1295 = vst.msk [vmem:[%s3089_s6 + $0xc8] sm:$0xff] %vm268_vm0, %v1231_v35  ;;  %v1047_v51 = vsub.f32 %v3149_v55, %v2555_v61 }
 0x1b1   :  { %v1112_v53 = vmul.f32 %v2562_v16, %v1045_v11  ;;  %v1176_v23 = vadd.f32 %v2582_v12, %v1108_v22  ;;  %v1236_v33 = vmax.f32 %v1172_v8, 0.0  ;;  %1296 = vst.msk [vmem:[%s3089_s6 + $0xd0] sm:$0xff] %vm268_vm0, %v1232_v50  ;;  %v1048_v7 = vsub.f32 %v3150_v4, %v2555_v61 }
 0x1b2   :  { %v1113_v14 = vmul.f32 %v2562_v16, %v1046_v15  ;;  %v1177_v42 = vadd.f32 %v2582_v12, %v1109_v49  ;;  %v1237_v18 = vmax.f32 %v1173_v1, 0.0  ;;  %1297 = vst.msk [vmem:[%s3089_s6 + $0xd8] sm:$0xff] %vm268_vm0, %v1233_v29  ;;  %v1049_v2 = vsub.f32 %v2295_v34, %v2555_v61 }
 0x1b3   :  { %v1114_v26 = vmul.f32 %v2562_v16, %v1047_v51  ;;  %v1178_v39 = vadd.f32 %v2582_v12, %v1110_v3  ;;  %v1238_v13 = vmax.f32 %v1174_v48, 0.0  ;;  %1298 = vst.msk [vmem:[%s3089_s6 + $0xe0] sm:$0xff] %vm268_vm0, %v1234_v63  ;;  %v1050_v41 = vsub.f32 %v3151_v59, %v2555_v61 }
 0x1b4   :  { %v1115_v37 = vmul.f32 %v2562_v16, %v1048_v7  ;;  %v1179_v21 = vadd.f32 %v2582_v12, %v1111_v58  ;;  %v1239_v46 = vmax.f32 %v1175_v47, 0.0  ;;  %1299 = vst.msk [vmem:[%s3089_s6 + $0xe8] sm:$0xff] %vm268_vm0, %v1235_v57  ;;  %v1051_v34 = vsub.f32 %v2319_v32, %v2555_v61  ;;  %v3152_v32 = vld [vmem:[#allocation18_spill] sm:$0xff] }
 0x1b5   :  { %v1116_v36 = vmul.f32 %v2562_v16, %v1049_v2  ;;  %v1180_v25 = vadd.f32 %v2582_v12, %v1112_v53  ;;  %v1240_v31 = vmax.f32 %v1176_v23, 0.0  ;;  %1300 = vst.msk [vmem:[%s3089_s6 + $0xf0] sm:$0xff] %vm268_vm0, %v1236_v33  ;;  %v1052_v44 = vsub.f32 %v2332_v54, %v2555_v61  ;;  %v3153_v54 = vld [vmem:[#allocation19_spill] sm:$0xff] }
 0x1b6   :  { %v1117_v5 = vmul.f32 %v2562_v16, %v1050_v41  ;;  %v1181_v17 = vadd.f32 %v2582_v12, %v1113_v14  ;;  %v1241_v24 = vmax.f32 %v1177_v42, 0.0  ;;  %1301 = vst.msk [vmem:[%s3089_s6 + $0xf8] sm:$0xff] %vm268_vm0, %v1237_v18  ;;  %v1053_v40 = vsub.f32 %v3152_v32, %v2555_v61  ;;  %v3156_v32 = vld [vmem:[#allocation22_spill] sm:$0xff] }
 0x1b7   :  { %v1118_v9 = vmul.f32 %v2562_v16, %v1051_v34  ;;  %v1182_v20 = vadd.f32 %v2582_v12, %v1114_v26  ;;  %v1242_v35 = vmax.f32 %v1178_v39, 0.0  ;;  %1302 = vst.msk [vmem:[%s3089_s6 + $0x100] sm:$0xff] %vm268_vm0, %v1238_v13  ;;  %v1054_v52 = vsub.f32 %v3153_v54, %v2555_v61  ;;  %v3157_v54 = vld [vmem:[#allocation23_spill] sm:$0xff] }
 0x1b8   :  { %v1119_v43 = vmul.f32 %v2562_v16, %v1052_v44  ;;  %v1183_v22 = vadd.f32 %v2582_v12, %v1115_v37  ;;  %v1243_v8 = vmax.f32 %v1179_v21, 0.0  ;;  %1303 = vst.msk [vmem:[%s3089_s6 + $0x108] sm:$0xff] %vm268_vm0, %v1239_v46  ;;  %v1055_v50 = vsub.f32 %v2362_v62, %v2555_v61 }
 0x1b9   :  { %v1120_v56 = vmul.f32 %v2562_v16, %v1053_v40  ;;  %v1184_v49 = vadd.f32 %v2582_v12, %v1116_v36  ;;  %v1244_v1 = vmax.f32 %v1180_v25, 0.0  ;;  %1304 = vst.msk [vmem:[%s3089_s6 + $0x110] sm:$0xff] %vm268_vm0, %v1240_v31  ;;  %v1056_v29 = vsub.f32 %v2371_v60, %v2555_v61 }
 0x1ba   :  { %v1121_v11 = vmul.f32 %v2562_v16, %v1054_v52  ;;  %v1185_v3 = vadd.f32 %v2582_v12, %v1117_v5  ;;  %v1245_v48 = vmax.f32 %v1181_v17, 0.0  ;;  %1305 = vst.msk [vmem:[%s3089_s6 + $0x118] sm:$0xff] %vm268_vm0, %v1241_v24  ;;  %v1057_v62 = vsub.f32 %v2390_v10, %v2555_v61 }
 0x1bb   :  { %v1122_v63 = vmul.f32 %v2562_v16, %v1055_v50  ;;  %v1186_v15 = vadd.f32 %v2582_v12, %v1118_v9  ;;  %v1246_v58 = vmax.f32 %v1182_v20, 0.0  ;;  %1306 = vst.msk [vmem:[%s3089_s6 + $0x120] sm:$0xff] %vm268_vm0, %v1242_v35  ;;  %v1058_v60 = vsub.f32 %v2404_v45, %v2555_v61  ;;  %v3158_v50 = vld [vmem:[#allocation24_spill] sm:$0xff] }
 0x1bc   :  { %v1123_v47 = vmul.f32 %v2562_v16, %v1056_v29  ;;  %v1187_v57 = vadd.f32 %v2582_v12, %v1119_v43  ;;  %v1247_v55 = vmax.f32 %v1183_v22, 0.0  ;;  %1307 = vst.msk [vmem:[%s3089_s6 + $0x128] sm:$0xff] %vm268_vm0, %v1243_v8  ;;  %v1059_v10 = vsub.f32 %v2417_v38, %v2555_v61 }
 0x1bd   :  { %v1124_v51 = vmul.f32 %v2562_v16, %v1057_v62  ;;  %v1188_v53 = vadd.f32 %v2582_v12, %v1120_v56  ;;  %v1248_v23 = vmax.f32 %v1184_v49, 0.0  ;;  %1308 = vst.msk [vmem:[%s3089_s6 + $0x130] sm:$0xff] %vm268_vm0, %v1244_v1  ;;  %v1060_v45 = vsub.f32 %v2429_v30, %v2555_v61 }
 0x1be   :  { %v1125_v33 = vmul.f32 %v2562_v16, %v1058_v60  ;;  %v1189_v4 = vadd.f32 %v2582_v12, %v1121_v11  ;;  %v1249_v7 = vmax.f32 %v1185_v3, 0.0  ;;  %1309 = vst.msk [vmem:[%s3089_s6 + $0x138] sm:$0xff] %vm268_vm0, %v1245_v48  ;;  %v1061_v38 = vsub.f32 %v2443_v6, %v2555_v61 }
 0x1bf   :  { %v1126_v14 = vmul.f32 %v2562_v16, %v1059_v10  ;;  %v1190_v42 = vadd.f32 %v2582_v12, %v1122_v63  ;;  %v1250_v18 = vmax.f32 %v1186_v15, 0.0  ;;  %1310 = vst.msk [vmem:[%s3089_s6 + $0x140] sm:$0xff] %vm268_vm0, %v1246_v58  ;;  %v1062_v30 = vsub.f32 %v2455_v19, %v2555_v61 }
 0x1c0   :  { %v1127_v2 = vmul.f32 %v2562_v16, %v1060_v45  ;;  %v1191_v26 = vadd.f32 %v2582_v12, %v1123_v47  ;;  %v1251_v39 = vmax.f32 %v1187_v57, 0.0  ;;  %1311 = vst.msk [vmem:[%s3089_s6 + $0x148] sm:$0xff] %vm268_vm0, %v1247_v55  ;;  %v1063_v6 = vsub.f32 %v2460_v27, %v2555_v61  ;;  %v3154_v27 = vld [vmem:[#allocation20_spill] sm:$0xff] }
 0x1c1   :  { %v1128_v13 = vmul.f32 %v2562_v16, %v1061_v38  ;;  %v1192_v59 = vadd.f32 %v2582_v12, %v1124_v51  ;;  %v1252_v41 = vmax.f32 %v1188_v53, 0.0  ;;  %1312 = vst.msk [vmem:[%s3089_s6 + $0x150] sm:$0xff] %vm268_vm0, %v1248_v23  ;;  %v1064_v19 = vsub.f32 %v2469_v0, %v2555_v61  ;;  %v3155_v0 = vld [vmem:[#allocation21_spill] sm:$0xff] }
 0x1c2   :  { %v1129_v37 = vmul.f32 %v2562_v16, %v1062_v30  ;;  %v1193_v21 = vadd.f32 %v2582_v12, %v1125_v33  ;;  %v1253_v46 = vmax.f32 %v1189_v4, 0.0  ;;  %1313 = vst.msk [vmem:[%s3089_s6 + $0x158] sm:$0xff] %vm268_vm0, %v1249_v7  ;;  %v1065_v34 = vsub.f32 %v3154_v27, %v2555_v61 }
 0x1c3   :  { %v1130_v36 = vmul.f32 %v2562_v16, %v1063_v6  ;;  %v1194_v25 = vadd.f32 %v2582_v12, %v1126_v14  ;;  %v1254_v31 = vmax.f32 %v1190_v42, 0.0  ;;  %1314 = vst.msk [vmem:[%s3089_s6 + $0x160] sm:$0xff] %vm268_vm0, %v1250_v18  ;;  %v1066_v44 = vsub.f32 %v3155_v0, %v2555_v61 }
 0x1c4   :  { %v1131_v5 = vmul.f32 %v2562_v16, %v1064_v19  ;;  %v1195_v17 = vadd.f32 %v2582_v12, %v1127_v2  ;;  %v1255_v24 = vmax.f32 %v1191_v26, 0.0  ;;  %1315 = vst.msk [vmem:[%s3089_s6 + $0x168] sm:$0xff] %vm268_vm0, %v1251_v39  ;;  %v1067_v40 = vsub.f32 %v3156_v32, %v2555_v61 }
 0x1c5   :  { %v1132_v9 = vmul.f32 %v2562_v16, %v1065_v34  ;;  %v1196_v20 = vadd.f32 %v2582_v12, %v1128_v13  ;;  %v1256_v35 = vmax.f32 %v1192_v59, 0.0  ;;  %1316 = vst.msk [vmem:[%s3089_s6 + $0x170] sm:$0xff] %vm268_vm0, %v1252_v41  ;;  %v1068_v52 = vsub.f32 %v3157_v54, %v2555_v61 }
 0x1c6   :  { %v1133_v43 = vmul.f32 %v2562_v16, %v1066_v44  ;;  %v1197_v22 = vadd.f32 %v2582_v12, %v1129_v37  ;;  %v1257_v8 = vmax.f32 %v1193_v21, 0.0  ;;  %1317 = vst.msk [vmem:[%s3089_s6 + $0x178] sm:$0xff] %vm268_vm0, %v1253_v46  ;;  %v1069_v56 = vsub.f32 %v3158_v50, %v2555_v61 }
 0x1c7   :  { %v1134_v49 = vmul.f32 %v2562_v16, %v1067_v40  ;;  %v1198_v1 = vadd.f32 %v2582_v12, %v1130_v36  ;;  %v1258_v29 = vmax.f32 %v1194_v25, 0.0  ;;  %1318 = vst.msk [vmem:[%s3089_s6 + $0x180] sm:$0xff] %vm268_vm0, %v1254_v31  ;;  %v1135_v11 = vmul.f32 %v2562_v16, %v1068_v52 }
 0x1c8   :  { %v1199_v3 = vadd.f32 %v2582_v12, %v1131_v5  ;;  %v1259_v48 = vmax.f32 %v1195_v17, 0.0  ;;  %1319 = vst.msk [vmem:[%s3089_s6 + $0x188] sm:$0xff] %vm268_vm0, %v1255_v24  ;;  %v1136_v61 = vmul.f32 %v2562_v16, %v1069_v56  ;;  %v1200_v62 = vadd.f32 %v2582_v12, %v1132_v9 }
 0x1c9   :  { %v1260_v63 = vmax.f32 %v1196_v20, 0.0  ;;  %1320 = vst.msk [vmem:[%s3089_s6 + $0x190] sm:$0xff] %vm268_vm0, %v1256_v35  ;;  %v1201_v15 = vadd.f32 %v2582_v12, %v1133_v43  ;;  %v1261_v58 = vmax.f32 %v1197_v22, 0.0  ;;  %v1202_v60 = vadd.f32 %v2582_v12, %v1134_v49 }
 0x1ca   :  { %1321 = vst.msk [vmem:[%s3089_s6 + $0x198] sm:$0xff] %vm268_vm0, %v1257_v8  ;;  %v1262_v47 = vmax.f32 %v1198_v1, 0.0  ;;  %v1203_v16 = vadd.f32 %v2582_v12, %v1135_v11  ;;  %v1263_v57 = vmax.f32 %v1199_v3, 0.0  ;;  %v1204_v55 = vadd.f32 %v2582_v12, %v1136_v61 }
 0x1cb   :  { %1322 = vst.msk [vmem:[%s3089_s6 + $0x1a0] sm:$0xff] %vm268_vm0, %v1258_v29  ;;  %v1264_v10 = vmax.f32 %v1200_v62, 0.0  ;;  %v1265_v51 = vmax.f32 %v1201_v15, 0.0  ;;  %v1266_v53 = vmax.f32 %v1202_v60, 0.0  ;;  %v1269_v45 = vmax.f32 %v2615_v28, 0.0 }
 0x1cc   :  { %1323 = vst.msk [vmem:[%s3089_s6 + $0x1a8] sm:$0xff] %vm268_vm0, %v1259_v48  ;;  %v1267_v23 = vmax.f32 %v1203_v16, 0.0  ;;  %v1268_v12 = vmax.f32 %v1204_v55, 0.0 }
 0x1cd   :  { %1324 = vst.msk [vmem:[%s3089_s6 + $0x1b0] sm:$0xff] %vm268_vm0, %v1260_v63 }
 0x1ce   :  { %1325 = vst.msk [vmem:[%s3089_s6 + $0x1b8] sm:$0xff] %vm268_vm0, %v1261_v58 }
 0x1cf   :  { %1326 = vst.msk [vmem:[%s3089_s6 + $0x1c0] sm:$0xff] %vm268_vm0, %v1262_v47 }
 0x1d0   :  { %1327 = vst.msk [vmem:[%s3089_s6 + $0x1c8] sm:$0xff] %vm268_vm0, %v1263_v57 }
 0x1d1   :  { %1328 = vst.msk [vmem:[%s3089_s6 + $0x1d0] sm:$0xff] %vm268_vm0, %v1264_v10 }
 0x1d2   :  { %1329 = vst.msk [vmem:[%s3089_s6 + $0x1d8] sm:$0xff] %vm268_vm0, %v1265_v51 }
 0x1d3   :  { %1330 = vst.msk [vmem:[%s3089_s6 + $0x1e0] sm:$0xff] %vm268_vm0, %v1266_v53 }
 0x1d4   :  { %1331 = vst.msk [vmem:[%s3089_s6 + $0x1e8] sm:$0xff] %vm268_vm0, %v1267_v23 }
 0x1d5   :  { %1332 = vst.msk [vmem:[%s3089_s6 + $0x1f0] sm:$0xff] %vm268_vm0, %v1268_v12 }
 0x1d6   :  { %1333 = vst.msk [vmem:[%s3089_s6 + $0x1f8] sm:$0xff] %vm268_vm0, %v1269_v45 }

// kernel: fno2d_reac_diff_forward.11
= control target key start
LH: loop header
LB: loop body
LE: loop exit
PB: predicated region body
PF: predicated region fallthrough
CT: control target
= control target key end

     0   :  { %s1013_s20 = smov 0   ;;  %s1235_s0 = inlined_call_operand.vmem [shape: bf16[512,32], index: 0, kind: input, shape index: {}]   ;;  %s1236_s1 = inlined_call_operand.vmem [shape: bf16[32,128], index: 1, kind: input, shape index: {}]   ;;  %s1237_s2 = inlined_call_operand.vmem [shape: f32[1,128], index: 2, kind: input, shape index: {}]   ;;  %s1238_s3 = inlined_call_operand.vmem [shape: bf16[128,1], index: 3, kind: input, shape index: {}]   ;;  %s1239_s4 = inlined_call_operand.<no memory space> [shape: f32[1,1], index: 4, kind: input, shape index: {}]   ;;  %s1240_s5 = inlined_call_operand.vmem [shape: f32[512,1], index: 5, kind: output, shape index: {}]  }
   0x1   :  { %v10_v0 = vstv %s1239_s4 }
   0x2   :  { %11 = vst [vmem:[#allocation2] sm:$0x1] %v10_v0 }
   0x3 LB: > { %s795_s21 = sadd.s32 4294967295, %s978_s20   ;;  %p799_p0 = scmp.ge.s32.totalorder %s978_s20, 1  ;;  %s978_s20 = sphi %s1013_s20, %s17_s20  }
   0x4   : > { %p190_p1 = scmp.lt.s32.totalorder %s978_s20, 3 }
   0x6   : > { %p191_p2 = pnand %p799_p0, %p190_p1 }
   0x7   : > { %s800_s4 = sshll.u32 (!%p191_p2), %s795_s21, 5 }
   0x8   : > { %194 = sbr.rel (%p191_p2) target bundleno = 544 (0x220), region = 40  ;;  %p219_p3 = scmp.lt.s32.totalorder (!%p191_p2), %s800_s4, 63 }
   0xd   : > { %v943_v1 = vld [vmem:[%s1236_s1 + $0x8] sm:$0xff]  ;;  %v942_v2 = vld [vmem:[%s1236_s1] sm:$0xff]  ;;  %s1242_s4 = smov (!%p219_p3, %s800_s4), 63  ;;  %vm363_vm0 = vcmask 261120   ;;  %v951_v8 = vld [vmem:[%s1238_s3 + $0x38] sm:$0xff]  ;;  %vm706_vm1 = vcmask 7168  }
   0xe   : > { %418 = vmatpush.bf16.msra.mxu0 %v943_v1  ;;  %952 = vmatpush.bf16.msra.mxu3 %v943_v1  ;;  %s801_s26 = sshll.u32 %s1242_s4, 2  ;;  %v950_v10 = vld [vmem:[%s1238_s3 + $0x30] sm:$0xff]  ;;  %v949_v11 = vld [vmem:[%s1238_s3 + $0x28] sm:$0xff]  ;;  %v948_v12 = vld [vmem:[%s1238_s3 + $0x20] sm:$0xff]  ;;  %s803_s24 = sshll.u32 %s1242_s4, 3 }
   0xf   : > { %s1033_s29 = scalar_lea.vmem %s1235_s0, %s801_s26  ;;  %617 = vmatpush.bf16.msra.mxu1 %v951_v8  ;;  %954 = vmatpush.bf16.msra.mxu2 %v951_v8  ;;  %v947_v13 = vld [vmem:[%s1238_s3 + $0x18] sm:$0xff]  ;;  %v946_v15 = vld [vmem:[%s1238_s3 + $0x10] sm:$0xff]  ;;  %v945_v17 = vld [vmem:[%s1238_s3 + $0x8] sm:$0xff]  ;;  %s1120_s27 = scalar_lea.vmem %s1240_s5, %s803_s24 }
  0x10   : > { %v926_v3 = vld [vmem:[%s1033_s29] sm:$0xff]  ;;  %v927_v4 = vld [vmem:[%s1033_s29 + $0x8] sm:$0xff]  ;;  %v928_v5 = vld [vmem:[%s1033_s29 + $0x10] sm:$0xff] }
  0x11   : > { %v929_v6 = vld [vmem:[%s1033_s29 + $0x18] sm:$0xff]  ;;  %v930_v7 = vld [vmem:[%s1033_s29 + $0x20] sm:$0xff]  ;;  %v931_v9 = vld [vmem:[%s1033_s29 + $0x28] sm:$0xff] }
  0x12   : > { %419 = vmatpush.bf16.msra.mxu0 %v942_v2  ;;  %953 = vmatpush.bf16.msra.mxu3 %v942_v2  ;;  %v932_v14 = vld [vmem:[%s1033_s29 + $0x30] sm:$0xff]  ;;  %v935_v16 = vld [vmem:[%s1033_s29 + $0x48] sm:$0xff]  ;;  %v944_v18 = vld [vmem:[%s1238_s3] sm:$0xff] }
  0x13   : > { %618 = vmatpush.bf16.msra.mxu1 %v950_v10  ;;  %955 = vmatpush.bf16.msra.mxu2 %v950_v10  ;;  %v933_v19 = vld [vmem:[%s1033_s29 + $0x38] sm:$0xff]  ;;  %v936_v20 = vld [vmem:[%s1033_s29 + $0x50] sm:$0xff]  ;;  %v934_v21 = vld [vmem:[%s1033_s29 + $0x40] sm:$0xff] }
  0x14   : > { %v1083_v23 = vld [vmem:[%s1237_s2] ss:$0 sm:$0xff]  ;;  %v937_v24 = vld [vmem:[%s1033_s29 + $0x58] sm:$0xff]  ;;  %v939_v40 = vld [vmem:[%s1033_s29 + $0x68] sm:$0xff] }
  0x15   : > { %876 = vmatmul.msk.bf16.vlgmr.msra.gmra.mxu0 %vm363_vm0, %v926_v3  ;;  %885 = vmatmul.msk.bf16.vlgmr.msra.gmra.mxu3 %vm363_vm0, %v935_v16  ;;  %v938_v32 = vld [vmem:[%s1033_s29 + $0x60] sm:$0xff]  ;;  %v940_v48 = vld [vmem:[%s1033_s29 + $0x70] sm:$0xff]  ;;  %v941_v56 = vld [vmem:[%s1033_s29 + $0x78] sm:$0xff] }
  0x17   : > { %619 = vmatpush.bf16.msra.mxu1 %v949_v11  ;;  %956 = vmatpush.bf16.msra.mxu2 %v949_v11 }
  0x1b   : > { %620 = vmatpush.bf16.msra.mxu1 %v948_v12  ;;  %957 = vmatpush.bf16.msra.mxu2 %v948_v12 }
  0x1f   : > { %621 = vmatpush.bf16.msra.mxu1 %v947_v13  ;;  %958 = vmatpush.bf16.msra.mxu2 %v947_v13 }
  0x23   : > { %622 = vmatpush.bf16.msra.mxu1 %v946_v15  ;;  %959 = vmatpush.bf16.msra.mxu2 %v946_v15 }
  0x25   : > { %877 = vmatmul.msk.bf16.gmra.mxu0 %vm363_vm0, %v927_v4  ;;  %886 = vmatmul.msk.bf16.gmra.mxu3 %vm363_vm0, %v936_v20 }
  0x27   : > { %623 = vmatpush.bf16.msra.mxu1 %v945_v17  ;;  %960 = vmatpush.bf16.msra.mxu2 %v945_v17 }
  0x2b   : > { %624 = vmatpush.bf16.msra.mxu1 %v944_v18  ;;  %961 = vmatpush.bf16.msra.mxu2 %v944_v18 }
  0x35   : > { %878 = vmatmul.msk.bf16.gmra.mxu0 %vm363_vm0, %v928_v5  ;;  %887 = vmatmul.msk.bf16.gmra.mxu3 %vm363_vm0, %v937_v24 }
  0x45   : > { %879 = vmatmul.msk.bf16.gmra.mxu0 %vm363_vm0, %v929_v6  ;;  %888 = vmatmul.msk.bf16.gmra.mxu3 %vm363_vm0, %v938_v32 }
  0x55   : > { %880 = vmatmul.msk.bf16.gmra.mxu0 %vm363_vm0, %v930_v7  ;;  %889 = vmatmul.msk.bf16.gmra.mxu3 %vm363_vm0, %v939_v40 }
  0x65   : > { %881 = vmatmul.msk.bf16.gmra.mxu0 %vm363_vm0, %v931_v9  ;;  %890 = vmatmul.msk.bf16.gmra.mxu3 %vm363_vm0, %v940_v48 }
  0x75   : > { %882 = vmatmul.msk.bf16.gmra.mxu0 %vm363_vm0, %v932_v14  ;;  %891 = vmatmul.msk.bf16.gmra.mxu3 %vm363_vm0, %v941_v56 }
  0x85   : > { %883 = vmatmul.msk.bf16.gmra.mxu0 %vm363_vm0, %v933_v19 }
  0x92   : > { %v421_v22 = vpop.f32.mrf.mxu0 }
  0x93   : > { %v422_v25 = vadd.f32 %v1083_v23, %v421_v22 }
  0x95   : > { %884 = vmatmul.msk.bf16.gmra.mxu0 %vm363_vm0, %v934_v21  ;;  %v501_v28 = vmax.f32 %v422_v25, 0.0 }
  0x98   : > { %v466_v14 = vpop.f32.mrf.mxu3 }
  0x9a   : > { %v423_v26 = vpop.f32.mrf.mxu0 }
  0x9b   : > { %v424_v27 = vadd.f32 %v1083_v23, %v423_v26 }
  0x9d   : > { %v502_v29 = vmax.f32 %v424_v27, 0.0 }
  0x9f   : > { %v533_v30 = vpack.c.bf16 %v502_v29, %v501_v28  ;;  %v1115_v28 = vld [vmem:[#allocation2] ss:$0 sm:$0xff] }
  0xa0   : > { %v468_v18 = vpop.f32.mrf.mxu3 }
  0xa1   : > { %625 = vmatmul.bf16.vlgmr.msra.gmra.mxu1 %v533_v30 }
  0xa2   : > { %v426_v31 = vpop.f32.mrf.mxu0 }
  0xa3   : > { %v427_v33 = vadd.f32 %v1083_v23, %v426_v31 }
  0xa5   : > { %v503_v36 = vmax.f32 %v427_v33, 0.0 }
  0xa8   : > { %v471_v24 = vpop.f32.mrf.mxu3 }
  0xaa   : > { %v428_v34 = vpop.f32.mrf.mxu0 }
  0xab   : > { %v429_v35 = vadd.f32 %v1083_v23, %v428_v34 }
  0xad   : > { %v504_v37 = vmax.f32 %v429_v35, 0.0 }
  0xaf   : > { %v534_v38 = vpack.c.bf16 %v504_v37, %v503_v36  ;;  %v467_v36 = vadd.f32 %v1083_v23, %v466_v14  ;;  %v469_v37 = vadd.f32 %v1083_v23, %v468_v18 }
  0xb0   : > { %v473_v34 = vpop.f32.mrf.mxu3 }
  0xb1   : > { %630 = vmatmul.bf16.gmra.mxu1 %v534_v38  ;;  %v519_v40 = vmax.f32 %v467_v36, 0.0  ;;  %v474_v48 = vadd.f32 %v1083_v23, %v473_v34 }
  0xb2   : > { %v431_v39 = vpop.f32.mrf.mxu0 }
  0xb3   : > { %v432_v41 = vadd.f32 %v1083_v23, %v431_v39 }
  0xb5   : > { %v505_v44 = vmax.f32 %v432_v41, 0.0  ;;  %v520_v41 = vmax.f32 %v469_v37, 0.0 }
  0xb8   : > { %v476_v39 = vpop.f32.mrf.mxu3 }
  0xba   : > { %v433_v42 = vpop.f32.mrf.mxu0 }
  0xbb   : > { %v434_v43 = vadd.f32 %v1083_v23, %v433_v42 }
  0xbd   : > { %v506_v45 = vmax.f32 %v434_v43, 0.0 }
  0xbf   : > { %v535_v46 = vpack.c.bf16 %v506_v45, %v505_v44  ;;  %v542_v44 = vpack.c.bf16 %v520_v41, %v519_v40 }
  0xc0   : > { %v478_v45 = vpop.f32.mrf.mxu3 }
  0xc1   : > { %635 = vmatmul.bf16.gmra.mxu1 %v535_v46 }
  0xc2   : > { %v436_v47 = vpop.f32.mrf.mxu0 }
  0xc3   : > { %v437_v49 = vadd.f32 %v1083_v23, %v436_v47  ;;  %v472_v47 = vadd.f32 %v1083_v23, %v471_v24 }
  0xc5   : > { %v507_v52 = vmax.f32 %v437_v49, 0.0 }
  0xca   : > { %v438_v50 = vpop.f32.mrf.mxu0 }
  0xcb   : > { %v439_v51 = vadd.f32 %v1083_v23, %v438_v50  ;;  %v521_v50 = vmax.f32 %v472_v47, 0.0 }
  0xcd   : > { %v508_v53 = vmax.f32 %v439_v51, 0.0  ;;  %v522_v51 = vmax.f32 %v474_v48, 0.0 }
  0xcf   : > { %v536_v54 = vpack.c.bf16 %v508_v53, %v507_v52  ;;  %v481_v53 = vpop.f32.mrf.mxu3 }
  0xd1   : > { %640 = vmatmul.bf16.gmra.mxu1 %v536_v54 }
  0xd2   : > { %v441_v55 = vpop.f32.mrf.mxu0 }
  0xd3   : > { %v442_v57 = vadd.f32 %v1083_v23, %v441_v55  ;;  %v543_v55 = vpack.c.bf16 %v522_v51, %v521_v50 }
  0xd5   : > { %v509_v60 = vmax.f32 %v442_v57, 0.0  ;;  %v477_v57 = vadd.f32 %v1083_v23, %v476_v39 }
  0xda   : > { %v443_v58 = vpop.f32.mrf.mxu0 }
  0xdb   : > { %v444_v59 = vadd.f32 %v1083_v23, %v443_v58  ;;  %v479_v58 = vadd.f32 %v1083_v23, %v478_v45 }
  0xdd   : > { %v510_v61 = vmax.f32 %v444_v59, 0.0 }
  0xdf   : > { %v537_v62 = vpack.c.bf16 %v510_v61, %v509_v60  ;;  %v483_v60 = vpop.f32.mrf.mxu3  ;;  %v523_v61 = vmax.f32 %v477_v57, 0.0 }
  0xe1   : > { %645 = vmatmul.bf16.gmra.mxu1 %v537_v62  ;;  %v524_v62 = vmax.f32 %v479_v58, 0.0 }
  0xe2   : > { %v446_v63 = vpop.f32.mrf.mxu0 }
  0xe3   : > { %v447_v0 = vadd.f32 %v1083_v23, %v446_v63 }
  0xe5   : > { %v511_v3 = vmax.f32 %v447_v0, 0.0 }
  0xea   : > { %v448_v1 = vpop.f32.mrf.mxu0 }
  0xeb   : > { %v449_v2 = vadd.f32 %v1083_v23, %v448_v1  ;;  %v544_v1 = vpack.c.bf16 %v524_v62, %v523_v61 }
  0xed   : > { %v512_v4 = vmax.f32 %v449_v2, 0.0  ;;  %v486_v2 = vpop.f32.mrf.mxu3 }
  0xef   : > { %v538_v5 = vpack.c.bf16 %v512_v4, %v511_v3  ;;  %v482_v4 = vadd.f32 %v1083_v23, %v481_v53 }
  0xf1   : > { %650 = vmatmul.bf16.gmra.mxu1 %v538_v5  ;;  %v484_v5 = vadd.f32 %v1083_v23, %v483_v60 }
  0xf2   : > { %v451_v6 = vpop.f32.mrf.mxu0 }
  0xf3   : > { %v452_v7 = vadd.f32 %v1083_v23, %v451_v6 }
  0xf5   : > { %v513_v10 = vmax.f32 %v452_v7, 0.0  ;;  %v525_v7 = vmax.f32 %v482_v4, 0.0 }
  0xfa   : > { %v453_v8 = vpop.f32.mrf.mxu0 }
  0xfb   : > { %v454_v9 = vadd.f32 %v1083_v23, %v453_v8  ;;  %v526_v8 = vmax.f32 %v484_v5, 0.0 }
  0xfd   : > { %v514_v11 = vmax.f32 %v454_v9, 0.0  ;;  %v488_v9 = vpop.f32.mrf.mxu3 }
  0xff   : > { %v539_v12 = vpack.c.bf16 %v514_v11, %v513_v10 }
 0x101   : > { %655 = vmatmul.bf16.gmra.mxu1 %v539_v12  ;;  %v545_v12 = vpack.c.bf16 %v526_v8, %v525_v7 }
 0x102   : > { %v456_v13 = vpop.f32.mrf.mxu0 }
 0x103   : > { %v457_v15 = vadd.f32 %v1083_v23, %v456_v13 }
 0x105   : > { %v515_v19 = vmax.f32 %v457_v15, 0.0  ;;  %v491_v14 = vpop.f32.mrf.mxu3  ;;  %v487_v15 = vadd.f32 %v1083_v23, %v486_v2 }
 0x107   : > { %v527_v18 = vmax.f32 %v487_v15, 0.0 }
 0x10a   : > { %v458_v16 = vpop.f32.mrf.mxu0 }
 0x10b   : > { %v459_v17 = vadd.f32 %v1083_v23, %v458_v16  ;;  %v489_v16 = vadd.f32 %v1083_v23, %v488_v9 }
 0x10d   : > { %v516_v20 = vmax.f32 %v459_v17, 0.0  ;;  %v493_v24 = vpop.f32.mrf.mxu3 }
 0x10f   : > { %v540_v21 = vpack.c.bf16 %v516_v20, %v515_v19  ;;  %v528_v19 = vmax.f32 %v489_v16, 0.0 }
 0x111   : > { %660 = vmatmul.bf16.gmra.mxu1 %v540_v21 }
 0x112   : > { %v461_v22 = vpop.f32.mrf.mxu0 }
 0x113   : > { %v462_v25 = vadd.f32 %v1083_v23, %v461_v22  ;;  %v546_v22 = vpack.c.bf16 %v528_v19, %v527_v18 }
 0x115   : > { %v517_v29 = vmax.f32 %v462_v25, 0.0 }
 0x11a   : > { %v463_v26 = vpop.f32.mrf.mxu0 }
 0x11b   : > { %v464_v27 = vadd.f32 %v1083_v23, %v463_v26  ;;  %v492_v26 = vadd.f32 %v1083_v23, %v491_v14 }
 0x11d   : > { %v518_v30 = vmax.f32 %v464_v27, 0.0  ;;  %v494_v27 = vadd.f32 %v1083_v23, %v493_v24 }
 0x11e   : > { %v626_v31 = vpop.f32.mrf.mxu1 }
 0x11f   : > { %v627_v32 = vadd.f32 %v1115_v28, %v626_v31  ;;  %v541_v33 = vpack.c.bf16 %v518_v30, %v517_v29  ;;  %v496_v30 = vpop.f32.mrf.mxu3  ;;  %v529_v31 = vmax.f32 %v492_v26, 0.0 }
 0x121   : > { %707 = vst.msk [vmem:[%s1120_s27] sm:$0xff] %vm706_vm1, %v627_v32  ;;  %665 = vmatmul.bf16.vlgmr.msra.gmra.mxu2 %v541_v33  ;;  %v530_v32 = vmax.f32 %v494_v27, 0.0 }
 0x126   : > { %v628_v35 = vpop.f32.mrf.mxu1 }
 0x127   : > { %v629_v38 = vadd.f32 %v1115_v28, %v628_v35  ;;  %v547_v35 = vpack.c.bf16 %v530_v32, %v529_v31  ;;  %v498_v36 = vpop.f32.mrf.mxu3 }
 0x128   : > { %v499_v39 = vadd.f32 %v1083_v23, %v498_v36 }
 0x129   : > { %708 = vst.msk [vmem:[%s1120_s27 + $0x8] sm:$0xff] %vm706_vm1, %v629_v38  ;;  %v497_v38 = vadd.f32 %v1083_v23, %v496_v30 }
 0x12b   : > { %v531_v41 = vmax.f32 %v497_v38, 0.0 }
 0x12e   : > { %v631_v42 = vpop.f32.mrf.mxu1 }
 0x12f   : > { %v632_v43 = vadd.f32 %v1115_v28, %v631_v42  ;;  %v532_v42 = vmax.f32 %v499_v39, 0.0 }
 0x131   : > { %709 = vst.msk [vmem:[%s1120_s27 + $0x10] sm:$0xff] %vm706_vm1, %v632_v43  ;;  %670 = vmatmul.bf16.gmra.mxu2 %v542_v44  ;;  %v548_v45 = vpack.c.bf16 %v532_v42, %v531_v41 }
 0x136   : > { %v633_v46 = vpop.f32.mrf.mxu1 }
 0x137   : > { %v634_v49 = vadd.f32 %v1115_v28, %v633_v46 }
 0x139   : > { %710 = vst.msk [vmem:[%s1120_s27 + $0x18] sm:$0xff] %vm706_vm1, %v634_v49 }
 0x13e   : > { %v636_v52 = vpop.f32.mrf.mxu1 }
 0x13f   : > { %v637_v54 = vadd.f32 %v1115_v28, %v636_v52 }
 0x141   : > { %711 = vst.msk [vmem:[%s1120_s27 + $0x20] sm:$0xff] %vm706_vm1, %v637_v54  ;;  %675 = vmatmul.bf16.gmra.mxu2 %v543_v55 }
 0x146   : > { %v638_v56 = vpop.f32.mrf.mxu1 }
 0x147   : > { %v639_v59 = vadd.f32 %v1115_v28, %v638_v56 }
 0x149   : > { %712 = vst.msk [vmem:[%s1120_s27 + $0x28] sm:$0xff] %vm706_vm1, %v639_v59 }
 0x14e   : > { %v641_v63 = vpop.f32.mrf.mxu1 }
 0x14f   : > { %v642_v0 = vadd.f32 %v1115_v28, %v641_v63 }
 0x151   : > { %713 = vst.msk [vmem:[%s1120_s27 + $0x30] sm:$0xff] %vm706_vm1, %v642_v0  ;;  %680 = vmatmul.bf16.gmra.mxu2 %v544_v1 }
 0x156   : > { %v643_v3 = vpop.f32.mrf.mxu1 }
 0x157   : > { %v644_v6 = vadd.f32 %v1115_v28, %v643_v3 }
 0x159   : > { %714 = vst.msk [vmem:[%s1120_s27 + $0x38] sm:$0xff] %vm706_vm1, %v644_v6 }
 0x15e   : > { %v646_v10 = vpop.f32.mrf.mxu1 }
 0x15f   : > { %v647_v11 = vadd.f32 %v1115_v28, %v646_v10 }
 0x161   : > { %715 = vst.msk [vmem:[%s1120_s27 + $0x40] sm:$0xff] %vm706_vm1, %v647_v11  ;;  %685 = vmatmul.bf16.gmra.mxu2 %v545_v12 }
 0x166   : > { %v648_v13 = vpop.f32.mrf.mxu1 }
 0x167   : > { %v649_v17 = vadd.f32 %v1115_v28, %v648_v13 }
 0x169   : > { %716 = vst.msk [vmem:[%s1120_s27 + $0x48] sm:$0xff] %vm706_vm1, %v649_v17 }
 0x16e   : > { %v651_v20 = vpop.f32.mrf.mxu1 }
 0x16f   : > { %v652_v21 = vadd.f32 %v1115_v28, %v651_v20 }
 0x171   : > { %717 = vst.msk [vmem:[%s1120_s27 + $0x50] sm:$0xff] %vm706_vm1, %v652_v21  ;;  %690 = vmatmul.bf16.gmra.mxu2 %v546_v22 }
 0x176   : > { %v653_v25 = vpop.f32.mrf.mxu1 }
 0x177   : > { %v654_v29 = vadd.f32 %v1115_v28, %v653_v25 }
 0x179   : > { %718 = vst.msk [vmem:[%s1120_s27 + $0x58] sm:$0xff] %vm706_vm1, %v654_v29 }
 0x17e   : > { %v656_v33 = vpop.f32.mrf.mxu1 }
 0x17f   : > { %v657_v34 = vadd.f32 %v1115_v28, %v656_v33 }
 0x181   : > { %719 = vst.msk [vmem:[%s1120_s27 + $0x60] sm:$0xff] %vm706_vm1, %v657_v34  ;;  %695 = vmatmul.bf16.gmra.mxu2 %v547_v35 }
 0x186   : > { %v658_v37 = vpop.f32.mrf.mxu1 }
 0x187   : > { %v659_v40 = vadd.f32 %v1115_v28, %v658_v37 }
 0x189   : > { %720 = vst.msk [vmem:[%s1120_s27 + $0x68] sm:$0xff] %vm706_vm1, %v659_v40 }
 0x18e   : > { %v661_v43 = vpop.f32.mrf.mxu1 }
 0x18f   : > { %v662_v44 = vadd.f32 %v1115_v28, %v661_v43 }
 0x191   : > { %721 = vst.msk [vmem:[%s1120_s27 + $0x70] sm:$0xff] %vm706_vm1, %v662_v44  ;;  %700 = vmatmul.bf16.gmra.mxu2 %v548_v45 }
 0x196   : > { %v663_v46 = vpop.f32.mrf.mxu1 }
 0x197   : > { %v664_v47 = vadd.f32 %v1115_v28, %v663_v46 }
 0x199   : > { %722 = vst.msk [vmem:[%s1120_s27 + $0x78] sm:$0xff] %vm706_vm1, %v664_v47 }
 0x1a4   : > { %v666_v23 = vpop.f32.mrf.mxu2 }
 0x1a5   : > { %v667_v48 = vadd.f32 %v1115_v28, %v666_v23 }
 0x1a7   : > { %723 = vst.msk [vmem:[%s1120_s27 + $0x80] sm:$0xff] %vm706_vm1, %v667_v48 }
 0x1ac   : > { %v668_v49 = vpop.f32.mrf.mxu2 }
 0x1ad   : > { %v669_v50 = vadd.f32 %v1115_v28, %v668_v49 }
 0x1af   : > { %724 = vst.msk [vmem:[%s1120_s27 + $0x88] sm:$0xff] %vm706_vm1, %v669_v50 }
 0x1b4   : > { %v671_v51 = vpop.f32.mrf.mxu2 }
 0x1b5   : > { %v672_v52 = vadd.f32 %v1115_v28, %v671_v51 }
 0x1b7   : > { %725 = vst.msk [vmem:[%s1120_s27 + $0x90] sm:$0xff] %vm706_vm1, %v672_v52 }
 0x1bc   : > { %v673_v53 = vpop.f32.mrf.mxu2 }
 0x1bd   : > { %v674_v54 = vadd.f32 %v1115_v28, %v673_v53 }
 0x1bf   : > { %726 = vst.msk [vmem:[%s1120_s27 + $0x98] sm:$0xff] %vm706_vm1, %v674_v54 }
 0x1c4   : > { %v676_v55 = vpop.f32.mrf.mxu2 }
 0x1c5   : > { %v677_v56 = vadd.f32 %v1115_v28, %v676_v55 }
 0x1c7   : > { %727 = vst.msk [vmem:[%s1120_s27 + $0xa0] sm:$0xff] %vm706_vm1, %v677_v56 }
 0x1cc   : > { %v678_v57 = vpop.f32.mrf.mxu2 }
 0x1cd   : > { %v679_v58 = vadd.f32 %v1115_v28, %v678_v57 }
 0x1cf   : > { %728 = vst.msk [vmem:[%s1120_s27 + $0xa8] sm:$0xff] %vm706_vm1, %v679_v58 }
 0x1d4   : > { %v681_v59 = vpop.f32.mrf.mxu2 }
 0x1d5   : > { %v682_v60 = vadd.f32 %v1115_v28, %v681_v59 }
 0x1d7   : > { %729 = vst.msk [vmem:[%s1120_s27 + $0xb0] sm:$0xff] %vm706_vm1, %v682_v60 }
 0x1dc   : > { %v683_v61 = vpop.f32.mrf.mxu2 }
 0x1dd   : > { %v684_v62 = vadd.f32 %v1115_v28, %v683_v61 }
 0x1df   : > { %730 = vst.msk [vmem:[%s1120_s27 + $0xb8] sm:$0xff] %vm706_vm1, %v684_v62 }
 0x1e4   : > { %v686_v63 = vpop.f32.mrf.mxu2 }
 0x1e5   : > { %v687_v0 = vadd.f32 %v1115_v28, %v686_v63 }
 0x1e7   : > { %731 = vst.msk [vmem:[%s1120_s27 + $0xc0] sm:$0xff] %vm706_vm1, %v687_v0 }
 0x1ec   : > { %v688_v1 = vpop.f32.mrf.mxu2 }
 0x1ed   : > { %v689_v2 = vadd.f32 %v1115_v28, %v688_v1 }
 0x1ef   : > { %732 = vst.msk [vmem:[%s1120_s27 + $0xc8] sm:$0xff] %vm706_vm1, %v689_v2 }
 0x1f4   : > { %v691_v3 = vpop.f32.mrf.mxu2 }
 0x1f5   : > { %v692_v4 = vadd.f32 %v1115_v28, %v691_v3 }
 0x1f7   : > { %733 = vst.msk [vmem:[%s1120_s27 + $0xd0] sm:$0xff] %vm706_vm1, %v692_v4 }
 0x1fc   : > { %v693_v5 = vpop.f32.mrf.mxu2 }
 0x1fd   : > { %v694_v6 = vadd.f32 %v1115_v28, %v693_v5 }
 0x1ff   : > { %734 = vst.msk [vmem:[%s1120_s27 + $0xd8] sm:$0xff] %vm706_vm1, %v694_v6 }
 0x204   : > { %v696_v7 = vpop.f32.mrf.mxu2 }
 0x205   : > { %v697_v8 = vadd.f32 %v1115_v28, %v696_v7 }
 0x207   : > { %735 = vst.msk [vmem:[%s1120_s27 + $0xe0] sm:$0xff] %vm706_vm1, %v697_v8 }
 0x20c   : > { %v698_v9 = vpop.f32.mrf.mxu2 }
 0x20d   : > { %v699_v10 = vadd.f32 %v1115_v28, %v698_v9 }
 0x20f   : > { %736 = vst.msk [vmem:[%s1120_s27 + $0xe8] sm:$0xff] %vm706_vm1, %v699_v10 }
 0x214   : > { %v701_v11 = vpop.f32.mrf.mxu2 }
 0x215   : > { %v702_v12 = vadd.f32 %v1115_v28, %v701_v11 }
 0x217   : > { %737 = vst.msk [vmem:[%s1120_s27 + $0xf0] sm:$0xff] %vm706_vm1, %v702_v12 }
 0x21c   : > { %v703_v13 = vpop.f32.mrf.mxu2 }
 0x21d   : > { %v704_v14 = vadd.f32 %v1115_v28, %v703_v13 }
 0x21f   : > { %738 = vst.msk [vmem:[%s1120_s27 + $0xf8] sm:$0xff] %vm706_vm1, %v704_v14 }
 0x220 PF: > { %s17_s20 = sadd.s32 1, %s978_s20  }
 0x221   : > { %p14_p4 = scmp.ge.s32.totalorder %s17_s20, 4  }
 0x223   :  { %16 = sbr.rel (!%p14_p4) target bundleno = 3 (0x3), region = 70 }

// kernel: fno2d_reac_diff_forward.10
= control target key start
LH: loop header
LB: loop body
LE: loop exit
PB: predicated region body
PF: predicated region fallthrough
CT: control target
= control target key end

     0   :  { %vm268_vm0 = vcmask 261120   ;;  %s3028_s1 = inlined_call_operand.vmem [shape: bf16[32,32], index: 1, kind: input, shape index: {}]   ;;  %s3029_s2 = inlined_call_operand.vmem [shape: f32[1,32], index: 2, kind: input, shape index: {}]   ;;  %s3030_s0 = inlined_call_operand.vmem [shape: bf16[512,32], index: 0, kind: input, shape index: {}]   ;;  %s3031_s3 = inlined_call_operand.vmem [shape: f32[512,32], index: 3, kind: input, shape index: {}]   ;;  %s3032_s5 = inlined_call_operand.vmem [shape: f32[1,32], index: 5, kind: input, shape index: {}]   ;;  %s3033_s4 = inlined_call_operand.vmem [shape: f32[1,32], index: 4, kind: input, shape index: {}]   ;;  %s3034_s6 = inlined_call_operand.vmem [shape: f32[512,32], index: 6, kind: output, shape index: {}]  }
   0x1   :  { %v1475_v0 = vld [vmem:[%s3028_s1 + $0x8] sm:$0xff]  ;;  %v1474_v1 = vld [vmem:[%s3028_s1] sm:$0xff]  ;;  %v1444_v7 = vld [vmem:[%s3030_s0 + $0x10] sm:$0xff] }
   0x2   :  { %371 = vmatpush.bf16.msra.mxu0 %v1475_v0  ;;  %1476 = vmatpush.bf16.msra.mxu1 %v1475_v0  ;;  %v1442_v2 = vld [vmem:[%s3030_s0] sm:$0xff]  ;;  %v1443_v4 = vld [vmem:[%s3030_s0 + $0x8] sm:$0xff]  ;;  %v1452_v8 = vld [vmem:[%s3030_s0 + $0x50] sm:$0xff] }
   0x3   :  { %1477 = vmatpush.bf16.msra.mxu2 %v1475_v0  ;;  %1478 = vmatpush.bf16.msra.mxu3 %v1475_v0  ;;  %v1450_v3 = vld [vmem:[%s3030_s0 + $0x40] sm:$0xff]  ;;  %v1451_v5 = vld [vmem:[%s3030_s0 + $0x48] sm:$0xff]  ;;  %v1445_v10 = vld [vmem:[%s3030_s0 + $0x18] sm:$0xff] }
   0x4   :  { %v1458_v6 = vld [vmem:[%s3030_s0 + $0x80] sm:$0xff]  ;;  %v1459_v9 = vld [vmem:[%s3030_s0 + $0x88] sm:$0xff]  ;;  %v1453_v11 = vld [vmem:[%s3030_s0 + $0x58] sm:$0xff] }
   0x5   :  { %v1460_v12 = vld [vmem:[%s3030_s0 + $0x90] sm:$0xff]  ;;  %v1466_v13 = vld [vmem:[%s3030_s0 + $0xc0] sm:$0xff]  ;;  %v1461_v16 = vld [vmem:[%s3030_s0 + $0x98] sm:$0xff] }
   0x6   :  { %372 = vmatpush.bf16.msra.mxu0 %v1474_v1  ;;  %1479 = vmatpush.bf16.msra.mxu1 %v1474_v1  ;;  %v1446_v14 = vld [vmem:[%s3030_s0 + $0x20] sm:$0xff]  ;;  %v1467_v17 = vld [vmem:[%s3030_s0 + $0xc8] sm:$0xff]  ;;  %v1468_v21 = vld [vmem:[%s3030_s0 + $0xd0] sm:$0xff] }
   0x7   :  { %1480 = vmatpush.bf16.msra.mxu2 %v1474_v1  ;;  %1481 = vmatpush.bf16.msra.mxu3 %v1474_v1  ;;  %v1454_v15 = vld [vmem:[%s3030_s0 + $0x60] sm:$0xff]  ;;  %v1447_v18 = vld [vmem:[%s3030_s0 + $0x28] sm:$0xff]  ;;  %v1448_v22 = vld [vmem:[%s3030_s0 + $0x30] sm:$0xff] }
   0x8   :  { %v1455_v19 = vld [vmem:[%s3030_s0 + $0x68] sm:$0xff]  ;;  %v1462_v20 = vld [vmem:[%s3030_s0 + $0xa0] sm:$0xff]  ;;  %v1456_v23 = vld [vmem:[%s3030_s0 + $0x70] sm:$0xff] }
   0x9   :  { %1410 = vmatmul.msk.bf16.vlgmr.msra.gmra.mxu0 %vm268_vm0, %v1442_v2  ;;  %1418 = vmatmul.msk.bf16.vlgmr.msra.gmra.mxu1 %vm268_vm0, %v1450_v3  ;;  %v1463_v24 = vld [vmem:[%s3030_s0 + $0xa8] sm:$0xff]  ;;  %v1469_v25 = vld [vmem:[%s3030_s0 + $0xd8] sm:$0xff]  ;;  %v1464_v28 = vld [vmem:[%s3030_s0 + $0xb0] sm:$0xff] }
   0xa   :  { %1426 = vmatmul.msk.bf16.vlgmr.msra.gmra.mxu2 %vm268_vm0, %v1458_v6  ;;  %1434 = vmatmul.msk.bf16.vlgmr.msra.gmra.mxu3 %vm268_vm0, %v1466_v13  ;;  %v1449_v26 = vld [vmem:[%s3030_s0 + $0x38] sm:$0xff]  ;;  %v1470_v29 = vld [vmem:[%s3030_s0 + $0xe0] sm:$0xff]  ;;  %v1471_v33 = vld [vmem:[%s3030_s0 + $0xe8] sm:$0xff] }
   0xb   :  { %v1457_v27 = vld [vmem:[%s3030_s0 + $0x78] sm:$0xff]  ;;  %v1472_v38 = vld [vmem:[%s3030_s0 + $0xf0] sm:$0xff]  ;;  %v1697_v63 = vld [vmem:[%s3029_s2] ss:$0 sm:$0xff] }
   0xc   :  { %v1465_v32 = vld [vmem:[%s3030_s0 + $0xb8] sm:$0xff]  ;;  %v535_v2 = vld [vmem:[%s3031_s3 + $0x8] sm:$0xff] }
   0xd   :  { %v1473_v44 = vld [vmem:[%s3030_s0 + $0xf8] sm:$0xff] }
   0xe   :  { %v537_v13 = vld [vmem:[%s3031_s3 + $0x18] sm:$0xff] }
  0x19   :  { %1411 = vmatmul.msk.bf16.gmra.mxu0 %vm268_vm0, %v1443_v4  ;;  %1419 = vmatmul.msk.bf16.gmra.mxu1 %vm268_vm0, %v1451_v5  ;;  %v534_v5 = vld [vmem:[%s3031_s3] sm:$0xff] }
  0x1a   :  { %1427 = vmatmul.msk.bf16.gmra.mxu2 %vm268_vm0, %v1459_v9  ;;  %1435 = vmatmul.msk.bf16.gmra.mxu3 %vm268_vm0, %v1467_v17  ;;  %v538_v17 = vld [vmem:[%s3031_s3 + $0x20] sm:$0xff] }
  0x29   :  { %1412 = vmatmul.msk.bf16.gmra.mxu0 %vm268_vm0, %v1444_v7  ;;  %1420 = vmatmul.msk.bf16.gmra.mxu1 %vm268_vm0, %v1452_v8  ;;  %v536_v8 = vld [vmem:[%s3031_s3 + $0x10] sm:$0xff] }
  0x2a   :  { %1428 = vmatmul.msk.bf16.gmra.mxu2 %vm268_vm0, %v1460_v12  ;;  %1436 = vmatmul.msk.bf16.gmra.mxu3 %vm268_vm0, %v1468_v21  ;;  %v539_v21 = vld [vmem:[%s3031_s3 + $0x28] sm:$0xff] }
  0x39   :  { %1413 = vmatmul.msk.bf16.gmra.mxu0 %vm268_vm0, %v1445_v10  ;;  %1421 = vmatmul.msk.bf16.gmra.mxu1 %vm268_vm0, %v1453_v11 }
  0x3a   :  { %1429 = vmatmul.msk.bf16.gmra.mxu2 %vm268_vm0, %v1461_v16  ;;  %1437 = vmatmul.msk.bf16.gmra.mxu3 %vm268_vm0, %v1469_v25 }
  0x49   :  { %1414 = vmatmul.msk.bf16.gmra.mxu0 %vm268_vm0, %v1446_v14  ;;  %1422 = vmatmul.msk.bf16.gmra.mxu1 %vm268_vm0, %v1454_v15 }
  0x4a   :  { %1430 = vmatmul.msk.bf16.gmra.mxu2 %vm268_vm0, %v1462_v20  ;;  %1438 = vmatmul.msk.bf16.gmra.mxu3 %vm268_vm0, %v1470_v29 }
  0x59   :  { %1415 = vmatmul.msk.bf16.gmra.mxu0 %vm268_vm0, %v1447_v18  ;;  %1423 = vmatmul.msk.bf16.gmra.mxu1 %vm268_vm0, %v1455_v19 }
  0x5a   :  { %1431 = vmatmul.msk.bf16.gmra.mxu2 %vm268_vm0, %v1463_v24  ;;  %1439 = vmatmul.msk.bf16.gmra.mxu3 %vm268_vm0, %v1471_v33 }
  0x69   :  { %1416 = vmatmul.msk.bf16.gmra.mxu0 %vm268_vm0, %v1448_v22  ;;  %1424 = vmatmul.msk.bf16.gmra.mxu1 %vm268_vm0, %v1456_v23 }
  0x6a   :  { %1432 = vmatmul.msk.bf16.gmra.mxu2 %vm268_vm0, %v1464_v28  ;;  %1440 = vmatmul.msk.bf16.gmra.mxu3 %vm268_vm0, %v1472_v38 }
  0x79   :  { %1417 = vmatmul.msk.bf16.gmra.mxu0 %vm268_vm0, %v1449_v26  ;;  %1425 = vmatmul.msk.bf16.gmra.mxu1 %vm268_vm0, %v1457_v27  ;;  %v540_v27 = vld [vmem:[%s3031_s3 + $0x30] sm:$0xff] }
  0x7a   :  { %1433 = vmatmul.msk.bf16.gmra.mxu2 %vm268_vm0, %v1465_v32  ;;  %1441 = vmatmul.msk.bf16.gmra.mxu3 %vm268_vm0, %v1473_v44 }
  0x86   :  { %v374_v30 = vpop.f32.mrf.mxu0  ;;  %v1640_v31 = vpop.f32.mrf.mxu1 }
  0x87   :  { %v375_v3 = vadd.f32 %v1697_v63, %v374_v30 }
  0x89   :  { %v1720_v12 = vadd.f32 %v534_v5, %v375_v3 }
  0x8b   :  { %v795_v20 = vmul.f32 %v1720_v12, %v1720_v12  ;;  %v662_v28 = vsel %vm268_vm0, %v1720_v12, 0.0 }
  0x8d   :  { %v1660_v41 = vpop.f32.mrf.mxu2  ;;  %v1678_v53 = vpop.f32.mrf.mxu3 }
  0x8e   :  { %v376_v34 = vpop.f32.mrf.mxu0  ;;  %v1650_v35 = vpop.f32.mrf.mxu1 }
  0x8f   :  { %v377_v0 = vadd.f32 %v1697_v63, %v376_v34 }
  0x91   :  { %v1712_v7 = vadd.f32 %v535_v2, %v377_v0 }
  0x93   :  { %v796_v16 = vmul.f32 %v1712_v7, %v1712_v7  ;;  %v663_v24 = vsel %vm268_vm0, %v1712_v7, 0.0 }
  0x95   :  { %v1667_v45 = vpop.f32.mrf.mxu2  ;;  %v1684_v57 = vpop.f32.mrf.mxu3  ;;  %v860_v29 = vsel %vm268_vm0, %v796_v16, 0.0 }
  0x96   :  { %v379_v36 = vpop.f32.mrf.mxu0  ;;  %v1652_v37 = vpop.f32.mrf.mxu1 }
  0x97   :  { %v380_v6 = vadd.f32 %v1697_v63, %v379_v36 }
  0x99   :  { %v1725_v14 = vadd.f32 %v536_v8, %v380_v6  ;;  %v542_v8 = vld [vmem:[%s3031_s3 + $0x40] sm:$0xff] }
  0x9b   :  { %v797_v25 = vmul.f32 %v1725_v14, %v1725_v14  ;;  %v665_v33 = vsel %vm268_vm0, %v1725_v14, 0.0 }
  0x9d   :  { %v1672_v48 = vpop.f32.mrf.mxu2  ;;  %v1690_v61 = vpop.f32.mrf.mxu3  ;;  %v862_v0 = vsel %vm268_vm0, %v797_v25, 0.0 }
  0x9e   :  { %v381_v39 = vpop.f32.mrf.mxu0  ;;  %v1658_v40 = vpop.f32.mrf.mxu1 }
  0x9f   :  { %v382_v11 = vadd.f32 %v1697_v63, %v381_v39  ;;  %v859_v39 = vsel %vm268_vm0, %v795_v20, 0.0 }
  0xa0   :  { %v861_v5 = vadd.f32 %v860_v29, %v859_v39 }
  0xa1   :  { %v1733_v18 = vadd.f32 %v537_v13, %v382_v11 }
  0xa3   :  { %v798_v34 = vmul.f32 %v1733_v18, %v1733_v18  ;;  %v667_v2 = vsel %vm268_vm0, %v1733_v18, 0.0 }
  0xa5   :  { %v1676_v52 = vpop.f32.mrf.mxu2  ;;  %v1717_v10 = vpop.f32.mrf.mxu3  ;;  %v864_v13 = vsel %vm268_vm0, %v798_v34, 0.0 }
  0xa6   :  { %v384_v42 = vpop.f32.mrf.mxu0  ;;  %v1662_v43 = vpop.f32.mrf.mxu1 }
  0xa7   :  { %v385_v15 = vadd.f32 %v1697_v63, %v384_v42  ;;  %v664_v42 = vadd.f32 %v663_v24, %v662_v28 }
  0xa9   :  { %v1748_v26 = vadd.f32 %v538_v17, %v385_v15  ;;  %v666_v6 = vadd.f32 %v665_v33, %v664_v42  ;;  %v544_v33 = vld [vmem:[%s3031_s3 + $0x50] sm:$0xff] }
  0xab   :  { %v799_v3 = vmul.f32 %v1748_v26, %v1748_v26  ;;  %v669_v15 = vsel %vm268_vm0, %v1748_v26, 0.0  ;;  %v668_v20 = vadd.f32 %v667_v2, %v666_v6 }
  0xad   :  { %v1682_v56 = vpop.f32.mrf.mxu2  ;;  %v670_v28 = vadd.f32 %v669_v15, %v668_v20 }
  0xae   :  { %v386_v46 = vpop.f32.mrf.mxu0  ;;  %v1670_v47 = vpop.f32.mrf.mxu1 }
  0xaf   :  { %v387_v19 = vadd.f32 %v1697_v63, %v386_v46  ;;  %v541_v46 = vld [vmem:[%s3031_s3 + $0x38] sm:$0xff] }
  0xb1   :  { %v1762_v36 = vadd.f32 %v539_v21, %v387_v19  ;;  %v863_v19 = vadd.f32 %v862_v0, %v861_v5 }
  0xb3   :  { %v800_v16 = vmul.f32 %v1762_v36, %v1762_v36 }
  0xb5   :  { %v1688_v60 = vpop.f32.mrf.mxu2  ;;  %v868_v39 = vsel %vm268_vm0, %v800_v16, 0.0 }
  0xb6   :  { %v389_v49 = vpop.f32.mrf.mxu0  ;;  %v1674_v50 = vpop.f32.mrf.mxu1 }
  0xb7   :  { %v390_v22 = vadd.f32 %v1697_v63, %v389_v49  ;;  %v1771_v49 = vpop.f32.mrf.mxu3 }
  0xb9   :  { %v1766_v44 = vadd.f32 %v540_v27, %v390_v22  ;;  %v671_v22 = vsel %vm268_vm0, %v1762_v36, 0.0  ;;  %v865_v27 = vadd.f32 %v864_v13, %v863_v19 }
  0xba   :  { %v672_v2 = vadd.f32 %v671_v22, %v670_v28 }
  0xbb   :  { %v801_v21 = vmul.f32 %v1766_v44, %v1766_v44  ;;  %v673_v42 = vsel %vm268_vm0, %v1766_v44, 0.0 }
  0xbc   :  { %v674_v15 = vadd.f32 %v673_v42, %v672_v2  ;;  %v548_v2 = vld [vmem:[%s3031_s3 + $0x70] sm:$0xff] }
  0xbd   :  { %v1706_v4 = vpop.f32.mrf.mxu2 }
  0xbe   :  { %v391_v51 = vpop.f32.mrf.mxu0  ;;  %v1680_v55 = vpop.f32.mrf.mxu1 }
  0xbf   :  { %v392_v38 = vadd.f32 %v1697_v63, %v391_v51  ;;  %v1833_v19 = vpop.f32.mrf.mxu3 }
  0xc1   :  { %v1788_v17 = vadd.f32 %v541_v46, %v392_v38 }
  0xc3   :  { %v802_v46 = vmul.f32 %v1788_v17, %v1788_v17  ;;  %v675_v6 = vsel %vm268_vm0, %v1788_v17, 0.0 }
  0xc5   :  { %v1756_v32 = vpop.f32.mrf.mxu2  ;;  %v872_v20 = vsel %vm268_vm0, %v802_v46, 0.0 }
  0xc6   :  { %v394_v54 = vpop.f32.mrf.mxu0  ;;  %v1686_v59 = vpop.f32.mrf.mxu1 }
  0xc7   :  { %v395_v51 = vadd.f32 %v1697_v63, %v394_v54  ;;  %v543_v54 = vld [vmem:[%s3031_s3 + $0x48] sm:$0xff] }
  0xc9   :  { %v1798_v24 = vadd.f32 %v542_v8, %v395_v51  ;;  %v545_v51 = vld [vmem:[%s3031_s3 + $0x58] sm:$0xff] }
  0xcb   :  { %v803_v8 = vmul.f32 %v1798_v24, %v1798_v24 }
  0xcd   :  { %v1819_v5 = vpop.f32.mrf.mxu2  ;;  %v874_v28 = vsel %vm268_vm0, %v803_v8, 0.0 }
  0xce   :  { %v396_v58 = vpop.f32.mrf.mxu0  ;;  %v1700_v1 = vpop.f32.mrf.mxu1 }
  0xcf   :  { %v397_v11 = vadd.f32 %v1697_v63, %v396_v58  ;;  %v866_v58 = vsel %vm268_vm0, %v799_v3, 0.0  ;;  %v870_v3 = vsel %vm268_vm0, %v801_v21, 0.0  ;;  %v677_v21 = vsel %vm268_vm0, %v1798_v24, 0.0 }
  0xd0   :  { %v867_v0 = vadd.f32 %v866_v58, %v865_v27  ;;  %v547_v27 = vld [vmem:[%s3031_s3 + $0x68] sm:$0xff] }
  0xd1   :  { %v1802_v29 = vadd.f32 %v543_v54, %v397_v11  ;;  %v546_v54 = vld [vmem:[%s3031_s3 + $0x60] sm:$0xff] }
  0xd2   :  { %v869_v13 = vadd.f32 %v868_v39, %v867_v0 }
  0xd3   :  { %v804_v16 = vmul.f32 %v1802_v29, %v1802_v29 }
  0xd4   :  { %v871_v22 = vadd.f32 %v870_v3, %v869_v13 }
  0xd6   :  { %v1692_v62 = vpop.f32.mrf.mxu0  ;;  %v1742_v23 = vpop.f32.mrf.mxu1  ;;  %v873_v46 = vadd.f32 %v872_v20, %v871_v22 }
  0xd7   :  { %v400_v25 = vadd.f32 %v1697_v63, %v1692_v62 }
  0xd9   :  { %v1825_v11 = vadd.f32 %v544_v33, %v400_v25  ;;  %v676_v25 = vadd.f32 %v675_v6, %v674_v15  ;;  %v679_v33 = vsel %vm268_vm0, %v1802_v29, 0.0 }
  0xdb   :  { %v805_v39 = vmul.f32 %v1825_v11, %v1825_v11  ;;  %v681_v3 = vsel %vm268_vm0, %v1825_v11, 0.0 }
  0xde   :  { %v401_v9 = vpop.f32.mrf.mxu0  ;;  %v1807_v38 = vpop.f32.mrf.mxu1 }
  0xdf   :  { %v402_v62 = vadd.f32 %v1697_v63, %v401_v9 }
  0xe1   :  { %v1838_v58 = vadd.f32 %v545_v51, %v402_v62  ;;  %v678_v62 = vadd.f32 %v677_v21, %v676_v25 }
  0xe3   :  { %v806_v51 = vmul.f32 %v1838_v58, %v1838_v58  ;;  %v680_v13 = vadd.f32 %v679_v33, %v678_v62  ;;  %v417_v62 = vadd.f32 %v1697_v63, %v1650_v35 }
  0xe5   :  { %v682_v25 = vadd.f32 %v681_v3, %v680_v13  ;;  %v880_v33 = vsel %vm268_vm0, %v806_v51, 0.0 }
  0xe6   :  { %v404_v30 = vpop.f32.mrf.mxu0  ;;  %v1862_v15 = vpop.f32.mrf.mxu1 }
  0xe7   :  { %v405_v9 = vadd.f32 %v1697_v63, %v404_v30 }
  0xe9   :  { %v1849_v42 = vadd.f32 %v546_v54, %v405_v9  ;;  %v875_v9 = vadd.f32 %v874_v28, %v873_v46  ;;  %v683_v54 = vsel %vm268_vm0, %v1838_v58, 0.0  ;;  %v550_v28 = vld [vmem:[%s3031_s3 + $0x80] sm:$0xff] }
  0xeb   :  { %3058 = vst [vmem:[#allocation2_spill] sm:$0xff] %v1849_v42  ;;  %v807_v20 = vmul.f32 %v1849_v42, %v1849_v42 }
  0xed   :  { %v882_v3 = vsel %vm268_vm0, %v807_v20, 0.0 }
  0xee   :  { %v406_v34 = vpop.f32.mrf.mxu0 }
  0xef   :  { %v407_v30 = vadd.f32 %v1697_v63, %v406_v34  ;;  %v876_v34 = vsel %vm268_vm0, %v804_v16, 0.0  ;;  %v878_v16 = vsel %vm268_vm0, %v805_v39, 0.0  ;;  %v685_v39 = vsel %vm268_vm0, %v1849_v42, 0.0 }
  0xf0   :  { %v877_v22 = vadd.f32 %v876_v34, %v875_v9  ;;  %v684_v34 = vadd.f32 %v683_v54, %v682_v25  ;;  %v549_v54 = vld [vmem:[%s3031_s3 + $0x78] sm:$0xff] }
  0xf1   :  { %v1859_v6 = vadd.f32 %v547_v27, %v407_v30  ;;  %v415_v30 = vadd.f32 %v1697_v63, %v1640_v31  ;;  %v1873_v27 = vpop.f32.mrf.mxu2 }
  0xf2   :  { %v879_v31 = vadd.f32 %v878_v16, %v877_v22  ;;  %v686_v35 = vadd.f32 %v685_v39, %v684_v34  ;;  %v420_v22 = vadd.f32 %v1697_v63, %v1652_v37  ;;  %v422_v39 = vadd.f32 %v1697_v63, %v1658_v40 }
  0xf3   :  { %3059 = vst [vmem:[#allocation3_spill] sm:$0xff] %v1859_v6  ;;  %v808_v46 = vmul.f32 %v1859_v6, %v1859_v6  ;;  %v687_v51 = vsel %vm268_vm0, %v1859_v6, 0.0  ;;  %v1895_v9 = vadd.f32 %v550_v28, %v415_v30  ;;  %v552_v30 = vld [vmem:[%s3031_s3 + $0x90] sm:$0xff]  ;;  %v425_v40 = vadd.f32 %v1697_v63, %v1662_v43 }
  0xf4   :  { %v881_v13 = vadd.f32 %v880_v33, %v879_v31  ;;  %v688_v33 = vadd.f32 %v687_v51, %v686_v35 }
  0xf5   :  { %v884_v20 = vsel %vm268_vm0, %v808_v46, 0.0  ;;  %v811_v46 = vmul.f32 %v1895_v9, %v1895_v9  ;;  %v693_v43 = vsel %vm268_vm0, %v1895_v9, 0.0 }
  0xf6   :  { %v409_v0 = vpop.f32.mrf.mxu0  ;;  %v883_v28 = vadd.f32 %v882_v3, %v881_v13  ;;  %v1923_v3 = vadd.f32 %v552_v30, %v420_v22  ;;  %v554_v13 = vld [vmem:[%s3031_s3 + $0xa0] sm:$0xff] }
  0xf7   :  { %v410_v8 = vadd.f32 %v1697_v63, %v409_v0  ;;  %v1885_v0 = vpop.f32.mrf.mxu3 }
  0xf8   :  { %v885_v34 = vadd.f32 %v884_v20, %v883_v28  ;;  %v890_v28 = vsel %vm268_vm0, %v811_v46, 0.0 }
  0xf9   :  { %v1869_v21 = vadd.f32 %v548_v2, %v410_v8  ;;  %v551_v2 = vld [vmem:[%s3031_s3 + $0x88] sm:$0xff]  ;;  %v1936_v22 = vpop.f32.mrf.mxu2 }
  0xfa   :  { %v1906_v42 = vadd.f32 %v551_v2, %v417_v62  ;;  %v553_v62 = vld [vmem:[%s3031_s3 + $0x98] sm:$0xff] }
  0xfb   :  { %v809_v8 = vmul.f32 %v1869_v21, %v1869_v21  ;;  %v689_v25 = vsel %vm268_vm0, %v1869_v21, 0.0  ;;  %v1940_v20 = vadd.f32 %v553_v62, %v422_v39  ;;  %v813_v39 = vmul.f32 %v1923_v3, %v1923_v3 }
  0xfc   :  { %3060 = vst [vmem:[#allocation4_spill] sm:$0xff] %v1906_v42  ;;  %v690_v2 = vadd.f32 %v689_v25, %v688_v33  ;;  %v427_v25 = vadd.f32 %v1697_v63, %v1670_v47  ;;  %v555_v33 = vld [vmem:[%s3031_s3 + $0xa8] sm:$0xff]  ;;  %v1955_v62 = vadd.f32 %v554_v13, %v425_v40  ;;  %v430_v47 = vadd.f32 %v1697_v63, %v1674_v50  ;;  %v557_v50 = vld [vmem:[%s3031_s3 + $0xb8] sm:$0xff] }
  0xfd   :  { %v886_v37 = vsel %vm268_vm0, %v809_v8, 0.0  ;;  %v812_v8 = vmul.f32 %v1906_v42, %v1906_v42  ;;  %3061 = vst [vmem:[#allocation5_spill] sm:$0xff] %v1940_v20  ;;  %v432_v40 = vadd.f32 %v1697_v63, %v1680_v55  ;;  %v558_v55 = vld [vmem:[%s3031_s3 + $0xc0] sm:$0xff] }
  0xfe   :  { %v411_v16 = vpop.f32.mrf.mxu0  ;;  %v887_v35 = vadd.f32 %v886_v37, %v885_v34  ;;  %3062 = vst [vmem:[#allocation6_spill] sm:$0xff] %v1955_v62 }
  0xff   :  { %v412_v6 = vadd.f32 %v1697_v63, %v411_v16  ;;  %v1921_v16 = vpop.f32.mrf.mxu1  ;;  %v892_v46 = vsel %vm268_vm0, %v812_v8, 0.0  ;;  %v435_v8 = vadd.f32 %v1697_v63, %v1686_v59 }
 0x101   :  { %v1914_v31 = vadd.f32 %v549_v54, %v412_v6 }
 0x103   :  { %v691_v6 = vsel %vm268_vm0, %v1914_v31, 0.0  ;;  %v810_v51 = vmul.f32 %v1914_v31, %v1914_v31 }
 0x104   :  { %v692_v54 = vadd.f32 %v691_v6, %v690_v2  ;;  %v1949_v2 = vpop.f32.mrf.mxu3  ;;  %v695_v6 = vsel %vm268_vm0, %v1906_v42, 0.0  ;;  %v1967_v42 = vadd.f32 %v555_v33, %v427_v25  ;;  %v815_v25 = vmul.f32 %v1955_v62, %v1955_v62 }
 0x105   :  { %v888_v30 = vsel %vm268_vm0, %v810_v51, 0.0  ;;  %v556_v51 = vld [vmem:[%s3031_s3 + $0xb0] sm:$0xff] }
 0x106   :  { %v694_v37 = vadd.f32 %v693_v43, %v692_v54  ;;  %v889_v34 = vadd.f32 %v888_v30, %v887_v35  ;;  %v697_v43 = vsel %vm268_vm0, %v1923_v3, 0.0  ;;  %v814_v30 = vmul.f32 %v1940_v20, %v1940_v20  ;;  %3063 = vst [vmem:[#allocation7_spill] sm:$0xff] %v1967_v42 }
 0x107   :  { %v1981_v33 = vadd.f32 %v556_v51, %v430_v47  ;;  %v1993_v47 = vadd.f32 %v557_v50, %v432_v40  ;;  %v559_v51 = vld [vmem:[%s3031_s3 + $0xc8] sm:$0xff]  ;;  %v440_v40 = vadd.f32 %v1697_v63, %v1742_v23  ;;  %v442_v23 = vadd.f32 %v1697_v63, %v1807_v38 }
 0x108   :  { %v696_v35 = vadd.f32 %v695_v6, %v694_v37  ;;  %v891_v54 = vadd.f32 %v890_v28, %v889_v34  ;;  %v894_v37 = vsel %vm268_vm0, %v813_v39, 0.0  ;;  %v699_v34 = vsel %vm268_vm0, %v1940_v20, 0.0 }
 0x109   :  { %3064 = vst [vmem:[#allocation8_spill] sm:$0xff] %v1981_v33  ;;  %v437_v6 = vadd.f32 %v1697_v63, %v1700_v1  ;;  %v896_v39 = vsel %vm268_vm0, %v814_v30, 0.0  ;;  %v1998_v20 = vadd.f32 %v558_v55, %v435_v8  ;;  %v898_v30 = vsel %vm268_vm0, %v815_v25, 0.0  ;;  %v560_v8 = vld [vmem:[%s3031_s3 + $0xd0] sm:$0xff] }
 0x10a   :  { %v698_v13 = vadd.f32 %v697_v43, %v696_v35  ;;  %v893_v28 = vadd.f32 %v892_v46, %v891_v54  ;;  %v449_v46 = vpop.f32.mrf.mxu1  ;;  %v701_v54 = vsel %vm268_vm0, %v1955_v62, 0.0  ;;  %v816_v43 = vmul.f32 %v1967_v42, %v1967_v42  ;;  %3065 = vst [vmem:[#allocation9_spill] sm:$0xff] %v1993_v47 }
 0x10b   :  { %v2009_v50 = vadd.f32 %v559_v51, %v437_v6  ;;  %v819_v6 = vmul.f32 %v1998_v20, %v1998_v20  ;;  %v561_v51 = vld [vmem:[%s3031_s3 + $0xd8] sm:$0xff] }
 0x10c   :  { %v700_v59 = vadd.f32 %v699_v34, %v698_v13  ;;  %v895_v35 = vadd.f32 %v894_v37, %v893_v28  ;;  %v2000_v28 = vpop.f32.mrf.mxu2  ;;  %v703_v37 = vsel %vm268_vm0, %v1967_v42, 0.0  ;;  %v817_v34 = vmul.f32 %v1981_v33, %v1981_v33  ;;  %v562_v42 = vld [vmem:[%s3031_s3 + $0xe0] sm:$0xff] }
 0x10d   :  { %v900_v25 = vsel %vm268_vm0, %v816_v43, 0.0  ;;  %v820_v38 = vmul.f32 %v2009_v50, %v2009_v50 }
 0x10e   :  { %v702_v1 = vadd.f32 %v701_v54, %v700_v59  ;;  %v897_v13 = vadd.f32 %v896_v39, %v895_v35  ;;  %v2014_v35 = vpop.f32.mrf.mxu3  ;;  %v705_v39 = vsel %vm268_vm0, %v1981_v33, 0.0  ;;  %v818_v54 = vmul.f32 %v1993_v47, %v1993_v47 }
 0x10f   :  { %v902_v43 = vsel %vm268_vm0, %v817_v34, 0.0  ;;  %v445_v33 = vadd.f32 %v1697_v63, %v1862_v15  ;;  %v709_v34 = vsel %vm268_vm0, %v1998_v20, 0.0  ;;  %v906_v15 = vsel %vm268_vm0, %v819_v6, 0.0 }
 0x110   :  { %v704_v55 = vadd.f32 %v703_v37, %v702_v1  ;;  %v899_v59 = vadd.f32 %v898_v30, %v897_v13  ;;  %v707_v30 = vsel %vm268_vm0, %v1993_v47, 0.0  ;;  %v2031_v37 = vadd.f32 %v560_v8, %v440_v40  ;;  %v563_v47 = vld [vmem:[%s3031_s3 + $0xe8] sm:$0xff] }
 0x111   :  { %v447_v40 = vadd.f32 %v1697_v63, %v1921_v16  ;;  %v908_v16 = vsel %vm268_vm0, %v820_v38, 0.0 }
 0x112   :  { %v901_v1 = vadd.f32 %v900_v25, %v899_v59  ;;  %v706_v13 = vadd.f32 %v705_v39, %v704_v55  ;;  %3066 = vst [vmem:[#allocation10_spill] sm:$0xff] %v2031_v37  ;;  %v904_v55 = vsel %vm268_vm0, %v818_v54, 0.0  ;;  %v2043_v25 = vadd.f32 %v561_v51, %v442_v23 }
 0x113   :  { %v711_v54 = vsel %vm268_vm0, %v2009_v50, 0.0  ;;  %v2055_v23 = vadd.f32 %v562_v42, %v445_v33  ;;  %v450_v51 = vadd.f32 %v1697_v63, %v449_v46  ;;  %v2068_v42 = vadd.f32 %v563_v47, %v447_v40 }
 0x114   :  { %v708_v62 = vadd.f32 %v707_v30, %v706_v13  ;;  %v903_v59 = vadd.f32 %v902_v43, %v901_v1  ;;  %3067 = vst [vmem:[#allocation11_spill] sm:$0xff] %v2043_v25  ;;  %v451_v13 = vpop.f32.mrf.mxu1  ;;  %v821_v1 = vmul.f32 %v2031_v37, %v2031_v37  ;;  %v564_v43 = vld [vmem:[%s3031_s3 + $0xf0] sm:$0xff]  ;;  %v2062_v30 = vpop.f32.mrf.mxu2  ;;  %v455_v46 = vadd.f32 %v1697_v63, %v1660_v41 }
 0x115   :  { %v452_v33 = vadd.f32 %v1697_v63, %v451_v13  ;;  %v715_v40 = vsel %vm268_vm0, %v2043_v25, 0.0  ;;  %v823_v41 = vmul.f32 %v2055_v23, %v2055_v23  ;;  %v2086_v13 = vadd.f32 %v564_v43, %v450_v51 }
 0x116   :  { %v710_v8 = vadd.f32 %v709_v34, %v708_v62  ;;  %v905_v39 = vadd.f32 %v904_v55, %v903_v59  ;;  %v713_v59 = vsel %vm268_vm0, %v2031_v37, 0.0  ;;  %v822_v55 = vmul.f32 %v2043_v25, %v2043_v25 }
 0x117   :  { %v910_v47 = vsel %vm268_vm0, %v821_v1, 0.0  ;;  %v717_v1 = vsel %vm268_vm0, %v2055_v23, 0.0  ;;  %v824_v25 = vmul.f32 %v2068_v42, %v2068_v42 }
 0x118   :  { %v712_v6 = vadd.f32 %v711_v54, %v710_v8  ;;  %v907_v62 = vadd.f32 %v906_v15, %v905_v39  ;;  %v565_v15 = vld [vmem:[%s3031_s3 + $0xf8] sm:$0xff]  ;;  %v2076_v8 = vpop.f32.mrf.mxu3  ;;  %v566_v39 = vld [vmem:[%s3031_s3 + $0x100] sm:$0xff]  ;;  %v457_v54 = vadd.f32 %v1697_v63, %v1667_v45 }
 0x119   :  { %v2098_v37 = vadd.f32 %v565_v15, %v452_v33  ;;  %v2100_v51 = vadd.f32 %v566_v39, %v455_v46  ;;  %v568_v33 = vld [vmem:[%s3031_s3 + $0x110] sm:$0xff]  ;;  %v462_v39 = vadd.f32 %v1697_v63, %v1676_v52 }
 0x11a   :  { %v714_v38 = vadd.f32 %v713_v59, %v712_v6  ;;  %v909_v34 = vadd.f32 %v908_v16, %v907_v62  ;;  %v567_v62 = vld [vmem:[%s3031_s3 + $0x108] sm:$0xff]  ;;  %v912_v59 = vsel %vm268_vm0, %v822_v55, 0.0  ;;  %v719_v55 = vsel %vm268_vm0, %v2068_v42, 0.0 }
 0x11b   :  { %3068 = vst [vmem:[#allocation12_spill] sm:$0xff] %v2098_v37 }
 0x11c   :  { %v716_v16 = vadd.f32 %v715_v40, %v714_v38  ;;  %v911_v6 = vadd.f32 %v910_v47, %v909_v34  ;;  %3069 = vst [vmem:[#allocation13_spill] sm:$0xff] %v2100_v51  ;;  %v460_v38 = vadd.f32 %v1697_v63, %v1672_v48  ;;  %v914_v34 = vsel %vm268_vm0, %v823_v41, 0.0 }
 0x11d   :  { %v825_v47 = vmul.f32 %v2086_v13, %v2086_v13  ;;  %v2109_v40 = vadd.f32 %v567_v62, %v457_v54  ;;  %v916_v48 = vsel %vm268_vm0, %v824_v25, 0.0  ;;  %v721_v41 = vsel %vm268_vm0, %v2086_v13, 0.0 }
 0x11e   :  { %v718_v43 = vadd.f32 %v717_v1, %v716_v16  ;;  %v913_v45 = vadd.f32 %v912_v59, %v911_v6  ;;  %v826_v16 = vmul.f32 %v2098_v37, %v2098_v37  ;;  %v827_v54 = vmul.f32 %v2100_v51, %v2100_v51  ;;  %v569_v6 = vld [vmem:[%s3031_s3 + $0x118] sm:$0xff]  ;;  %v2126_v1 = vpop.f32.mrf.mxu2 }
 0x11f   :  { %v2128_v52 = vadd.f32 %v568_v33, %v460_v38  ;;  %v465_v25 = vadd.f32 %v1697_v63, %v1682_v56  ;;  %v725_v38 = vsel %vm268_vm0, %v2100_v51, 0.0  ;;  %v2144_v56 = vadd.f32 %v569_v6, %v462_v39 }
 0x120   :  { %v915_v46 = vadd.f32 %v914_v34, %v913_v45  ;;  %v720_v15 = vadd.f32 %v719_v55, %v718_v43  ;;  %v918_v43 = vsel %vm268_vm0, %v825_v47, 0.0  ;;  %v723_v45 = vsel %vm268_vm0, %v2098_v37, 0.0  ;;  %v570_v55 = vld [vmem:[%s3031_s3 + $0x120] sm:$0xff] }
 0x121   :  { %v828_v34 = vmul.f32 %v2109_v40, %v2109_v40  ;;  %v467_v47 = vadd.f32 %v1697_v63, %v1688_v60  ;;  %v920_v33 = vsel %vm268_vm0, %v826_v16, 0.0  ;;  %v727_v39 = vsel %vm268_vm0, %v2109_v40, 0.0  ;;  %v572_v16 = vld [vmem:[%s3031_s3 + $0x130] sm:$0xff] }
 0x122   :  { %v917_v62 = vadd.f32 %v916_v48, %v915_v46  ;;  %v722_v59 = vadd.f32 %v721_v41, %v720_v15  ;;  %v2140_v48 = vpop.f32.mrf.mxu3  ;;  %v571_v41 = vld [vmem:[%s3031_s3 + $0x128] sm:$0xff]  ;;  %v829_v6 = vmul.f32 %v2128_v52, %v2128_v52  ;;  %v2159_v60 = vadd.f32 %v570_v55, %v465_v25 }
 0x123   :  { %v924_v51 = vsel %vm268_vm0, %v828_v34, 0.0  ;;  %v472_v25 = vadd.f32 %v1697_v63, %v1756_v32  ;;  %v574_v32 = vld [vmem:[%s3031_s3 + $0x140] sm:$0xff] }
 0x124   :  { %v919_v46 = vadd.f32 %v918_v43, %v917_v62  ;;  %v724_v15 = vadd.f32 %v723_v45, %v722_v59  ;;  %v470_v62 = vadd.f32 %v1697_v63, %v1706_v4  ;;  %v922_v45 = vsel %vm268_vm0, %v827_v54, 0.0  ;;  %3070 = vst [vmem:[#allocation14_spill] sm:$0xff] %v2159_v60 }
 0x125   :  { %v830_v54 = vmul.f32 %v2144_v56, %v2144_v56 }
 0x126   :  { %v726_v59 = vadd.f32 %v725_v38, %v724_v15  ;;  %v921_v43 = vadd.f32 %v920_v33, %v919_v46  ;;  %v729_v46 = vsel %vm268_vm0, %v2128_v52, 0.0  ;;  %v2169_v15 = vadd.f32 %v571_v41, %v467_v47  ;;  %v573_v38 = vld [vmem:[%s3031_s3 + $0x138] sm:$0xff] }
 0x127   :  { %v2173_v55 = vadd.f32 %v572_v16, %v470_v62  ;;  %v831_v47 = vmul.f32 %v2159_v60, %v2159_v60  ;;  %v475_v41 = vadd.f32 %v1697_v63, %v1819_v5  ;;  %v477_v62 = vadd.f32 %v1697_v63, %v1873_v27  ;;  %v575_v5 = vld [vmem:[%s3031_s3 + $0x148] sm:$0xff] }
 0x128   :  { %v728_v37 = vadd.f32 %v727_v39, %v726_v59  ;;  %v923_v4 = vadd.f32 %v922_v45, %v921_v43  ;;  %v926_v59 = vsel %vm268_vm0, %v829_v6, 0.0  ;;  %v731_v43 = vsel %vm268_vm0, %v2144_v56, 0.0  ;;  %v489_v45 = vpop.f32.mrf.mxu2 }
 0x129   :  { %v928_v39 = vsel %vm268_vm0, %v830_v54, 0.0  ;;  %v733_v6 = vsel %vm268_vm0, %v2159_v60, 0.0  ;;  %v832_v16 = vmul.f32 %v2169_v15, %v2169_v15  ;;  %v833_v27 = vmul.f32 %v2173_v55, %v2173_v55  ;;  %v576_v60 = vld [vmem:[%s3031_s3 + $0x150] sm:$0xff] }
 0x12a   :  { %v730_v34 = vadd.f32 %v729_v46, %v728_v37  ;;  %v925_v33 = vadd.f32 %v924_v51, %v923_v4  ;;  %v2195_v4 = vadd.f32 %v573_v38, %v472_v25  ;;  %v930_v54 = vsel %vm268_vm0, %v831_v47, 0.0 }
 0x12b   :  { %v480_v25 = vadd.f32 %v1697_v63, %v1936_v22  ;;  %v2211_v38 = vadd.f32 %v575_v5, %v477_v62  ;;  %v737_v47 = vsel %vm268_vm0, %v2173_v55, 0.0  ;;  %v934_v22 = vsel %vm268_vm0, %v833_v27, 0.0  ;;  %v577_v62 = vld [vmem:[%s3031_s3 + $0x158] sm:$0xff] }
 0x12c   :  { %v732_v37 = vadd.f32 %v731_v43, %v730_v34  ;;  %v927_v51 = vadd.f32 %v926_v59, %v925_v33  ;;  %v2202_v33 = vpop.f32.mrf.mxu3  ;;  %v735_v59 = vsel %vm268_vm0, %v2169_v15, 0.0  ;;  %v2207_v43 = vadd.f32 %v574_v32, %v475_v41 }
 0x12d   :  { %3072 = vst [vmem:[#allocation16_spill] sm:$0xff] %v2211_v38  ;;  %v834_v41 = vmul.f32 %v2195_v4, %v2195_v4  ;;  %v482_v32 = vadd.f32 %v1697_v63, %v2000_v28  ;;  %v836_v28 = vmul.f32 %v2211_v38, %v2211_v38 }
 0x12e   :  { %v734_v46 = vadd.f32 %v733_v6, %v732_v37  ;;  %v929_v34 = vadd.f32 %v928_v39, %v927_v51  ;;  %3071 = vst [vmem:[#allocation15_spill] sm:$0xff] %v2207_v43  ;;  %v932_v39 = vsel %vm268_vm0, %v832_v16, 0.0  ;;  %v739_v16 = vsel %vm268_vm0, %v2195_v4, 0.0 }
 0x130   :  { %v931_v37 = vadd.f32 %v930_v54, %v929_v34  ;;  %v736_v51 = vadd.f32 %v735_v59, %v734_v46  ;;  %v835_v46 = vmul.f32 %v2207_v43, %v2207_v43  ;;  %v2231_v34 = vadd.f32 %v576_v60, %v480_v25 }
 0x131   :  { %v485_v54 = vadd.f32 %v1697_v63, %v2062_v30  ;;  %v487_v60 = vadd.f32 %v1697_v63, %v2126_v1  ;;  %v743_v30 = vsel %vm268_vm0, %v2211_v38, 0.0  ;;  %v940_v1 = vsel %vm268_vm0, %v836_v28, 0.0 }
 0x132   :  { %v738_v6 = vadd.f32 %v737_v47, %v736_v51  ;;  %v933_v5 = vadd.f32 %v932_v39, %v931_v37  ;;  %v578_v37 = vld [vmem:[%s3031_s3 + $0x160] sm:$0xff]  ;;  %v936_v51 = vsel %vm268_vm0, %v834_v41, 0.0  ;;  %v741_v39 = vsel %vm268_vm0, %v2207_v43, 0.0 }
 0x133   :  { %v2243_v47 = vadd.f32 %v577_v62, %v482_v32  ;;  %v938_v41 = vsel %vm268_vm0, %v835_v46, 0.0  ;;  %v2255_v32 = vadd.f32 %v578_v37, %v485_v54  ;;  %v490_v62 = vadd.f32 %v1697_v63, %v489_v45 }
 0x134   :  { %v740_v27 = vadd.f32 %v739_v16, %v738_v6  ;;  %v935_v59 = vadd.f32 %v934_v22, %v933_v5  ;;  %v579_v22 = vld [vmem:[%s3031_s3 + $0x168] sm:$0xff]  ;;  %v491_v5 = vpop.f32.mrf.mxu2  ;;  %v837_v16 = vmul.f32 %v2231_v34, %v2231_v34  ;;  %v745_v46 = vsel %vm268_vm0, %v2231_v34, 0.0 }
 0x135   :  { %3073 = vst [vmem:[#allocation17_spill] sm:$0xff] %v2243_v47  ;;  %v2268_v54 = vadd.f32 %v579_v22, %v487_v60  ;;  %v492_v45 = vadd.f32 %v1697_v63, %v491_v5  ;;  %v495_v28 = vadd.f32 %v1697_v63, %v1678_v53  ;;  %v747_v60 = vsel %vm268_vm0, %v2243_v47, 0.0 }
 0x136   :  { %v742_v25 = vadd.f32 %v741_v39, %v740_v27  ;;  %v937_v6 = vadd.f32 %v936_v51, %v935_v59  ;;  %v580_v27 = vld [vmem:[%s3031_s3 + $0x170] sm:$0xff]  ;;  %v2262_v59 = vpop.f32.mrf.mxu3  ;;  %v838_v51 = vmul.f32 %v2243_v47, %v2243_v47  ;;  %v839_v22 = vmul.f32 %v2255_v32, %v2255_v32 }
 0x137   :  { %v2284_v5 = vadd.f32 %v580_v27, %v490_v62  ;;  %v497_v53 = vadd.f32 %v1697_v63, %v1684_v57 }
 0x138   :  { %v744_v43 = vadd.f32 %v743_v30, %v742_v25  ;;  %v939_v38 = vadd.f32 %v938_v41, %v937_v6  ;;  %v581_v30 = vld [vmem:[%s3031_s3 + $0x178] sm:$0xff]  ;;  %v582_v25 = vld [vmem:[%s3031_s3 + $0x180] sm:$0xff]  ;;  %v942_v6 = vsel %vm268_vm0, %v837_v16, 0.0  ;;  %v583_v41 = vld [vmem:[%s3031_s3 + $0x188] sm:$0xff]  ;;  %v749_v16 = vsel %vm268_vm0, %v2255_v32, 0.0 }
 0x139   :  { %3074 = vst [vmem:[#allocation18_spill] sm:$0xff] %v2284_v5  ;;  %v2296_v47 = vadd.f32 %v581_v30, %v492_v45  ;;  %v2298_v62 = vadd.f32 %v582_v25, %v495_v28  ;;  %v584_v45 = vld [vmem:[%s3031_s3 + $0x190] sm:$0xff]  ;;  %v502_v25 = vadd.f32 %v1697_v63, %v1717_v10 }
 0x13a   :  { %v746_v37 = vadd.f32 %v745_v46, %v744_v43  ;;  %v941_v39 = vadd.f32 %v940_v1, %v939_v38  ;;  %v944_v1 = vsel %vm268_vm0, %v838_v51, 0.0  ;;  %v840_v46 = vmul.f32 %v2268_v54, %v2268_v54 }
 0x13b   :  { %3075 = vst [vmem:[#allocation19_spill] sm:$0xff] %v2296_v47  ;;  %v751_v51 = vsel %vm268_vm0, %v2268_v54, 0.0 }
 0x13c   :  { %v748_v43 = vadd.f32 %v747_v60, %v746_v37  ;;  %v943_v38 = vadd.f32 %v942_v6, %v941_v39  ;;  %v500_v37 = vadd.f32 %v1697_v63, %v1690_v61  ;;  %v946_v39 = vsel %vm268_vm0, %v839_v22, 0.0 }
 0x13d   :  { %v841_v6 = vmul.f32 %v2284_v5, %v2284_v5  ;;  %v2307_v60 = vadd.f32 %v583_v41, %v497_v53  ;;  %v948_v61 = vsel %vm268_vm0, %v840_v46, 0.0  ;;  %v753_v22 = vsel %vm268_vm0, %v2284_v5, 0.0 }
 0x13e   :  { %v945_v27 = vadd.f32 %v944_v1, %v943_v38  ;;  %v750_v57 = vadd.f32 %v749_v16, %v748_v43  ;;  %v842_v43 = vmul.f32 %v2296_v47, %v2296_v47  ;;  %v843_v53 = vmul.f32 %v2298_v62, %v2298_v62  ;;  %v585_v38 = vld [vmem:[%s3031_s3 + $0x198] sm:$0xff]  ;;  %v2324_v16 = vpop.f32.mrf.mxu3 }
 0x13f   :  { %v2326_v10 = vadd.f32 %v584_v45, %v500_v37  ;;  %v505_v46 = vadd.f32 %v1697_v63, %v1771_v49  ;;  %v757_v37 = vsel %vm268_vm0, %v2298_v62, 0.0  ;;  %v2340_v45 = vadd.f32 %v585_v38, %v502_v25 }
 0x140   :  { %v947_v28 = vadd.f32 %v946_v39, %v945_v27  ;;  %v752_v30 = vadd.f32 %v751_v51, %v750_v57  ;;  %v950_v27 = vsel %vm268_vm0, %v841_v6, 0.0  ;;  %v755_v57 = vsel %vm268_vm0, %v2296_v47, 0.0  ;;  %v586_v51 = vld [vmem:[%s3031_s3 + $0x1a0] sm:$0xff] }
 0x141   :  { %v844_v39 = vmul.f32 %v2307_v60, %v2307_v60  ;;  %v507_v49 = vadd.f32 %v1697_v63, %v1833_v19  ;;  %v952_v6 = vsel %vm268_vm0, %v842_v43, 0.0  ;;  %v845_v25 = vmul.f32 %v2326_v10, %v2326_v10 }
 0x142   :  { %v949_v41 = vadd.f32 %v948_v61, %v947_v28  ;;  %v754_v1 = vadd.f32 %v753_v22, %v752_v30  ;;  %v954_v61 = vsel %vm268_vm0, %v843_v53, 0.0  ;;  %v587_v22 = vld [vmem:[%s3031_s3 + $0x1a8] sm:$0xff]  ;;  %v2353_v38 = vadd.f32 %v586_v51, %v505_v46  ;;  %v588_v53 = vld [vmem:[%s3031_s3 + $0x1b0] sm:$0xff] }
 0x143   :  { %v510_v19 = vadd.f32 %v1697_v63, %v1885_v0  ;;  %v956_v43 = vsel %vm268_vm0, %v844_v39, 0.0  ;;  %v512_v46 = vadd.f32 %v1697_v63, %v1949_v2  ;;  %v589_v0 = vld [vmem:[%s3031_s3 + $0x1b8] sm:$0xff]  ;;  %v515_v39 = vadd.f32 %v1697_v63, %v2014_v35  ;;  %v590_v2 = vld [vmem:[%s3031_s3 + $0x1c0] sm:$0xff] }
 0x144   :  { %v951_v28 = vadd.f32 %v950_v27, %v949_v41  ;;  %v756_v30 = vadd.f32 %v755_v57, %v754_v1  ;;  %v759_v41 = vsel %vm268_vm0, %v2307_v60, 0.0  ;;  %v761_v57 = vsel %vm268_vm0, %v2326_v10, 0.0 }
 0x145   :  { %v958_v51 = vsel %vm268_vm0, %v845_v25, 0.0 }
 0x146   :  { %v758_v47 = vadd.f32 %v757_v37, %v756_v30  ;;  %v953_v5 = vadd.f32 %v952_v6, %v951_v28  ;;  %v846_v28 = vmul.f32 %v2340_v45, %v2340_v45  ;;  %v2365_v30 = vadd.f32 %v587_v22, %v507_v49 }
 0x147   :  { %v763_v37 = vsel %vm268_vm0, %v2340_v45, 0.0  ;;  %v847_v49 = vmul.f32 %v2353_v38, %v2353_v38  ;;  %v2379_v6 = vadd.f32 %v588_v53, %v510_v19  ;;  %v2391_v19 = vadd.f32 %v589_v0, %v512_v46  ;;  %v591_v53 = vld [vmem:[%s3031_s3 + $0x1c8] sm:$0xff] }
 0x148   :  { %v760_v1 = vadd.f32 %v759_v41, %v758_v47  ;;  %v955_v27 = vadd.f32 %v954_v61, %v953_v5  ;;  %v517_v61 = vadd.f32 %v1697_v63, %v2076_v8  ;;  %v529_v41 = vpop.f32.mrf.mxu3  ;;  %v960_v25 = vsel %vm268_vm0, %v846_v28, 0.0 }
 0x149   :  { %v767_v28 = vsel %vm268_vm0, %v2365_v30, 0.0  ;;  %v520_v46 = vadd.f32 %v1697_v63, %v2140_v48 }
 0x14a   :  { %v762_v47 = vadd.f32 %v761_v57, %v760_v1  ;;  %v957_v5 = vadd.f32 %v956_v43, %v955_v27  ;;  %v765_v43 = vsel %vm268_vm0, %v2353_v38, 0.0  ;;  %v848_v1 = vmul.f32 %v2365_v30, %v2365_v30 }
 0x14b   :  { %v2396_v27 = vadd.f32 %v590_v2, %v515_v39  ;;  %v2405_v0 = vadd.f32 %v591_v53, %v517_v61  ;;  %v592_v39 = vld [vmem:[%s3031_s3 + $0x1d0] sm:$0xff]  ;;  %v593_v61 = vld [vmem:[%s3031_s3 + $0x1d8] sm:$0xff]  ;;  %v771_v53 = vsel %vm268_vm0, %v2391_v19, 0.0 }
 0x14c   :  { %v764_v35 = vadd.f32 %v763_v37, %v762_v47  ;;  %v959_v22 = vadd.f32 %v958_v51, %v957_v5  ;;  %v962_v47 = vsel %vm268_vm0, %v847_v49, 0.0  ;;  %v849_v5 = vmul.f32 %v2379_v6, %v2379_v6 }
 0x14d   :  { %v964_v2 = vsel %vm268_vm0, %v848_v1, 0.0  ;;  %v769_v49 = vsel %vm268_vm0, %v2379_v6, 0.0  ;;  %v851_v48 = vmul.f32 %v2396_v27, %v2396_v27 }
 0x14e   :  { %v766_v8 = vadd.f32 %v765_v43, %v764_v35  ;;  %v961_v57 = vadd.f32 %v960_v25, %v959_v22  ;;  %v850_v35 = vmul.f32 %v2391_v19, %v2391_v19  ;;  %v522_v22 = vadd.f32 %v1697_v63, %v2202_v33 }
 0x14f   :  { %v966_v1 = vsel %vm268_vm0, %v849_v5, 0.0  ;;  %v852_v33 = vmul.f32 %v2405_v0, %v2405_v0  ;;  %v773_v5 = vsel %vm268_vm0, %v2396_v27, 0.0 }
 0x150   :  { %v963_v51 = vadd.f32 %v962_v47, %v961_v57  ;;  %v768_v37 = vadd.f32 %v767_v28, %v766_v8  ;;  %v2425_v8 = vadd.f32 %v592_v39, %v520_v46  ;;  %v525_v57 = vadd.f32 %v1697_v63, %v2262_v59 }
 0x151   :  { %v527_v46 = vadd.f32 %v1697_v63, %v2324_v16  ;;  %v970_v59 = vsel %vm268_vm0, %v851_v48, 0.0  ;;  %v972_v16 = vsel %vm268_vm0, %v852_v33, 0.0 }
 0x152   :  { %v770_v25 = vadd.f32 %v769_v49, %v768_v37  ;;  %v965_v43 = vadd.f32 %v964_v2, %v963_v51  ;;  %3076 = vst [vmem:[#allocation20_spill] sm:$0xff] %v2425_v8  ;;  %v594_v37 = vld [vmem:[%s3031_s3 + $0x1e0] sm:$0xff]  ;;  %v968_v51 = vsel %vm268_vm0, %v850_v35, 0.0  ;;  %v2437_v2 = vadd.f32 %v593_v61, %v522_v22 }
 0x153   :  { %v775_v35 = vsel %vm268_vm0, %v2405_v0, 0.0  ;;  %v2449_v22 = vadd.f32 %v594_v37, %v525_v57  ;;  %v530_v61 = vadd.f32 %v1697_v63, %v529_v41  ;;  %v1486_v63 = vld [vmem:[%s3029_s2] ss:$0 sm:$0xff]  ;;  %v597_v37 = vld [vmem:[%s3031_s3 + $0x1f8] sm:$0xff] }
 0x154   :  { %v772_v47 = vadd.f32 %v771_v53, %v770_v25  ;;  %v967_v28 = vadd.f32 %v966_v1, %v965_v43  ;;  %3077 = vst [vmem:[#allocation21_spill] sm:$0xff] %v2437_v2  ;;  %v595_v25 = vld [vmem:[%s3031_s3 + $0x1e8] sm:$0xff]  ;;  %v531_v43 = vpop.f32.mrf.mxu3  ;;  %v853_v1 = vmul.f32 %v2425_v8, %v2425_v8 }
 0x155   :  { %3078 = vst [vmem:[#allocation22_spill] sm:$0xff] %v2449_v22  ;;  %v532_v41 = vadd.f32 %v1486_v63, %v531_v43 }
 0x156   :  { %v774_v39 = vadd.f32 %v773_v5, %v772_v47  ;;  %v969_v49 = vadd.f32 %v968_v51, %v967_v28  ;;  %v596_v47 = vld [vmem:[%s3031_s3 + $0x1f0] sm:$0xff]  ;;  %v777_v28 = vsel %vm268_vm0, %v2425_v8, 0.0  ;;  %v854_v51 = vmul.f32 %v2437_v2, %v2437_v2 }
 0x157   :  { %v2460_v5 = vadd.f32 %v595_v25, %v527_v46  ;;  %v855_v46 = vmul.f32 %v2449_v22, %v2449_v22 }
 0x158   :  { %v776_v48 = vadd.f32 %v775_v35, %v774_v39  ;;  %v971_v53 = vadd.f32 %v970_v59, %v969_v49  ;;  %v974_v59 = vsel %vm268_vm0, %v853_v1, 0.0  ;;  %v779_v39 = vsel %vm268_vm0, %v2437_v2, 0.0 }
 0x159   :  { %3079 = vst [vmem:[#allocation23_spill] sm:$0xff] %v2460_v5  ;;  %v2473_v49 = vadd.f32 %v596_v47, %v530_v61  ;;  %v976_v43 = vsel %vm268_vm0, %v854_v51, 0.0  ;;  %v978_v63 = vsel %vm268_vm0, %v855_v46, 0.0  ;;  %v783_v61 = vsel %vm268_vm0, %v2460_v5, 0.0 }
 0x15a   :  { %v778_v57 = vadd.f32 %v777_v28, %v776_v48  ;;  %v973_v33 = vadd.f32 %v972_v16, %v971_v53  ;;  %v781_v16 = vsel %vm268_vm0, %v2449_v22, 0.0  ;;  %v856_v48 = vmul.f32 %v2460_v5, %v2460_v5 }
 0x15b   :  { %3080 = vst [vmem:[#allocation24_spill] sm:$0xff] %v2473_v49  ;;  %v2480_v53 = vadd.f32 %v597_v37, %v532_v41  ;;  %v857_v47 = vmul.f32 %v2473_v49, %v2473_v49 }
 0x15c   :  { %v780_v25 = vadd.f32 %v779_v39, %v778_v57  ;;  %v975_v35 = vadd.f32 %v974_v59, %v973_v33  ;;  %v980_v33 = vsel %vm268_vm0, %v856_v48, 0.0  ;;  %v785_v59 = vsel %vm268_vm0, %v2473_v49, 0.0 }
 0x15d   :  { %v858_v41 = vmul.f32 %v2480_v53, %v2480_v53  ;;  %v982_v46 = vsel %vm268_vm0, %v857_v47, 0.0 }
 0x15e   :  { %v977_v1 = vadd.f32 %v976_v43, %v975_v35  ;;  %v782_v28 = vadd.f32 %v781_v16, %v780_v25  ;;  %v787_v25 = vsel %vm268_vm0, %v2480_v53, 0.0 }
 0x15f   :  { %v984_v16 = vsel %vm268_vm0, %v858_v41, 0.0 }
 0x160   :  { %v979_v57 = vadd.f32 %v978_v63, %v977_v1  ;;  %v784_v51 = vadd.f32 %v783_v61, %v782_v28 }
 0x162   :  { %v981_v37 = vadd.f32 %v980_v33, %v979_v57  ;;  %v786_v39 = vadd.f32 %v785_v59, %v784_v51 }
 0x164   :  { %v983_v35 = vadd.f32 %v982_v46, %v981_v37  ;;  %v788_v43 = vadd.f32 %v787_v25, %v786_v39 }
 0x166   :  { %v789_v1 = vrot.slane %v788_v43, 4  ;;  %v985_v28 = vadd.f32 %v984_v16, %v983_v35 }
 0x168   :  { %v790_v48 = vadd.f32 %v789_v1, %v788_v43  ;;  %v986_v63 = vrot.slane %v985_v28, 4 }
 0x16a   :  { %v791_v61 = vrot.slane %v790_v48, 2  ;;  %v987_v49 = vadd.f32 %v986_v63, %v985_v28 }
 0x16c   :  { %v792_v5 = vadd.f32 %v791_v61, %v790_v48  ;;  %v988_v22 = vrot.slane %v987_v49, 2 }
 0x16e   :  { %v793_v2 = vrot.slane %v792_v5, 1  ;;  %v989_v57 = vadd.f32 %v988_v22, %v987_v49  ;;  %v1071_v22 = vld [vmem:[%s3033_s4] sm:$0x1] }
 0x170   :  { %v794_v51 = vadd.f32 %v793_v2, %v792_v5  ;;  %v990_v33 = vrot.slane %v989_v57, 1 }
 0x172   :  { %v991_v47 = vadd.f32 %v990_v33, %v989_v57  ;;  %v2496_v59 = vmul.f32 0.001953125, %v794_v51 }
 0x174   :  { %v993_v8 = vmul.f32 0.001953125, %v991_v47  ;;  %v994_v37 = vmul.f32 %v2496_v59, %v2496_v59  ;;  %v1008_v28 = vsub.f32 %v1712_v7, %v2496_v59  ;;  %v1009_v48 = vsub.f32 %v1725_v14, %v2496_v59 }
 0x175   :  { %v1010_v63 = vsub.f32 %v1733_v18, %v2496_v59  ;;  %v1011_v61 = vsub.f32 %v1748_v26, %v2496_v59  ;;  %v1012_v7 = vsub.f32 %v1762_v36, %v2496_v59  ;;  %v1070_v14 = vsub.f32 %v2480_v53, %v2496_v59 }
 0x176   :  { %v995_v41 = vsub.f32 %v993_v8, %v994_v37  ;;  %v1007_v8 = vsub.f32 %v1720_v12, %v2496_v59  ;;  %v2521_v12 = vld [vmem:[%s3032_s5] ss:$0 sm:$0xff]  ;;  %v1013_v26 = vsub.f32 %v1766_v44, %v2496_v59  ;;  %v1014_v37 = vsub.f32 %v1788_v17, %v2496_v59 }
 0x178   :  { %v996_v39 = vadd.f32 1e-05, %v995_v41  ;;  %v1015_v41 = vsub.f32 %v1798_v24, %v2496_v59 }
 0x17a   :  { %1484 = vrsqrt.f32 %v996_v39  ;;  %vm1003_vm2 = vweird.f32 %v996_v39 }
 0x180   :  { %v1485_v46 = vpop.eup %1484 }
 0x181   :  { %v998_v25 = vmul.f32 %v1485_v46, %v996_v39  ;;  %vm1004_vm1 = vweird.f32 %v1485_v46 }
 0x182   :  { %vm1005_vm3 = vmor %vm1003_vm2, %vm1004_vm1 }
 0x183   :  { %v999_v35 = vmul.f32 %v1485_v46, %v998_v25 }
 0x185   :  { %v1000_v43 = vmul.f32 0.5, %v999_v35  ;;  %v1016_v35 = vsub.f32 %v1802_v29, %v2496_v59 }
 0x187   :  { %v1001_v16 = vsub.f32 1.5, %v1000_v43  ;;  %v1017_v43 = vsub.f32 %v1825_v11, %v2496_v59  ;;  %v3081_v11 = vld [vmem:[#allocation2_spill] sm:$0xff] }
 0x189   :  { %v1002_v1 = vmul.f32 %v1485_v46, %v1001_v16 }
 0x18b   :  { %v1006_v2 = vsel %vm1005_vm3, %v1485_v46, %v1002_v1 }
 0x18c   :  { %v1072_v5 = vmul.f32 %v1071_v22, %v1006_v2  ;;  %v1018_v2 = vsub.f32 %v1838_v58, %v2496_v59  ;;  %v3082_v58 = vld [vmem:[#allocation3_spill] sm:$0xff] }
 0x18e   :  { %v2503_v49 = vperm.slane %v1072_v5, 0  ;;  %v1019_v5 = vsub.f32 %v3081_v11, %v2496_v59  ;;  %v3087_v11 = vld [vmem:[#allocation8_spill] sm:$0xff] }
 0x190   :  { %v1074_v57 = vmul.f32 %v2503_v49, %v1007_v8  ;;  %v1075_v51 = vmul.f32 %v2503_v49, %v1008_v28  ;;  %v1076_v33 = vmul.f32 %v2503_v49, %v1009_v48  ;;  %v1077_v18 = vmul.f32 %v2503_v49, %v1010_v63 }
 0x191   :  { %v1078_v47 = vmul.f32 %v2503_v49, %v1011_v61  ;;  %v1079_v39 = vmul.f32 %v2503_v49, %v1012_v7  ;;  %v2537_v36 = vmul.f32 %v2503_v49, %v1070_v14  ;;  %v1080_v53 = vmul.f32 %v2503_v49, %v1013_v26 }
 0x192   :  { %v1142_v46 = vadd.f32 %v2521_v12, %v1074_v57  ;;  %v1143_v25 = vadd.f32 %v2521_v12, %v1075_v51  ;;  %v1144_v44 = vadd.f32 %v2521_v12, %v1076_v33  ;;  %v1081_v17 = vmul.f32 %v2503_v49, %v1014_v37 }
 0x193   :  { %v1145_v24 = vadd.f32 %v2521_v12, %v1077_v18  ;;  %v1082_v16 = vmul.f32 %v2503_v49, %v1015_v41  ;;  %v1146_v1 = vadd.f32 %v2521_v12, %v1078_v47  ;;  %v1083_v29 = vmul.f32 %v2503_v49, %v1016_v35 }
 0x194   :  { %1206 = vst.msk [vmem:[%s3034_s6] sm:$0xff] %vm268_vm0, %v1142_v46  ;;  %v1147_v22 = vadd.f32 %v2521_v12, %v1079_v39  ;;  %v1084_v8 = vmul.f32 %v2503_v49, %v1017_v43  ;;  %v1148_v28 = vadd.f32 %v2521_v12, %v1080_v53  ;;  %v1020_v48 = vsub.f32 %v3082_v58, %v2496_v59  ;;  %v3088_v58 = vld [vmem:[#allocation9_spill] sm:$0xff] }
 0x195   :  { %1207 = vst.msk [vmem:[%s3034_s6 + $0x8] sm:$0xff] %vm268_vm0, %v1143_v25  ;;  %v1085_v63 = vmul.f32 %v2503_v49, %v1018_v2  ;;  %v1149_v61 = vadd.f32 %v2521_v12, %v1081_v17  ;;  %v1021_v57 = vsub.f32 %v1869_v21, %v2496_v59  ;;  %v1086_v51 = vmul.f32 %v2503_v49, %v1019_v5  ;;  %v3084_v25 = vld [vmem:[#allocation5_spill] sm:$0xff] }
 0x196   :  { %1208 = vst.msk [vmem:[%s3034_s6 + $0x10] sm:$0xff] %vm268_vm0, %v1144_v44  ;;  %v1150_v33 = vadd.f32 %v2521_v12, %v1082_v16  ;;  %v1022_v7 = vsub.f32 %v1914_v31, %v2496_v59  ;;  %v1087_v14 = vmul.f32 %v2503_v49, %v1020_v48  ;;  %v1151_v18 = vadd.f32 %v2521_v12, %v1083_v29  ;;  %v3083_v31 = vld [vmem:[#allocation4_spill] sm:$0xff] }
 0x197   :  { %1209 = vst.msk [vmem:[%s3034_s6 + $0x18] sm:$0xff] %vm268_vm0, %v1145_v24  ;;  %v1023_v21 = vsub.f32 %v1895_v9, %v2496_v59  ;;  %v1088_v26 = vmul.f32 %v2503_v49, %v1021_v57  ;;  %v1152_v47 = vadd.f32 %v2521_v12, %v1084_v8  ;;  %v1024_v37 = vsub.f32 %v3083_v31, %v2496_v59 }
 0x198   :  { %1210 = vst.msk [vmem:[%s3034_s6 + $0x20] sm:$0xff] %vm268_vm0, %v1146_v1  ;;  %v1089_v41 = vmul.f32 %v2503_v49, %v1022_v7  ;;  %v1153_v39 = vadd.f32 %v2521_v12, %v1085_v63  ;;  %v1025_v9 = vsub.f32 %v1923_v3, %v2496_v59  ;;  %v1154_v46 = vadd.f32 %v2521_v12, %v1086_v51  ;;  %v3085_v3 = vld [vmem:[#allocation6_spill] sm:$0xff]  ;;  %v3086_v1 = vld [vmem:[#allocation7_spill] sm:$0xff] }
 0x199   :  { %1211 = vst.msk [vmem:[%s3034_s6 + $0x28] sm:$0xff] %vm268_vm0, %v1147_v22  ;;  %v1090_v53 = vmul.f32 %v2503_v49, %v1023_v21  ;;  %v1026_v44 = vsub.f32 %v3084_v25, %v2496_v59  ;;  %v1091_v35 = vmul.f32 %v2503_v49, %v1024_v37  ;;  %v1155_v17 = vadd.f32 %v2521_v12, %v1087_v14 }
 0x19a   :  { %1212 = vst.msk [vmem:[%s3034_s6 + $0x30] sm:$0xff] %vm268_vm0, %v1148_v28  ;;  %v1027_v24 = vsub.f32 %v3085_v3, %v2496_v59  ;;  %v1092_v43 = vmul.f32 %v2503_v49, %v1025_v9  ;;  %v1156_v16 = vadd.f32 %v2521_v12, %v1088_v26  ;;  %v1028_v2 = vsub.f32 %v3086_v1, %v2496_v59 }
 0x19b   :  { %1213 = vst.msk [vmem:[%s3034_s6 + $0x38] sm:$0xff] %vm268_vm0, %v1149_v61  ;;  %v1093_v29 = vmul.f32 %v2503_v49, %v1026_v44  ;;  %v1157_v22 = vadd.f32 %v2521_v12, %v1089_v41  ;;  %v1029_v5 = vsub.f32 %v3087_v11, %v2496_v59  ;;  %v1158_v28 = vadd.f32 %v2521_v12, %v1090_v53 }
 0x19c   :  { %1214 = vst.msk [vmem:[%s3034_s6 + $0x40] sm:$0xff] %vm268_vm0, %v1150_v33  ;;  %v1094_v8 = vmul.f32 %v2503_v49, %v1027_v24  ;;  %v1030_v48 = vsub.f32 %v3088_v58, %v2496_v59  ;;  %v1095_v63 = vmul.f32 %v2503_v49, %v1028_v2  ;;  %v1159_v61 = vadd.f32 %v2521_v12, %v1091_v35 }
 0x19d   :  { %1215 = vst.msk [vmem:[%s3034_s6 + $0x48] sm:$0xff] %vm268_vm0, %v1151_v18  ;;  %v2657_v57 = vadd.f32 %v2521_v12, %v2537_v36  ;;  %v1031_v51 = vsub.f32 %v1998_v20, %v2496_v59  ;;  %v1096_v33 = vmul.f32 %v2503_v49, %v1029_v5  ;;  %v1160_v7 = vadd.f32 %v2521_v12, %v1092_v43  ;;  %v3089_v20 = vld [vmem:[#allocation10_spill] sm:$0xff] }
 0x19e   :  { %1216 = vst.msk [vmem:[%s3034_s6 + $0x50] sm:$0xff] %vm268_vm0, %v1152_v47  ;;  %v1032_v36 = vsub.f32 %v2009_v50, %v2496_v59  ;;  %v1097_v14 = vmul.f32 %v2503_v49, %v1030_v48  ;;  %v1161_v18 = vadd.f32 %v2521_v12, %v1093_v29  ;;  %v1033_v21 = vsub.f32 %v3089_v20, %v2496_v59  ;;  %v3090_v50 = vld [vmem:[#allocation11_spill] sm:$0xff] }
 0x19f   :  { %1217 = vst.msk [vmem:[%s3034_s6 + $0x58] sm:$0xff] %vm268_vm0, %v1153_v39  ;;  %v1098_v26 = vmul.f32 %v2503_v49, %v1031_v51  ;;  %v1162_v47 = vadd.f32 %v2521_v12, %v1094_v8  ;;  %v1034_v31 = vsub.f32 %v3090_v50, %v2496_v59  ;;  %v1163_v41 = vadd.f32 %v2521_v12, %v1095_v63 }
 0x1a0   :  { %1218 = vst.msk [vmem:[%s3034_s6 + $0x60] sm:$0xff] %vm268_vm0, %v1154_v46  ;;  %v1099_v37 = vmul.f32 %v2503_v49, %v1032_v36  ;;  %v1035_v39 = vsub.f32 %v2055_v23, %v2496_v59  ;;  %v1100_v9 = vmul.f32 %v2503_v49, %v1033_v21  ;;  %v1164_v53 = vadd.f32 %v2521_v12, %v1096_v33 }
 0x1a1   :  { %1219 = vst.msk [vmem:[%s3034_s6 + $0x68] sm:$0xff] %vm268_vm0, %v1155_v17  ;;  %v1036_v46 = vsub.f32 %v2068_v42, %v2496_v59  ;;  %v1101_v25 = vmul.f32 %v2503_v49, %v1034_v31  ;;  %v1165_v44 = vadd.f32 %v2521_v12, %v1097_v14  ;;  %v1037_v23 = vsub.f32 %v2086_v13, %v2496_v59  ;;  %v3091_v42 = vld [vmem:[#allocation12_spill] sm:$0xff]  ;;  %v3092_v13 = vld [vmem:[#allocation13_spill] sm:$0xff] }
 0x1a2   :  { %1220 = vst.msk [vmem:[%s3034_s6 + $0x70] sm:$0xff] %vm268_vm0, %v1156_v16  ;;  %v1102_v35 = vmul.f32 %v2503_v49, %v1035_v39  ;;  %v1166_v17 = vadd.f32 %v2521_v12, %v1098_v26  ;;  %v1038_v3 = vsub.f32 %v3091_v42, %v2496_v59  ;;  %v1167_v43 = vadd.f32 %v2521_v12, %v1099_v37 }
 0x1a3   :  { %1221 = vst.msk [vmem:[%s3034_s6 + $0x78] sm:$0xff] %vm268_vm0, %v1157_v22  ;;  %v1103_v24 = vmul.f32 %v2503_v49, %v1036_v46  ;;  %v1039_v16 = vsub.f32 %v3092_v13, %v2496_v59  ;;  %v1104_v1 = vmul.f32 %v2503_v49, %v1037_v23  ;;  %v1168_v2 = vadd.f32 %v2521_v12, %v1100_v9  ;;  %v3096_v46 = vld [vmem:[#allocation17_spill] sm:$0xff] }
 0x1a4   :  { %1222 = vst.msk [vmem:[%s3034_s6 + $0x80] sm:$0xff] %vm268_vm0, %v1158_v28  ;;  %v1040_v29 = vsub.f32 %v2109_v40, %v2496_v59  ;;  %v1105_v22 = vmul.f32 %v2503_v49, %v1038_v3  ;;  %v1169_v11 = vadd.f32 %v2521_v12, %v1101_v25  ;;  %v1041_v5 = vsub.f32 %v2128_v52, %v2496_v59  ;;  %v3093_v52 = vld [vmem:[#allocation14_spill] sm:$0xff] }
 0x1a5   :  { %1223 = vst.msk [vmem:[%s3034_s6 + $0x88] sm:$0xff] %vm268_vm0, %v1159_v61  ;;  %v1106_v8 = vmul.f32 %v2503_v49, %v1039_v16  ;;  %v1170_v28 = vadd.f32 %v2521_v12, %v1102_v35  ;;  %v1042_v40 = vsub.f32 %v2144_v56, %v2496_v59  ;;  %v1171_v48 = vadd.f32 %v2521_v12, %v1103_v24 }
 0x1a6   :  { %1224 = vst.msk [vmem:[%s3034_s6 + $0x90] sm:$0xff] %vm268_vm0, %v1160_v7  ;;  %v1107_v58 = vmul.f32 %v2503_v49, %v1040_v29  ;;  %v1043_v63 = vsub.f32 %v3093_v52, %v2496_v59  ;;  %v1108_v61 = vmul.f32 %v2503_v49, %v1041_v5  ;;  %v1172_v51 = vadd.f32 %v2521_v12, %v1104_v1 }
 0x1a7   :  { %1225 = vst.msk [vmem:[%s3034_s6 + $0x98] sm:$0xff] %vm268_vm0, %v1161_v18  ;;  %v1044_v56 = vsub.f32 %v2169_v15, %v2496_v59  ;;  %v1109_v33 = vmul.f32 %v2503_v49, %v1042_v40  ;;  %v1173_v7 = vadd.f32 %v2521_v12, %v1105_v22  ;;  %v1045_v36 = vsub.f32 %v2173_v55, %v2496_v59  ;;  %v3094_v55 = vld [vmem:[#allocation15_spill] sm:$0xff] }
 0x1a8   :  { %1226 = vst.msk [vmem:[%s3034_s6 + $0xa0] sm:$0xff] %vm268_vm0, %v1162_v47  ;;  %v1110_v14 = vmul.f32 %v2503_v49, %v1043_v63  ;;  %v1174_v18 = vadd.f32 %v2521_v12, %v1106_v8  ;;  %v1046_v15 = vsub.f32 %v2195_v4, %v2496_v59  ;;  %v1175_v21 = vadd.f32 %v2521_v12, %v1107_v58  ;;  %v3095_v4 = vld [vmem:[#allocation16_spill] sm:$0xff] }
 0x1a9   :  { %1227 = vst.msk [vmem:[%s3034_s6 + $0xa8] sm:$0xff] %vm268_vm0, %v1163_v41  ;;  %v1111_v20 = vmul.f32 %v2503_v49, %v1044_v56  ;;  %v1047_v26 = vsub.f32 %v3094_v55, %v2496_v59  ;;  %v1112_v47 = vmul.f32 %v2503_v49, %v1045_v36  ;;  %v1176_v50 = vadd.f32 %v2521_v12, %v1108_v61 }
 0x1aa   :  { %1228 = vst.msk [vmem:[%s3034_s6 + $0xb0] sm:$0xff] %vm268_vm0, %v1164_v53  ;;  %v1048_v31 = vsub.f32 %v3095_v4, %v2496_v59  ;;  %v1113_v37 = vmul.f32 %v2503_v49, %v1046_v15  ;;  %v1177_v41 = vadd.f32 %v2521_v12, %v1109_v33  ;;  %v1049_v39 = vsub.f32 %v2231_v34, %v2496_v59 }
 0x1ab   :  { %1229 = vst.msk [vmem:[%s3034_s6 + $0xb8] sm:$0xff] %vm268_vm0, %v1165_v44  ;;  %v1114_v9 = vmul.f32 %v2503_v49, %v1047_v26  ;;  %v1178_v53 = vadd.f32 %v2521_v12, %v1110_v14  ;;  %v1050_v25 = vsub.f32 %v3096_v46, %v2496_v59  ;;  %v1179_v23 = vadd.f32 %v2521_v12, %v1111_v20  ;;  %v3102_v46 = vld [vmem:[#allocation23_spill] sm:$0xff] }
 0x1ac   :  { %1230 = vst.msk [vmem:[%s3034_s6 + $0xc0] sm:$0xff] %vm268_vm0, %v1166_v17  ;;  %v1115_v44 = vmul.f32 %v2503_v49, %v1048_v31  ;;  %v1051_v34 = vsub.f32 %v2255_v32, %v2496_v59  ;;  %v1116_v35 = vmul.f32 %v2503_v49, %v1049_v39  ;;  %v1180_v17 = vadd.f32 %v2521_v12, %v1112_v47  ;;  %v3097_v32 = vld [vmem:[#allocation18_spill] sm:$0xff] }
 0x1ad   :  { %1231 = vst.msk [vmem:[%s3034_s6 + $0xc8] sm:$0xff] %vm268_vm0, %v1167_v43  ;;  %v1052_v42 = vsub.f32 %v2268_v54, %v2496_v59  ;;  %v1117_v3 = vmul.f32 %v2503_v49, %v1050_v25  ;;  %v1181_v24 = vadd.f32 %v2521_v12, %v1113_v37  ;;  %v1053_v43 = vsub.f32 %v3097_v32, %v2496_v59  ;;  %v3098_v54 = vld [vmem:[#allocation19_spill] sm:$0xff] }
 0x1ae   :  { %1232 = vst.msk [vmem:[%s3034_s6 + $0xd0] sm:$0xff] %vm268_vm0, %v1168_v2  ;;  %v1118_v13 = vmul.f32 %v2503_v49, %v1051_v34  ;;  %v1182_v16 = vadd.f32 %v2521_v12, %v1114_v9  ;;  %v1054_v1 = vsub.f32 %v3098_v54, %v2496_v59  ;;  %v1183_v29 = vadd.f32 %v2521_v12, %v1115_v44  ;;  %v3103_v34 = vld [vmem:[#allocation24_spill] sm:$0xff] }
 0x1af   :  { %1233 = vst.msk [vmem:[%s3034_s6 + $0xd8] sm:$0xff] %vm268_vm0, %v1169_v11  ;;  %v1119_v2 = vmul.f32 %v2503_v49, %v1052_v42  ;;  %v1055_v22 = vsub.f32 %v2298_v62, %v2496_v59  ;;  %v1120_v11 = vmul.f32 %v2503_v49, %v1053_v43  ;;  %v1184_v5 = vadd.f32 %v2521_v12, %v1116_v35 }
 0x1b0   :  { %1234 = vst.msk [vmem:[%s3034_s6 + $0xe0] sm:$0xff] %vm268_vm0, %v1170_v28  ;;  %v1056_v8 = vsub.f32 %v2307_v60, %v2496_v59  ;;  %v1121_v28 = vmul.f32 %v2503_v49, %v1054_v1  ;;  %v1185_v40 = vadd.f32 %v2521_v12, %v1117_v3  ;;  %v1057_v62 = vsub.f32 %v2326_v10, %v2496_v59 }
 0x1b1   :  { %1235 = vst.msk [vmem:[%s3034_s6 + $0xe8] sm:$0xff] %vm268_vm0, %v1171_v48  ;;  %v1122_v58 = vmul.f32 %v2503_v49, %v1055_v22  ;;  %v1186_v48 = vadd.f32 %v2521_v12, %v1118_v13  ;;  %v1058_v60 = vsub.f32 %v2340_v45, %v2496_v59  ;;  %v1187_v63 = vadd.f32 %v2521_v12, %v1119_v2 }
 0x1b2   :  { %1236 = vst.msk [vmem:[%s3034_s6 + $0xf0] sm:$0xff] %vm268_vm0, %v1172_v51  ;;  %v1123_v52 = vmul.f32 %v2503_v49, %v1056_v8  ;;  %v1059_v10 = vsub.f32 %v2353_v38, %v2496_v59  ;;  %v1124_v61 = vmul.f32 %v2503_v49, %v1057_v62  ;;  %v1188_v51 = vadd.f32 %v2521_v12, %v1120_v11 }
 0x1b3   :  { %1237 = vst.msk [vmem:[%s3034_s6 + $0xf8] sm:$0xff] %vm268_vm0, %v1173_v7  ;;  %v1060_v45 = vsub.f32 %v2365_v30, %v2496_v59  ;;  %v1125_v56 = vmul.f32 %v2503_v49, %v1058_v60  ;;  %v1189_v33 = vadd.f32 %v2521_v12, %v1121_v28  ;;  %v1061_v38 = vsub.f32 %v2379_v6, %v2496_v59 }
 0x1b4   :  { %1238 = vst.msk [vmem:[%s3034_s6 + $0x100] sm:$0xff] %vm268_vm0, %v1174_v18  ;;  %v1126_v7 = vmul.f32 %v2503_v49, %v1059_v10  ;;  %v1190_v36 = vadd.f32 %v2521_v12, %v1122_v58  ;;  %v1062_v30 = vsub.f32 %v2391_v19, %v2496_v59  ;;  %v1191_v18 = vadd.f32 %v2521_v12, %v1123_v52 }
 0x1b5   :  { %1239 = vst.msk [vmem:[%s3034_s6 + $0x108] sm:$0xff] %vm268_vm0, %v1175_v21  ;;  %v1127_v14 = vmul.f32 %v2503_v49, %v1060_v45  ;;  %v1063_v6 = vsub.f32 %v2396_v27, %v2496_v59  ;;  %v1128_v15 = vmul.f32 %v2503_v49, %v1061_v38  ;;  %v1192_v20 = vadd.f32 %v2521_v12, %v1124_v61  ;;  %v3099_v27 = vld [vmem:[#allocation20_spill] sm:$0xff] }
 0x1b6   :  { %1240 = vst.msk [vmem:[%s3034_s6 + $0x110] sm:$0xff] %vm268_vm0, %v1176_v50  ;;  %v1064_v19 = vsub.f32 %v2405_v0, %v2496_v59  ;;  %v1129_v21 = vmul.f32 %v2503_v49, %v1062_v30  ;;  %v1193_v55 = vadd.f32 %v2521_v12, %v1125_v56  ;;  %v1065_v26 = vsub.f32 %v3099_v27, %v2496_v59  ;;  %v3100_v0 = vld [vmem:[#allocation21_spill] sm:$0xff] }
 0x1b7   :  { %1241 = vst.msk [vmem:[%s3034_s6 + $0x118] sm:$0xff] %vm268_vm0, %v1177_v41  ;;  %v1130_v47 = vmul.f32 %v2503_v49, %v1063_v6  ;;  %v1194_v50 = vadd.f32 %v2521_v12, %v1126_v7  ;;  %v1066_v4 = vsub.f32 %v3100_v0, %v2496_v59  ;;  %v1195_v37 = vadd.f32 %v2521_v12, %v1127_v14  ;;  %v3101_v41 = vld [vmem:[#allocation22_spill] sm:$0xff] }
 0x1b8   :  { %1242 = vst.msk [vmem:[%s3034_s6 + $0x120] sm:$0xff] %vm268_vm0, %v1178_v53  ;;  %v1131_v31 = vmul.f32 %v2503_v49, %v1064_v19  ;;  %v1067_v39 = vsub.f32 %v3101_v41, %v2496_v59  ;;  %v1132_v9 = vmul.f32 %v2503_v49, %v1065_v26  ;;  %v1196_v53 = vadd.f32 %v2521_v12, %v1128_v15 }
 0x1b9   :  { %1243 = vst.msk [vmem:[%s3034_s6 + $0x128] sm:$0xff] %vm268_vm0, %v1179_v23  ;;  %v1068_v25 = vsub.f32 %v3102_v46, %v2496_v59  ;;  %v1133_v44 = vmul.f32 %v2503_v49, %v1066_v4  ;;  %v1197_v23 = vadd.f32 %v2521_v12, %v1129_v21  ;;  %v1069_v35 = vsub.f32 %v3103_v34, %v2496_v59 }
 0x1ba   :  { %1244 = vst.msk [vmem:[%s3034_s6 + $0x130] sm:$0xff] %vm268_vm0, %v1180_v17  ;;  %v1134_v17 = vmul.f32 %v2503_v49, %v1067_v39  ;;  %v1198_v42 = vadd.f32 %v2521_v12, %v1130_v47  ;;  %v1200_v32 = vadd.f32 %v2521_v12, %v1132_v9 }
 0x1bb   :  { %1245 = vst.msk [vmem:[%s3034_s6 + $0x138] sm:$0xff] %vm268_vm0, %v1181_v24  ;;  %v1135_v3 = vmul.f32 %v2503_v49, %v1068_v25  ;;  %v1199_v24 = vadd.f32 %v2521_v12, %v1131_v31  ;;  %v1136_v59 = vmul.f32 %v2503_v49, %v1069_v35  ;;  %v1201_v43 = vadd.f32 %v2521_v12, %v1133_v44 }
 0x1bc   :  { %1246 = vst.msk [vmem:[%s3034_s6 + $0x140] sm:$0xff] %vm268_vm0, %v1182_v16  ;;  %v1202_v13 = vadd.f32 %v2521_v12, %v1134_v17 }
 0x1bd   :  { %1247 = vst.msk [vmem:[%s3034_s6 + $0x148] sm:$0xff] %vm268_vm0, %v1183_v29  ;;  %v1203_v49 = vadd.f32 %v2521_v12, %v1135_v3  ;;  %v1204_v16 = vadd.f32 %v2521_v12, %v1136_v59 }
 0x1be   :  { %1248 = vst.msk [vmem:[%s3034_s6 + $0x150] sm:$0xff] %vm268_vm0, %v1184_v5 }
 0x1bf   :  { %1249 = vst.msk [vmem:[%s3034_s6 + $0x158] sm:$0xff] %vm268_vm0, %v1185_v40 }
 0x1c0   :  { %1250 = vst.msk [vmem:[%s3034_s6 + $0x160] sm:$0xff] %vm268_vm0, %v1186_v48 }
 0x1c1   :  { %1251 = vst.msk [vmem:[%s3034_s6 + $0x168] sm:$0xff] %vm268_vm0, %v1187_v63 }
 0x1c2   :  { %1252 = vst.msk [vmem:[%s3034_s6 + $0x170] sm:$0xff] %vm268_vm0, %v1188_v51 }
 0x1c3   :  { %1253 = vst.msk [vmem:[%s3034_s6 + $0x178] sm:$0xff] %vm268_vm0, %v1189_v33 }
 0x1c4   :  { %1254 = vst.msk [vmem:[%s3034_s6 + $0x180] sm:$0xff] %vm268_vm0, %v1190_v36 }
 0x1c5   :  { %1255 = vst.msk [vmem:[%s3034_s6 + $0x188] sm:$0xff] %vm268_vm0, %v1191_v18 }
 0x1c6   :  { %1256 = vst.msk [vmem:[%s3034_s6 + $0x190] sm:$0xff] %vm268_vm0, %v1192_v20 }
 0x1c7   :  { %1257 = vst.msk [vmem:[%s3034_s6 + $0x198] sm:$0xff] %vm268_vm0, %v1193_v55 }
 0x1c8   :  { %1258 = vst.msk [vmem:[%s3034_s6 + $0x1a0] sm:$0xff] %vm268_vm0, %v1194_v50 }
 0x1c9   :  { %1259 = vst.msk [vmem:[%s3034_s6 + $0x1a8] sm:$0xff] %vm268_vm0, %v1195_v37 }
 0x1ca   :  { %1260 = vst.msk [vmem:[%s3034_s6 + $0x1b0] sm:$0xff] %vm268_vm0, %v1196_v53 }
 0x1cb   :  { %1261 = vst.msk [vmem:[%s3034_s6 + $0x1b8] sm:$0xff] %vm268_vm0, %v1197_v23 }
 0x1cc   :  { %1262 = vst.msk [vmem:[%s3034_s6 + $0x1c0] sm:$0xff] %vm268_vm0, %v1198_v42 }
 0x1cd   :  { %1263 = vst.msk [vmem:[%s3034_s6 + $0x1c8] sm:$0xff] %vm268_vm0, %v1199_v24 }
 0x1ce   :  { %1264 = vst.msk [vmem:[%s3034_s6 + $0x1d0] sm:$0xff] %vm268_vm0, %v1200_v32 }
 0x1cf   :  { %1265 = vst.msk [vmem:[%s3034_s6 + $0x1d8] sm:$0xff] %vm268_vm0, %v1201_v43 }
 0x1d0   :  { %1266 = vst.msk [vmem:[%s3034_s6 + $0x1e0] sm:$0xff] %vm268_vm0, %v1202_v13 }
 0x1d1   :  { %1267 = vst.msk [vmem:[%s3034_s6 + $0x1e8] sm:$0xff] %vm268_vm0, %v1203_v49 }
 0x1d2   :  { %1268 = vst.msk [vmem:[%s3034_s6 + $0x1f0] sm:$0xff] %vm268_vm0, %v1204_v16 }
 0x1d3   :  { %1269 = vst.msk [vmem:[%s3034_s6 + $0x1f8] sm:$0xff] %vm268_vm0, %v2657_v57 }

</bundles_post_ra>
